<compile_context>
chip_gen: v7x
topology: tpu7x:2x2x1
jax: 0.10.0
libtpu: 0.0.40
codegen_flags: <defaults>
</compile_context>

<pallas_src>
from functools import partial

import numpy as np
import jax
import jax.numpy as jnp
from jax import lax
from jax.experimental import pallas as pl
from jax.experimental.pallas import tpu as pltpu


# ----------------------------- fused Pallas kernel ------------------------------

def _cnn_fused_kernel(x_ref, w1_ref, b1_ref, w2_ref, b2_ref,
                      wf1_ref, bf1_ref, wf2_ref, bf2_ref, out_ref):
    f32 = jnp.float32
    bf16 = jnp.bfloat16

    # ---- conv1 + bias + relu: one (B, 96) @ (96, 1536) bf16 matmul.
    #      Output lane index = h*128 + w*16 + c  (h in 0..11, w in 0..7, c in 0..15);
    #      the 3x3/pad=1 conv (incl. zero padding) is folded into w1 on the host.
    x = x_ref[...].astype(bf16)
    a1 = jnp.dot(x, w1_ref[...], preferred_element_type=f32)
    a1 = jnp.maximum(a1 + b1_ref[...], 0.0)                      # (B, 1536)

    # ---- pool1 (2x2): lane rolls (XLU) + max (VPU).  rolled[i] = a[i + shift_back],
    #      so max(a, roll(a, n-16)) holds the w-pair max at even-w lanes and
    #      max(., roll(., n-128)) the h-pair max at even-h lanes.  The compaction
    #      of those valid lanes into conv2's K dim is folded into w2 (zero rows).
    n1 = a1.shape[-1]
    pw = jnp.maximum(a1, pltpu.roll(a1, shift=n1 - 16, axis=1))   # w pair-max
    p1 = jnp.maximum(pw, pltpu.roll(pw, shift=n1 - 128, axis=1))  # h pair-max

    # ---- conv2 + bias + relu: (B, 1536) @ (1536, 768) bf16 matmul.
    #      Output lane index = j*128 + wq*32 + c (j in 0..5, wq in 0..3, c in 0..31).
    a2 = jnp.dot(p1.astype(bf16), w2_ref[...], preferred_element_type=f32)
    a2 = jnp.maximum(a2 + b2_ref[...], 0.0)                      # (B, 768)

    # ---- pool2 (2x2): same roll + max trick; compaction folded into fc1's weight.
    n2 = a2.shape[-1]
    qw = jnp.maximum(a2, pltpu.roll(a2, shift=n2 - 32, axis=1))
    p2 = jnp.maximum(qw, pltpu.roll(qw, shift=n2 - 128, axis=1))

    # ---- fc1 + bias + relu: (B, 768) @ (768, 64); the PyTorch NCHW flatten order
    #      is folded into wf1 on the host.
    h1 = jnp.dot(p2.astype(bf16), wf1_ref[...], preferred_element_type=f32)
    h1 = jnp.maximum(h1 + bf1_ref[...], 0.0)                     # (B, 64)

    # ---- fc2 as elementwise multiply + lane reduction (avoids an N=1 matmul).
    out_ref[...] = jnp.sum(h1 * wf2_ref[...], axis=1, keepdims=True) + bf2_ref[...]


# ----------------------------- one-time weight repacking ------------------------------

def prepare_params(p):
    """Repack PyTorch-layout params into the lane-packed kernel layout (host, once)."""
    w1 = np.asarray(p["conv1_w"], np.float32)     # (16, 1, 3, 3)
    w2 = np.asarray(p["conv2_w"], np.float32)     # (32, 16, 3, 3)
    f1 = np.asarray(p["fc1_w"], np.float32)       # (64, 192)

    # conv1 (3x3, pad=1) as a dense (96, 1536) matrix.
    #   input lane  = hi*8 + wi            (12x8 image, Cin=1)
    #   output lane = (ho*8 + wo)*16 + co  = ho*128 + wo*16 + co
    W1 = np.zeros((12, 8, 12, 8, 16), np.float32)
    for dh in range(3):
        for dw in range(3):
            for ho in range(12):
                hi = ho + dh - 1
                if not 0 <= hi < 12:
                    continue
                for wo in range(8):
                    wi = wo + dw - 1
                    if not 0 <= wi < 8:
                        continue
                    W1[hi, wi, ho, wo, :] = w1[:, 0, dh, dw]
    W1 = W1.reshape(96, 1536)
    b1p = np.tile(np.asarray(p["conv1_b"], np.float32), 96).reshape(1, 1536)

    # conv2 (3x3, pad=1 on the 6x4 pool1 output) as (1536, 768).
    # Its input lanes are pool1's *uncompacted* valid lanes (even-h, even-w of the
    # conv1 lane space): Lin = (2*jp)*128 + (2*wp)*16 + c; all other rows stay zero
    # (this is the pool1 lane compaction folded into the matmul).
    #   output lane = (jo*4 + wo)*32 + co
    W2 = np.zeros((1536, 6, 4, 32), np.float32)
    for dj in range(3):
        for dw in range(3):
            for jo in range(6):
                jp = jo + dj - 1
                if not 0 <= jp < 6:
                    continue
                for wo in range(4):
                    wp = wo + dw - 1
                    if not 0 <= wp < 4:
                        continue
                    base = (2 * jp) * 128 + (2 * wp) * 16
                    W2[base:base + 16, jo, wo, :] = w2[:, :, dj, dw].T   # (c, co)
    W2 = W2.reshape(1536, 768)
    b2p = np.tile(np.asarray(p["conv2_b"], np.float32), 24).reshape(1, 768)

    # fc1 over the torch NCHW flatten (index = c*6 + j3*2 + w3) of the 32x3x2 pool2
    # output; reads pool2's uncompacted valid lanes of the conv2 lane space.
    Wf1 = np.zeros((768, 64), np.float32)
    for j3 in range(3):
        for w3 in range(2):
            for co in range(32):
                lin = (2 * j3) * 128 + (2 * w3) * 32 + co
                Wf1[lin, :] = f1[:, co * 6 + j3 * 2 + w3]

    return dict(
        w1=jnp.asarray(W1, jnp.bfloat16),
        b1=jnp.asarray(b1p, jnp.float32),
        w2=jnp.asarray(W2, jnp.bfloat16),
        b2=jnp.asarray(b2p, jnp.float32),
        wf1=jnp.asarray(Wf1, jnp.bfloat16),
        bf1=jnp.asarray(np.asarray(p["fc1_b"], np.float32).reshape(1, 64)),
        wf2=jnp.asarray(np.asarray(p["fc2_w"], np.float32).reshape(1, 64)),
        bf2=jnp.asarray(np.asarray(p["fc2_b"], np.float32).reshape(1, 1)),
    )


# ----------------------------- forward ------------------------------

@partial(jax.jit, static_argnames=("block_b",))
def cnn_forward(x_nchw, prep, block_b=8):
    """Fused CNN forward.  block_b = samples per grid step (sweep 8..64+)."""
    N = x_nchw.shape[0]
    B = block_b
    n_blocks = pl.cdiv(N, B)
    n_pad = n_blocks * B

    # Only host-side glue: flatten (N,1,12,8) -> (N,96) and pad the batch to a
    # multiple of B (conv padding is folded into w1, so no spatial pad needed).
    x2 = x_nchw.reshape(N, 96).astype(jnp.float32)
    if n_pad != N:
        x2 = jnp.pad(x2, ((0, n_pad - N), (0, 0)))

    out = pl.pallas_call(
        _cnn_fused_kernel,
        out_shape=jax.ShapeDtypeStruct((n_pad, 1), jnp.float32),
        grid=(n_blocks,),
        in_specs=[
            pl.BlockSpec((B, 96), lambda i: (i, 0)),       # batch block of flat images
            pl.BlockSpec((96, 1536), lambda i: (0, 0)),    # conv1 (padding folded in)
            pl.BlockSpec((1, 1536), lambda i: (0, 0)),     # conv1 bias (lane packed)
            pl.BlockSpec((1536, 768), lambda i: (0, 0)),   # conv2 (pool1 compaction folded)
            pl.BlockSpec((1, 768), lambda i: (0, 0)),      # conv2 bias (lane packed)
            pl.BlockSpec((768, 64), lambda i: (0, 0)),     # fc1 (pool2 compaction + flatten folded)
            pl.BlockSpec((1, 64), lambda i: (0, 0)),       # fc1 bias
            pl.BlockSpec((1, 64), lambda i: (0, 0)),       # fc2 weight
            pl.BlockSpec((1, 1), lambda i: (0, 0)),        # fc2 bias
        ],
        out_specs=pl.BlockSpec((B, 1), lambda i: (i, 0)),
        compiler_params=pltpu.CompilerParams(
            dimension_semantics=("parallel",)),            # multiple blocks -> both TCs on v7x
    )(x2, prep["w1"], prep["b1"], prep["w2"], prep["b2"],
      prep["wf1"], prep["bf1"], prep["wf2"], prep["bf2"])
    return out[:N]


# ----------------------------- reference + init ------------------------------

def init_params(key):
    """Parameters in PyTorch layout: Conv2d (Cout,Cin,kh,kw), Linear (out,in)."""
    ks = jax.random.split(key, 8)
    s = 0.05
    return {
        "conv1_w": s * jax.random.normal(ks[0], (16, 1, 3, 3), jnp.float32),
        "conv1_b": s * jax.random.normal(ks[1], (16,), jnp.float32),
        "conv2_w": s * jax.random.normal(ks[2], (32, 16, 3, 3), jnp.float32),
        "conv2_b": s * jax.random.normal(ks[3], (32,), jnp.float32),
        "fc1_w": s * jax.random.normal(ks[4], (64, 192), jnp.float32),
        "fc1_b": s * jax.random.normal(ks[5], (64,), jnp.float32),
        "fc2_w": s * jax.random.normal(ks[6], (1, 64), jnp.float32),
        "fc2_b": s * jax.random.normal(ks[7], (1,), jnp.float32),
    }


def reference_forward(x, p):
    """Plain-JAX mirror of the PyTorch module (f32, highest precision)."""
    dn = ("NCHW", "OIHW", "NCHW")
    hi = lax.Precision.HIGHEST
    y = lax.conv_general_dilated(x, p["conv1_w"], (1, 1), ((1, 1), (1, 1)),
                                 dimension_numbers=dn, precision=hi)
    y = jnp.maximum(y + p["conv1_b"][None, :, None, None], 0.0)
    y = lax.reduce_window(y, -jnp.inf, lax.max, (1, 1, 2, 2), (1, 1, 2, 2), "VALID")
    y = lax.conv_general_dilated(y, p["conv2_w"], (1, 1), ((1, 1), (1, 1)),
                                 dimension_numbers=dn, precision=hi)
    y = jnp.maximum(y + p["conv2_b"][None, :, None, None], 0.0)
    y = lax.reduce_window(y, -jnp.inf, lax.max, (1, 1, 2, 2), (1, 1, 2, 2), "VALID")
    flat = y.reshape(y.shape[0], -1)                       # NCHW flatten, like torch .view
    h = jnp.maximum(jnp.dot(flat, p["fc1_w"].T, precision=hi) + p["fc1_b"], 0.0)
    return jnp.dot(h, p["fc2_w"].T, precision=hi) + p["fc2_b"]


if __name__ == "__main__":
    key = jax.random.PRNGKey(0)
    k_x, k_p = jax.random.split(key)
    params = init_params(k_p)
    prep = prepare_params(params)          # one-time weight repacking (not per step)

    # Input implied by fc1 = Linear(32*3*2, 64): NCHW (2, 1, 12, 8).
    x = jax.random.normal(k_x, (2, 1, 12, 8), jnp.float32)
    out = cnn_forward(x, prep)
    jax.block_until_ready(out)
    ref = reference_forward(x, params)
    err = float(jnp.max(jnp.abs(out - ref)))
    assert out.shape == (2, 1), out.shape
    assert out.dtype == jnp.float32
    assert err < 2e-3, f"max |pallas - reference| = {err}"

    # Second run with a ragged, multi-block batch to exercise batching + padding.
    x_big = jax.random.normal(jax.random.PRNGKey(1), (19, 1, 12, 8), jnp.float32)
    out_big = cnn_forward(x_big, prep)
    jax.block_until_ready(out_big)
    ref_big = reference_forward(x_big, params)
    err_big = float(jnp.max(jnp.abs(out_big - ref_big)))
    assert out_big.shape == (19, 1), out_big.shape
    assert err_big < 2e-3, f"max |pallas - reference| = {err_big}"

    print("KERNEL_OK")
</pallas_src>

<mosaic_0001>
module attributes {stable_mosaic.version = 11 : i64} {
  func.func @_cnn_fused_kernel(%arg0: i32, %arg1: memref<8x96xf32, #tpu.memory_space<vmem>>, %arg2: memref<96x1536xbf16, #tpu.memory_space<vmem>>, %arg3: memref<1x1536xf32, #tpu.memory_space<vmem>>, %arg4: memref<1536x768xbf16, #tpu.memory_space<vmem>>, %arg5: memref<1x768xf32, #tpu.memory_space<vmem>>, %arg6: memref<768x64xbf16, #tpu.memory_space<vmem>>, %arg7: memref<1x64xf32, #tpu.memory_space<vmem>>, %arg8: memref<1x64xf32, #tpu.memory_space<vmem>>, %arg9: memref<1x1xf32, #tpu.memory_space<vmem>>, %arg10: memref<8x1xf32, #tpu.memory_space<vmem>>) attributes {dimension_semantics = [#tpu.dimension_semantics<parallel>], iteration_bounds = array<i64: 1>, scalar_prefetch = 0 : i64, scratch_operands = 0 : i64, tpu.core_type = #tpu.core_type<tc>, window_params = [{transform_indices = @transform_0, window_bounds = array<i64: 8, 96>}, {pipeline_mode = #tpu.pipeline_mode<synchronous>, transform_indices = @transform_1, window_bounds = array<i64: 96, 1536>}, {pipeline_mode = #tpu.pipeline_mode<synchronous>, transform_indices = @transform_2, window_bounds = array<i64: 1, 1536>}, {pipeline_mode = #tpu.pipeline_mode<synchronous>, transform_indices = @transform_3, window_bounds = array<i64: 1536, 768>}, {pipeline_mode = #tpu.pipeline_mode<synchronous>, transform_indices = @transform_4, window_bounds = array<i64: 1, 768>}, {pipeline_mode = #tpu.pipeline_mode<synchronous>, transform_indices = @transform_5, window_bounds = array<i64: 768, 64>}, {pipeline_mode = #tpu.pipeline_mode<synchronous>, transform_indices = @transform_6, window_bounds = array<i64: 1, 64>}, {pipeline_mode = #tpu.pipeline_mode<synchronous>, transform_indices = @transform_7, window_bounds = array<i64: 1, 64>}, {pipeline_mode = #tpu.pipeline_mode<synchronous>, transform_indices = @transform_8, window_bounds = array<i64: 1, 1>}, {transform_indices = @transform_9, window_bounds = array<i64: 8, 1>}]} {
    %c0 = arith.constant 0 : index
    %c0_0 = arith.constant 0 : index
    %0 = vector.load %arg1[%c0, %c0_0] : memref<8x96xf32, #tpu.memory_space<vmem>>, vector<8x96xf32>
    %1 = arith.truncf %0 : vector<8x96xf32> to vector<8x96xbf16>
    %c0_1 = arith.constant 0 : index
    %c0_2 = arith.constant 0 : index
    %2 = vector.load %arg2[%c0_1, %c0_2] : memref<96x1536xbf16, #tpu.memory_space<vmem>>, vector<96x1536xbf16>
    %cst = arith.constant dense<0.000000e+00> : vector<8x1536xf32>
    %3 = tpu.matmul %1, %2, %cst {dimension_numbers = #tpu.dot_dimension_numbers<[1], [0], [0], [1], [0, 0, 1, 1], [], []>} : vector<8x96xbf16>, vector<96x1536xbf16>, vector<8x1536xf32> -> vector<8x1536xf32>
    %c0_3 = arith.constant 0 : index
    %c0_4 = arith.constant 0 : index
    %4 = vector.load %arg3[%c0_3, %c0_4] : memref<1x1536xf32, #tpu.memory_space<vmem>>, vector<1x1536xf32>
    %5 = vector.broadcast %4 : vector<1x1536xf32> to vector<8x1536xf32>
    %6 = arith.addf %3, %5 : vector<8x1536xf32>
    %cst_5 = arith.constant 0.000000e+00 : f32
    %7 = vector.broadcast %cst_5 : f32 to vector<8x1536xf32>
    %8 = arith.maximumf %6, %7 : vector<8x1536xf32>
    %c1520_i32 = arith.constant 1520 : i32
    %9 = tpu.dynamic_rotate %8 by %c1520_i32 dim 1 : vector<8x1536xf32>, i32 -> vector<8x1536xf32>
    %10 = arith.maximumf %8, %9 : vector<8x1536xf32>
    %c1408_i32 = arith.constant 1408 : i32
    %11 = tpu.dynamic_rotate %10 by %c1408_i32 dim 1 : vector<8x1536xf32>, i32 -> vector<8x1536xf32>
    %12 = arith.maximumf %10, %11 : vector<8x1536xf32>
    %13 = arith.truncf %12 : vector<8x1536xf32> to vector<8x1536xbf16>
    %c0_6 = arith.constant 0 : index
    %c0_7 = arith.constant 0 : index
    %14 = vector.load %arg4[%c0_6, %c0_7] : memref<1536x768xbf16, #tpu.memory_space<vmem>>, vector<1536x768xbf16>
    %cst_8 = arith.constant dense<0.000000e+00> : vector<8x768xf32>
    %15 = tpu.matmul %13, %14, %cst_8 {dimension_numbers = #tpu.dot_dimension_numbers<[1], [0], [0], [1], [0, 0, 1, 1], [], []>} : vector<8x1536xbf16>, vector<1536x768xbf16>, vector<8x768xf32> -> vector<8x768xf32>
    %c0_9 = arith.constant 0 : index
    %c0_10 = arith.constant 0 : index
    %16 = vector.load %arg5[%c0_9, %c0_10] : memref<1x768xf32, #tpu.memory_space<vmem>>, vector<1x768xf32>
    %17 = vector.broadcast %16 : vector<1x768xf32> to vector<8x768xf32>
    %18 = arith.addf %15, %17 : vector<8x768xf32>
    %cst_11 = arith.constant 0.000000e+00 : f32
    %19 = vector.broadcast %cst_11 : f32 to vector<8x768xf32>
    %20 = arith.maximumf %18, %19 : vector<8x768xf32>
    %c736_i32 = arith.constant 736 : i32
    %21 = tpu.dynamic_rotate %20 by %c736_i32 dim 1 : vector<8x768xf32>, i32 -> vector<8x768xf32>
    %22 = arith.maximumf %20, %21 : vector<8x768xf32>
    %c640_i32 = arith.constant 640 : i32
    %23 = tpu.dynamic_rotate %22 by %c640_i32 dim 1 : vector<8x768xf32>, i32 -> vector<8x768xf32>
    %24 = arith.maximumf %22, %23 : vector<8x768xf32>
    %25 = arith.truncf %24 : vector<8x768xf32> to vector<8x768xbf16>
    %c0_12 = arith.constant 0 : index
    %c0_13 = arith.constant 0 : index
    %26 = vector.load %arg6[%c0_12, %c0_13] : memref<768x64xbf16, #tpu.memory_space<vmem>>, vector<768x64xbf16>
    %cst_14 = arith.constant dense<0.000000e+00> : vector<8x64xf32>
    %27 = tpu.matmul %25, %26, %cst_14 {dimension_numbers = #tpu.dot_dimension_numbers<[1], [0], [0], [1], [0, 0, 1, 1], [], []>} : vector<8x768xbf16>, vector<768x64xbf16>, vector<8x64xf32> -> vector<8x64xf32>
    %c0_15 = arith.constant 0 : index
    %c0_16 = arith.constant 0 : index
    %28 = vector.load %arg7[%c0_15, %c0_16] : memref<1x64xf32, #tpu.memory_space<vmem>>, vector<1x64xf32>
    %29 = vector.broadcast %28 : vector<1x64xf32> to vector<8x64xf32>
    %30 = arith.addf %27, %29 : vector<8x64xf32>
    %cst_17 = arith.constant 0.000000e+00 : f32
    %31 = vector.broadcast %cst_17 : f32 to vector<8x64xf32>
    %32 = arith.maximumf %30, %31 : vector<8x64xf32>
    %c0_18 = arith.constant 0 : index
    %c0_19 = arith.constant 0 : index
    %33 = vector.load %arg8[%c0_18, %c0_19] : memref<1x64xf32, #tpu.memory_space<vmem>>, vector<1x64xf32>
    %34 = vector.broadcast %33 : vector<1x64xf32> to vector<8x64xf32>
    %35 = arith.mulf %32, %34 : vector<8x64xf32>
    %cst_20 = arith.constant dense<0.000000e+00> : vector<8xf32>
    %36 = vector.multi_reduction <add>, %35, %cst_20 [1] : vector<8x64xf32> to vector<8xf32>
    %37 = vector.shape_cast %36 : vector<8xf32> to vector<8x1xf32>
    %c0_21 = arith.constant 0 : index
    %c0_22 = arith.constant 0 : index
    %38 = vector.load %arg9[%c0_21, %c0_22] : memref<1x1xf32, #tpu.memory_space<vmem>>, vector<1x1xf32>
    %39 = vector.broadcast %38 : vector<1x1xf32> to vector<8x1xf32>
    %40 = arith.addf %37, %39 : vector<8x1xf32>
    %c0_23 = arith.constant 0 : index
    %c0_24 = arith.constant 0 : index
    %41 = vector.load %arg10[%c0_23, %c0_24] : memref<8x1xf32, #tpu.memory_space<vmem>>, vector<8x1xf32>
    tpu.vector_store %arg10[%c0_23, %c0_24], %40 {strides = array<i32>} : memref<8x1xf32, #tpu.memory_space<vmem>>, vector<8x1xf32>,
    return
  }
  func.func @transform_0(%arg0: i32) -> (i32, i32) {
    %c0_i32 = arith.constant 0 : i32
    %c0_i32_0 = arith.constant 0 : i32
    return %arg0, %c0_i32 : i32, i32
  }
  func.func @transform_1(%arg0: i32) -> (i32, i32) {
    %c0_i32 = arith.constant 0 : i32
    %c0_i32_0 = arith.constant 0 : i32
    %c0_i32_1 = arith.constant 0 : i32
    return %c0_i32, %c0_i32_0 : i32, i32
  }
  func.func @transform_2(%arg0: i32) -> (i32, i32) {
    %c0_i32 = arith.constant 0 : i32
    %c0_i32_0 = arith.constant 0 : i32
    %c0_i32_1 = arith.constant 0 : i32
    return %c0_i32, %c0_i32_0 : i32, i32
  }
  func.func @transform_3(%arg0: i32) -> (i32, i32) {
    %c0_i32 = arith.constant 0 : i32
    %c0_i32_0 = arith.constant 0 : i32
    %c0_i32_1 = arith.constant 0 : i32
    return %c0_i32, %c0_i32_0 : i32, i32
  }
  func.func @transform_4(%arg0: i32) -> (i32, i32) {
    %c0_i32 = arith.constant 0 : i32
    %c0_i32_0 = arith.constant 0 : i32
    %c0_i32_1 = arith.constant 0 : i32
    return %c0_i32, %c0_i32_0 : i32, i32
  }
  func.func @transform_5(%arg0: i32) -> (i32, i32) {
    %c0_i32 = arith.constant 0 : i32
    %c0_i32_0 = arith.constant 0 : i32
    %c0_i32_1 = arith.constant 0 : i32
    return %c0_i32, %c0_i32_0 : i32, i32
  }
  func.func @transform_6(%arg0: i32) -> (i32, i32) {
    %c0_i32 = arith.constant 0 : i32
    %c0_i32_0 = arith.constant 0 : i32
    %c0_i32_1 = arith.constant 0 : i32
    return %c0_i32, %c0_i32_0 : i32, i32
  }
  func.func @transform_7(%arg0: i32) -> (i32, i32) {
    %c0_i32 = arith.constant 0 : i32
    %c0_i32_0 = arith.constant 0 : i32
    %c0_i32_1 = arith.constant 0 : i32
    return %c0_i32, %c0_i32_0 : i32, i32
  }
  func.func @transform_8(%arg0: i32) -> (i32, i32) {
    %c0_i32 = arith.constant 0 : i32
    %c0_i32_0 = arith.constant 0 : i32
    %c0_i32_1 = arith.constant 0 : i32
    return %c0_i32, %c0_i32_0 : i32, i32
  }
  func.func @transform_9(%arg0: i32) -> (i32, i32) {
    %c0_i32 = arith.constant 0 : i32
    %c0_i32_0 = arith.constant 0 : i32
    return %arg0, %c0_i32 : i32, i32
  }
}

</mosaic_0001>

<bundles_post_ra>
// kernel: cnn_forward.1
= control target key start
LH: loop header
LB: loop body
LE: loop exit
PB: predicated region body
PF: predicated region fallthrough
CT: control target
= control target key end

     0   :  { %s8433_s0 = inlined_call_operand.vmem [shape: f32[8,96], index: 0, kind: input, shape index: {}]   ;;  %s8434_s1 = inlined_call_operand.hbm [shape: bf16[96,1536], index: 1, kind: input, shape index: {}]   ;;  %s8435_s2 = inlined_call_operand.hbm [shape: f32[1,1536], index: 2, kind: input, shape index: {}]   ;;  %s8436_s3 = inlined_call_operand.hbm [shape: bf16[1536,768], index: 3, kind: input, shape index: {}]   ;;  %s8437_s4 = inlined_call_operand.hbm [shape: f32[1,768], index: 4, kind: input, shape index: {}]   ;;  %s8438_s5 = inlined_call_operand.vmem [shape: bf16[768,64], index: 5, kind: input, shape index: {}]   ;;  %s8439_s6 = inlined_call_operand.hbm [shape: f32[1,64], index: 6, kind: input, shape index: {}]   ;;  %s8440_s7 = inlined_call_operand.hbm [shape: f32[1,64], index: 7, kind: input, shape index: {}]   ;;  %s8441_s8 = inlined_call_operand.<no memory space> [shape: f32[1,1], index: 8, kind: input, shape index: {}]   ;;  %s8442_s9 = inlined_call_operand.vmem [shape: f32[8,1], index: 9, kind: output, shape index: {}]  }
   0x1   :  { %v14_v0 = vstv %s8441_s8 }
   0x2   :  { %15 = vst [vmem:[#allocation2] sm:$0x1] %v14_v0 }
   0x3   :  { %16 = vsyncpa [#allocation4], 0 }
   0x4   :  { %17 = vsyncpa [#allocation6], 0 }
   0x5   :  { %18 = vsyncpa [#allocation9], 0 }
   0x6   :  { %19 = vsyncpa [#allocation12], 0  ;;  %s7808_s11 = smov [#allocation5]   ;;  %s7809_s13 = smov [#allocation8]  }
   0x7   :  { %s40_s12 = sshll.u32 %s7808_s11, 4  ;;  %s62_s14 = sshll.u32 %s7809_s13, 4  ;;  %s41_s12 = int_to_ptr.vmem [resolvable:$true] %s40_s12  ;;  %s63_s14 = int_to_ptr.vmem [resolvable:$true] %s62_s14 }
   0x8   :  { %s7668_s17 = scalar_lea.hbm %s8435_s2, 192 }
   0x9   :  { %p7669_p0 = scmp.ne.s32.totalorder %s8435_s2, %s7668_s17  ;;  %p7672_p1 = scmp.lt.u32.totalorder %s7668_s17, %s8435_s2 }
   0xb   :  { %p7674_p2 = pnand %p7672_p1, %p7669_p0 }
   0xd   :  { %7677 = shalt.err (!%p7674_p2)
}
   0xe   :  { %s7678_s21 = scalar_lea.vmem %s41_s12, 192  ;;  %p7683_p4 = scmp.lt.s32.totalorder %s41_s12, %s41_s12 }
   0xf   :  { %p7679_p3 = scmp.ne.s32.totalorder %s41_s12, %s7678_s21  ;;  %p7684_p5 = scmp.lt.s32.totalorder %s7678_s21, %s7678_s21 }
  0x11   :  { %p7685_p6 = por %p7684_p5, %p7683_p4 }
  0x13   :  { %p7686_p7 = pnand %p7685_p6, %p7679_p3 }
  0x15   :  { %7689 = shalt.err (!%p7686_p7)
}
  0x16   :  { %43 = dma.hbm_to_vmem [thread:$0]  %s8435_s2, 192, %s41_s12, [#allocation6]  }
  0x17   :  { %s7690_s26 = scalar_lea.hbm %s8437_s4, 96 }
  0x18   :  { %p7691_p8 = scmp.ne.s32.totalorder %s8437_s4, %s7690_s26  ;;  %p7694_p9 = scmp.lt.u32.totalorder %s7690_s26, %s8437_s4 }
  0x1a   :  { %p7696_p10 = pnand %p7694_p9, %p7691_p8 }
  0x1c   :  { %7699 = shalt.err (!%p7696_p10)
}
  0x1d   :  { %s7700_s10 = scalar_lea.vmem %s63_s14, 96  ;;  %p7705_p12 = scmp.lt.s32.totalorder %s63_s14, %s63_s14 }
  0x1e   :  { %p7701_p11 = scmp.ne.s32.totalorder %s63_s14, %s7700_s10  ;;  %p7706_p13 = scmp.lt.s32.totalorder %s7700_s10, %s7700_s10 }
  0x20   :  { %p7707_p0 = por %p7706_p13, %p7705_p12 }
  0x22   :  { %p7708_p1 = pnand %p7707_p0, %p7701_p11 }
  0x24   :  { %7711 = shalt.err (!%p7708_p1)
}
  0x25   :  { %65 = dma.hbm_to_vmem [thread:$0]  %s8437_s4, 96, %s63_s14, [#allocation9]  }
  0x26   :  { %s7810_s12 = smov [#allocation3]   ;;  %s7712_s17 = scalar_lea.hbm %s8434_s1, 9216 }
  0x27   :  { %s27_s13 = sshll.u32 %s7810_s12, 4  ;;  %p7713_p2 = scmp.ne.s32.totalorder %s8434_s1, %s7712_s17  ;;  %s28_s13 = int_to_ptr.vmem [resolvable:$true] %s27_s13 }
  0x28   :  { %p7716_p3 = scmp.lt.u32.totalorder %s7712_s17, %s8434_s1 }
  0x2a   :  { %p7718_p4 = pnand %p7716_p3, %p7713_p2 }
  0x2c   :  { %7721 = shalt.err (!%p7718_p4)
}
  0x2d   :  { %s7722_s21 = scalar_lea.vmem %s28_s13, 9216  ;;  %p7727_p6 = scmp.lt.s32.totalorder %s28_s13, %s28_s13 }
  0x2e   :  { %p7723_p5 = scmp.ne.s32.totalorder %s28_s13, %s7722_s21  ;;  %p7728_p7 = scmp.lt.s32.totalorder %s7722_s21, %s7722_s21 }
  0x30   :  { %p7729_p8 = por %p7728_p7, %p7727_p6 }
  0x32   :  { %p7730_p9 = pnand %p7729_p8, %p7723_p5 }
  0x34   :  { %7733 = shalt.err (!%p7730_p9)
}
  0x35   :  { %s7811_s4 = smov 768   ;;  %s7812_s14 = smov 48  }
  0x36   :  { %33 = dma.hbm_to_vmem [thread:$0]  %s8434_s1, 9216, %s28_s13, [#allocation4], %s7811_s4, %s7811_s4, %s7812_s14  }
  0x37   :  { %s7813_s24 = smov [#allocation7]   ;;  %s7734_s28 = scalar_lea.hbm %s8436_s3, 73728 }
  0x38   :  { %s49_s25 = sshll.u32 %s7813_s24, 4  ;;  %p7735_p10 = scmp.ne.s32.totalorder %s8436_s3, %s7734_s28  ;;  %s50_s25 = int_to_ptr.vmem [resolvable:$true] %s49_s25 }
  0x39   :  { %p7738_p11 = scmp.lt.u32.totalorder %s7734_s28, %s8436_s3 }
  0x3b   :  { %p7740_p12 = pnand %p7738_p11, %p7735_p10 }
  0x3d   :  { %7743 = shalt.err (!%p7740_p12)
}
  0x3e   :  { %s7744_s11 = scalar_lea.vmem %s50_s25, 73728  ;;  %p7749_p0 = scmp.lt.s32.totalorder %s50_s25, %s50_s25 }
  0x3f   :  { %p7745_p13 = scmp.ne.s32.totalorder %s50_s25, %s7744_s11  ;;  %p7750_p1 = scmp.lt.s32.totalorder %s7744_s11, %s7744_s11 }
  0x41   :  { %p7751_p2 = por %p7750_p1, %p7749_p0 }
  0x43   :  { %p7752_p3 = pnand %p7751_p2, %p7745_p13 }
  0x45   :  { %7755 = shalt.err (!%p7752_p3)
}
  0x46   :  { %s7814_s1 = smov 384   ;;  %s7815_s12 = smov 24  }
  0x47   :  { %55 = dma.hbm_to_vmem [thread:$0]  %s8436_s3, 73728, %s50_s25, [#allocation6], %s7814_s1, %s7814_s1, %s7815_s12  }
  0x48   :  { %s7816_s16 = smov [#allocation10]   ;;  %s7817_s18 = smov [#allocation11]  }
  0x49   :  { %s74_s17 = sshll.u32 %s7816_s16, 4  ;;  %s84_s19 = sshll.u32 %s7817_s18, 4  ;;  %s75_s17 = int_to_ptr.vmem [resolvable:$true] %s74_s17  ;;  %s85_s19 = int_to_ptr.vmem [resolvable:$true] %s84_s19 }
  0x4a   :  { %s7756_s21 = scalar_lea.hbm %s8439_s6, 16 }
  0x4b   :  { %p7757_p4 = scmp.ne.s32.totalorder %s8439_s6, %s7756_s21  ;;  %p7760_p5 = scmp.lt.u32.totalorder %s7756_s21, %s8439_s6 }
  0x4d   :  { %p7762_p6 = pnand %p7760_p5, %p7757_p4 }
  0x4f   :  { %7765 = shalt.err (!%p7762_p6)
}
  0x50   :  { %s7766_s3 = scalar_lea.vmem %s75_s17, 16  ;;  %s7770_s24 = scalar_lea.vmem %s75_s17, 32 }
  0x51   :  { %p7767_p7 = scmp.ne.s32.totalorder %s75_s17, %s7766_s3  ;;  %p7771_p8 = scmp.lt.s32.totalorder %s75_s17, %s75_s17 }
  0x52   :  { %p7772_p9 = scmp.lt.s32.totalorder %s7770_s24, %s7766_s3 }
  0x54   :  { %p7773_p10 = por %p7772_p9, %p7771_p8 }
  0x56   :  { %p7774_p11 = pnand %p7773_p10, %p7767_p7 }
  0x58   :  { %7777 = shalt.err (!%p7774_p11)
}
  0x59   :  { %77 = dma.hbm_to_vmem [thread:$0]  %s8439_s6, 16, %s75_s17, [#allocation9]  }
  0x5a   :  { %s7778_s29 = scalar_lea.hbm %s8440_s7, 16 }
  0x5b   :  { %p7779_p12 = scmp.ne.s32.totalorder %s8440_s7, %s7778_s29  ;;  %p7782_p13 = scmp.lt.u32.totalorder %s7778_s29, %s8440_s7 }
  0x5d   :  { %p7784_p0 = pnand %p7782_p13, %p7779_p12 }
  0x5f   :  { %7787 = shalt.err (!%p7784_p0)
}
  0x60   :  { %s7788_s1 = scalar_lea.vmem %s85_s19, 16  ;;  %s7792_s12 = scalar_lea.vmem %s85_s19, 32 }
  0x61   :  { %p7789_p1 = scmp.ne.s32.totalorder %s85_s19, %s7788_s1  ;;  %p7793_p2 = scmp.lt.s32.totalorder %s85_s19, %s85_s19 }
  0x62   :  { %p7794_p3 = scmp.lt.s32.totalorder %s7792_s12, %s7788_s1 }
  0x64   :  { %p7795_p4 = por %p7794_p3, %p7793_p2 }
  0x66   :  { %p7796_p5 = pnand %p7795_p4, %p7789_p1 }
  0x68   :  { %7799 = shalt.err (!%p7796_p5)
}
  0x69   :  { %87 = dma.hbm_to_vmem [thread:$0]  %s8440_s7, 16, %s85_s19, [#allocation12]  }
  0x6a   :  { %7800 = dma.done.wait [#allocation4], 9216  }
  0x6b   :  { %7801 = vsyncadd [#allocation4], 4294958080 }
  0x6c   :  { %7802 = dma.done.wait [#allocation6], 73920  }
  0x6d   :  { %7803 = vsyncadd [#allocation6], 4294893376 }
  0x6e   :  { %7804 = dma.done.wait [#allocation9], 112  }
  0x6f   :  { %7805 = vsyncadd [#allocation9], 4294967184 }
  0x70   :  { %7806 = dma.done.wait [#allocation12], 16  }
  0x71   :  { %7807 = vsyncadd [#allocation12], 4294967280  ;;  %v7818_v1 = vmov 0   ;;  %v6648_v2 = vld [vmem:[#allocation3 + $0x4] ss:$48 sps:$4 sm:$0xff]   ;;  %vm607_vm0 = vcmask 785408  }
  0x72   :  { %643 = vmatprep.mubr.bf16.mxu1 %v7818_v1  ;;  %725 = vmatprep.mubr.bf16.mxu0 %v7818_v1  ;;  %v6650_v3 = vld [vmem:[#allocation3 + $0x14] ss:$48 sps:$4 sm:$0xff]   ;;  %v6652_v4 = vld [vmem:[#allocation3] ss:$48 sps:$4 sm:$0xff]   ;;  %v6686_v27 = vld [vmem:[#allocation3 + $0xc] ss:$48 sps:$4 sm:$0xff]  }
  0x73   :  { %611 = vmatprep.subr.bf16.mxu1 %v6648_v2  ;;  %v6653_v5 = vld [vmem:[#allocation3 + $0x10] ss:$48 sps:$4 sm:$0xff]   ;;  %693 = vmatprep.subr.bf16.mxu0 %v6650_v3  ;;  %v6654_v6 = vld [vmem:[#allocation3 + $0x64] ss:$48 sps:$4 sm:$0xff]   ;;  %v6684_v30 = vld [vmem:[#allocation3 + $0x8] ss:$48 sps:$4 sm:$0xff]  }
  0x74   :  { %612 = vmatpush1.bf16.msra.mxu1 %v6652_v4  ;;  %694 = vmatpush1.bf16.msra.mxu0 %v6653_v5  ;;  %v6656_v7 = vld [vmem:[#allocation3 + $0x74] ss:$48 sps:$4 sm:$0xff]   ;;  %v6658_v8 = vld [vmem:[#allocation3 + $0x60] ss:$48 sps:$4 sm:$0xff]   ;;  %v6692_v32 = vld [vmem:[#allocation3 + $0x6c] ss:$48 sps:$4 sm:$0xff]  }
  0x75   :  { %613 = vmatprep.subr.bf16.mxu1 %v6654_v6  ;;  %v6659_v9 = vld [vmem:[#allocation3 + $0x70] ss:$48 sps:$4 sm:$0xff]   ;;  %695 = vmatprep.subr.bf16.mxu0 %v6656_v7  ;;  %v6660_v10 = vld [vmem:[#allocation3 + $0xc4] ss:$48 sps:$4 sm:$0xff]   ;;  %v6690_v34 = vld [vmem:[#allocation3 + $0x68] ss:$48 sps:$4 sm:$0xff]  }
  0x76   :  { %v6662_v11 = vld [vmem:[#allocation3 + $0xd4] ss:$48 sps:$4 sm:$0xff]   ;;  %v6664_v12 = vld [vmem:[#allocation3 + $0xc0] ss:$48 sps:$4 sm:$0xff]   ;;  %v6698_v36 = vld [vmem:[#allocation3 + $0xcc] ss:$48 sps:$4 sm:$0xff]  }
  0x77   :  { %v6665_v13 = vld [vmem:[#allocation3 + $0xd0] ss:$48 sps:$4 sm:$0xff]   ;;  %v6666_v14 = vld [vmem:[#allocation3 + $0x124] ss:$48 sps:$4 sm:$0xff]   ;;  %v6696_v38 = vld [vmem:[#allocation3 + $0xc8] ss:$48 sps:$4 sm:$0xff]  }
  0x78   :  { %614 = vmatpush1.bf16.msra.mxu1 %v6658_v8  ;;  %696 = vmatpush1.bf16.msra.mxu0 %v6659_v9  ;;  %v6668_v15 = vld [vmem:[#allocation3 + $0x134] ss:$48 sps:$4 sm:$0xff]   ;;  %v6670_v16 = vld [vmem:[#allocation3 + $0x120] ss:$48 sps:$4 sm:$0xff]   ;;  %v6704_v40 = vld [vmem:[#allocation3 + $0x12c] ss:$48 sps:$4 sm:$0xff]  }
  0x79   :  { %615 = vmatprep.subr.bf16.mxu1 %v6660_v10  ;;  %697 = vmatprep.subr.bf16.mxu0 %v6662_v11  ;;  %v6671_v17 = vld [vmem:[#allocation3 + $0x130] ss:$48 sps:$4 sm:$0xff]   ;;  %v6672_v18 = vld [vmem:[#allocation3 + $0x184] ss:$48 sps:$4 sm:$0xff]   ;;  %v6702_v42 = vld [vmem:[#allocation3 + $0x128] ss:$48 sps:$4 sm:$0xff]  }
  0x7a   :  { %v6674_v19 = vld [vmem:[#allocation3 + $0x194] ss:$48 sps:$4 sm:$0xff]   ;;  %v6676_v20 = vld [vmem:[#allocation3 + $0x180] ss:$48 sps:$4 sm:$0xff]   ;;  %v6710_v44 = vld [vmem:[#allocation3 + $0x18c] ss:$48 sps:$4 sm:$0xff]  }
  0x7b   :  { %v6677_v21 = vld [vmem:[#allocation3 + $0x190] ss:$48 sps:$4 sm:$0xff]   ;;  %v6678_v22 = vld [vmem:[#allocation3 + $0x1e4] ss:$48 sps:$4 sm:$0xff]   ;;  %v6708_v46 = vld [vmem:[#allocation3 + $0x188] ss:$48 sps:$4 sm:$0xff]  }
  0x7c   :  { %616 = vmatpush1.bf16.msra.mxu1 %v6664_v12  ;;  %698 = vmatpush1.bf16.msra.mxu0 %v6665_v13  ;;  %v6680_v23 = vld [vmem:[#allocation3 + $0x1f4] ss:$48 sps:$4 sm:$0xff]   ;;  %v6682_v24 = vld [vmem:[#allocation3 + $0x1e0] ss:$48 sps:$4 sm:$0xff]   ;;  %v6716_v48 = vld [vmem:[#allocation3 + $0x1ec] ss:$48 sps:$4 sm:$0xff]  }
  0x7d   :  { %617 = vmatprep.subr.bf16.mxu1 %v6666_v14  ;;  %699 = vmatprep.subr.bf16.mxu0 %v6668_v15  ;;  %v6683_v25 = vld [vmem:[#allocation3 + $0x1f0] ss:$48 sps:$4 sm:$0xff]   ;;  %v6689_v28 = vld [vmem:[#allocation3 + $0x24] ss:$48 sps:$4 sm:$0xff]   ;;  %v6714_v50 = vld [vmem:[#allocation3 + $0x1e8] ss:$48 sps:$4 sm:$0xff]  }
  0x7e   :  { %v109_v26 = vld [vmem:[%s8433_s0] sm:$0xff]  ;;  %v6720_v53 = vld [vmem:[#allocation3 + $0x18] ss:$48 sps:$4 sm:$0xff]   ;;  %s7819_s0 = smov 112   ;;  %s7820_s20 = smov 96   ;;  %vm5733_vm3 = vcmask 523264  }
  0x7f   :  { %v7951_v29 = vpack.c.bf16 %v109_v26, %v109_v26  ;;  %v6687_v31 = vld [vmem:[#allocation3 + $0x20] ss:$48 sps:$4 sm:$0xff]   ;;  %v6695_v33 = vld [vmem:[#allocation3 + $0x84] ss:$48 sps:$4 sm:$0xff]   ;;  %v6722_v52 = vld [vmem:[#allocation3 + $0x1c] ss:$48 sps:$4 sm:$0xff]  }
  0x80   :  { %618 = vmatpush1.bf16.msra.mxu1 %v6670_v16  ;;  %700 = vmatpush1.bf16.msra.mxu0 %v6671_v17  ;;  %v6693_v35 = vld [vmem:[#allocation3 + $0x80] ss:$48 sps:$4 sm:$0xff]   ;;  %v6701_v37 = vld [vmem:[#allocation3 + $0xe4] ss:$48 sps:$4 sm:$0xff]   ;;  %v6725_v54 = vld [vmem:[#allocation3 + $0x7c] ss:$48 sps:$4 sm:$0xff]  }
  0x81   :  { %619 = vmatprep.subr.bf16.mxu1 %v6672_v18  ;;  %701 = vmatprep.subr.bf16.mxu0 %v6674_v19  ;;  %v6699_v39 = vld [vmem:[#allocation3 + $0xe0] ss:$48 sps:$4 sm:$0xff]   ;;  %v6707_v41 = vld [vmem:[#allocation3 + $0x144] ss:$48 sps:$4 sm:$0xff]   ;;  %v6723_v55 = vld [vmem:[#allocation3 + $0x78] ss:$48 sps:$4 sm:$0xff]  }
  0x82   :  { %v6705_v43 = vld [vmem:[#allocation3 + $0x140] ss:$48 sps:$4 sm:$0xff]   ;;  %v6713_v45 = vld [vmem:[#allocation3 + $0x1a4] ss:$48 sps:$4 sm:$0xff]   ;;  %v6728_v56 = vld [vmem:[#allocation3 + $0xdc] ss:$48 sps:$4 sm:$0xff]  }
  0x83   :  { %v6711_v47 = vld [vmem:[#allocation3 + $0x1a0] ss:$48 sps:$4 sm:$0xff]   ;;  %v6719_v49 = vld [vmem:[#allocation3 + $0x204] ss:$48 sps:$4 sm:$0xff]   ;;  %v6726_v57 = vld [vmem:[#allocation3 + $0xd8] ss:$48 sps:$4 sm:$0xff]  }
  0x84   :  { %620 = vmatpush1.bf16.msra.mxu1 %v6676_v20  ;;  %702 = vmatpush1.bf16.msra.mxu0 %v6677_v21  ;;  %v6717_v51 = vld [vmem:[#allocation3 + $0x200] ss:$48 sps:$4 sm:$0xff]   ;;  %v6731_v58 = vld [vmem:[#allocation3 + $0x13c] ss:$48 sps:$4 sm:$0xff]   ;;  %v6729_v59 = vld [vmem:[#allocation3 + $0x138] ss:$48 sps:$4 sm:$0xff]  }
  0x85   :  { %621 = vmatprep.subr.bf16.mxu1 %v6678_v22  ;;  %703 = vmatprep.subr.bf16.mxu0 %v6680_v23  ;;  %v6734_v60 = vld [vmem:[#allocation3 + $0x19c] ss:$48 sps:$4 sm:$0xff]   ;;  %v6732_v61 = vld [vmem:[#allocation3 + $0x198] ss:$48 sps:$4 sm:$0xff]   ;;  %vm5745_vm4 = vcmask 7168  }
  0x86   :  { %v6737_v62 = vld [vmem:[#allocation3 + $0x1fc] ss:$48 sps:$4 sm:$0xff]   ;;  %v6735_v63 = vld [vmem:[#allocation3 + $0x1f8] ss:$48 sps:$4 sm:$0xff]  }
  0x87   :  { %v6740_v0 = vld [vmem:[#allocation3 + $0x2c] ss:$48 sps:$4 sm:$0xff]   ;;  %v6738_v2 = vld [vmem:[#allocation3 + $0x28] ss:$48 sps:$4 sm:$0xff]  }
  0x88   :  { %622 = vmatpush1.bf16.msra.mxu1 %v6682_v24  ;;  %704 = vmatpush1.bf16.msra.mxu0 %v6683_v25  ;;  %v6743_v3 = vld [vmem:[#allocation3 + $0x8c] ss:$48 sps:$4 sm:$0xff]   ;;  %v6741_v4 = vld [vmem:[#allocation3 + $0x88] ss:$48 sps:$4 sm:$0xff]  }
  0x89   :  { %652 = vmatprep.subr.bf16.mxu1 %v6686_v27  ;;  %775 = vmatprep.subr.bf16.mxu0 %v6689_v28  ;;  %v6746_v5 = vld [vmem:[#allocation3 + $0xec] ss:$48 sps:$4 sm:$0xff]   ;;  %v6744_v6 = vld [vmem:[#allocation3 + $0xe8] ss:$48 sps:$4 sm:$0xff]  }
  0x8a   :  { %v6749_v7 = vld [vmem:[#allocation3 + $0x14c] ss:$48 sps:$4 sm:$0xff]   ;;  %v6747_v8 = vld [vmem:[#allocation3 + $0x148] ss:$48 sps:$4 sm:$0xff]  }
  0x8b   :  { %5827 = vmatmul.mubr.msk.bf16.vlgmr.msra.gmra.mrb[0].mxu1 %vm607_vm0, %v7951_v29  ;;  %5829 = vmatmul.mubr.msk.bf16.vlgmr.msra.gmra.mrb[0].mxu0 %vm607_vm0, %v7951_v29  ;;  %v6752_v9 = vld [vmem:[#allocation3 + $0x1ac] ss:$48 sps:$4 sm:$0xff]   ;;  %v6750_v10 = vld [vmem:[#allocation3 + $0x1a8] ss:$48 sps:$4 sm:$0xff]  }
  0x8c   :  { %653 = vmatpush1.bf16.msra.mxu1 %v6684_v30  ;;  %776 = vmatpush1.bf16.msra.mxu0 %v6687_v31  ;;  %v6755_v11 = vld [vmem:[#allocation3 + $0x20c] ss:$48 sps:$4 sm:$0xff]   ;;  %v6753_v12 = vld [vmem:[#allocation3 + $0x208] ss:$48 sps:$4 sm:$0xff]  }
  0x8d   :  { %654 = vmatprep.subr.bf16.mxu1 %v6692_v32  ;;  %777 = vmatprep.subr.bf16.mxu0 %v6695_v33  ;;  %v6758_v13 = vld [vmem:[#allocation7 + $0x604] ss:$24 sps:$4 sm:$0xff]   ;;  %v6759_v14 = vld [vmem:[#allocation7] ss:$24 sps:$4 sm:$0xff]   ;;  %v6764_v16 = vld [vmem:[#allocation7 + $0x634] ss:$24 sps:$4 sm:$0xff]  }
  0x8e   :  { %684 = vmatprep.mubr.bf16.mxu1 %v7818_v1  ;;  %807 = vmatprep.mubr.bf16.mxu0 %v7818_v1  ;;  %v6761_v15 = vld [vmem:[#allocation7 + $0x4] ss:$24 sps:$4 sm:$0xff]   ;;  %v6767_v17 = vld [vmem:[#allocation7 + $0x34] ss:$24 sps:$4 sm:$0xff]   ;;  %v6762_v18 = vld [vmem:[#allocation7 + $0x630] ss:$24 sps:$4 sm:$0xff]  }
  0x8f   :  { %v6765_v19 = vld [vmem:[#allocation7 + $0x30] ss:$24 sps:$4 sm:$0xff]   ;;  %v6770_v20 = vld [vmem:[#allocation7 + $0x664] ss:$24 sps:$4 sm:$0xff]   ;;  %v6768_v22 = vld [vmem:[#allocation7 + $0x660] ss:$24 sps:$4 sm:$0xff]  }
  0x90   :  { %655 = vmatpush1.bf16.msra.mxu1 %v6690_v34  ;;  %778 = vmatpush1.bf16.msra.mxu0 %v6693_v35  ;;  %v6773_v21 = vld [vmem:[#allocation7 + $0x64] ss:$24 sps:$4 sm:$0xff]   ;;  %v6771_v23 = vld [vmem:[#allocation7 + $0x60] ss:$24 sps:$4 sm:$0xff]   ;;  %v6776_v24 = vld [vmem:[#allocation7 + $0x694] ss:$24 sps:$4 sm:$0xff]  }
  0x91   :  { %656 = vmatprep.subr.bf16.mxu1 %v6698_v36  ;;  %779 = vmatprep.subr.bf16.mxu0 %v6701_v37  ;;  %v6779_v25 = vld [vmem:[#allocation7 + $0x94] ss:$24 sps:$4 sm:$0xff]   ;;  %v6774_v26 = vld [vmem:[#allocation7 + $0x690] ss:$24 sps:$4 sm:$0xff]   ;;  %v6782_v28 = vld [vmem:[#allocation7 + $0x6c4] ss:$24 sps:$4 sm:$0xff]  }
  0x92   :  { %v6777_v27 = vld [vmem:[#allocation7 + $0x90] ss:$24 sps:$4 sm:$0xff]   ;;  %v6780_v30 = vld [vmem:[#allocation7 + $0x6c0] ss:$24 sps:$4 sm:$0xff]   ;;  %v6788_v32 = vld [vmem:[#allocation7 + $0x6f4] ss:$24 sps:$4 sm:$0xff]  }
  0x93   :  { %v6783_v31 = vld [vmem:[#allocation7 + $0xc0] ss:$24 sps:$4 sm:$0xff]   ;;  %v6791_v33 = vld [vmem:[#allocation7 + $0xf4] ss:$24 sps:$4 sm:$0xff]   ;;  %v6786_v34 = vld [vmem:[#allocation7 + $0x6f0] ss:$24 sps:$4 sm:$0xff]  }
  0x94   :  { %657 = vmatpush1.bf16.msra.mxu1 %v6696_v38  ;;  %780 = vmatpush1.bf16.msra.mxu0 %v6699_v39  ;;  %v6789_v35 = vld [vmem:[#allocation7 + $0xf0] ss:$24 sps:$4 sm:$0xff]   ;;  %v6794_v36 = vld [vmem:[#allocation7 + $0x724] ss:$24 sps:$4 sm:$0xff]   ;;  %v6792_v37 = vld [vmem:[#allocation7 + $0x720] ss:$24 sps:$4 sm:$0xff]  }
  0x95   :  { %658 = vmatprep.subr.bf16.mxu1 %v6704_v40  ;;  %781 = vmatprep.subr.bf16.mxu0 %v6707_v41 }
  0x98   :  { %659 = vmatpush1.bf16.msra.mxu1 %v6702_v42  ;;  %782 = vmatpush1.bf16.msra.mxu0 %v6705_v43  ;;  %v187_v42 = vlaneseq }
  0x99   :  { %660 = vmatprep.subr.bf16.mxu1 %v6710_v44  ;;  %783 = vmatprep.subr.bf16.mxu0 %v6713_v45 }
  0x9c   :  { %661 = vmatpush1.bf16.msra.mxu1 %v6708_v46  ;;  %784 = vmatpush1.bf16.msra.mxu0 %v6711_v47  ;;  %v7976_v47 = vshrl.u32 %v187_v42, 7 }
  0x9d   :  { %662 = vmatprep.subr.bf16.mxu1 %v6716_v48  ;;  %785 = vmatprep.subr.bf16.mxu0 %v6719_v49 }
  0x9e   :  { %v7979_v48 = vsub.s32 0, %v7976_v47  ;;  %v7982_v49 = vsub.s32 1, %v7976_v47 }
  0xa0   :  { %663 = vmatpush1.bf16.msra.mxu1 %v6714_v50  ;;  %786 = vmatpush1.bf16.msra.mxu0 %v6717_v51  ;;  %v205_v50 = vsub.s32 4, %v7976_v47  ;;  %v7986_v51 = vsub.s32 2, %v7976_v47 }
  0xa1   :  { %734 = vmatprep.subr.bf16.mxu1 %v6722_v52  ;;  %4514 = vmatprep.subr.bf16.mxu0 %v6758_v13  ;;  %v7988_v52 = vld [vmem:[#allocation5 + $0x8] sm:$0xf] }
  0xa3   :  { %5828 = vmatmul.mubr.msk.bf16.vlgmr.msra.gmra.mrb[4].mxu1 %vm607_vm0, %v7951_v29  ;;  %5831 = vmatmul.mubr.msk.bf16.vlgmr.msra.gmra.mrb[4].mxu0 %vm607_vm0, %v7951_v29 }
  0xa4   :  { %735 = vmatpush1.bf16.msra.mxu1 %v6720_v53  ;;  %766 = vmatprep.mubr.bf16.mxu1 %v7818_v1  ;;  %v7990_v53 = vld [vmem:[#allocation5] sm:$0xff] }
  0xa5   :  { %736 = vmatprep.subr.bf16.mxu1 %v6725_v54  ;;  %v6797_v54 = vld [vmem:[#allocation7 + $0x124] ss:$24 sps:$4 sm:$0xff]  }
  0xa8   :  { %737 = vmatpush1.bf16.msra.mxu1 %v6723_v55  ;;  %v6800_v55 = vld [vmem:[#allocation7 + $0x754] ss:$24 sps:$4 sm:$0xff]  }
  0xa9   :  { %738 = vmatprep.subr.bf16.mxu1 %v6728_v56  ;;  %v6795_v56 = vld [vmem:[#allocation7 + $0x120] ss:$24 sps:$4 sm:$0xff]  }
  0xac   :  { %739 = vmatpush1.bf16.msra.mxu1 %v6726_v57  ;;  %v6798_v57 = vld [vmem:[#allocation7 + $0x750] ss:$24 sps:$4 sm:$0xff]  }
  0xad   :  { %740 = vmatprep.subr.bf16.mxu1 %v6731_v58  ;;  %v222_v58 = vrot.slane %v7988_v52, %v7979_v48 }
  0xb0   :  { %741 = vmatpush1.bf16.msra.mxu1 %v6729_v59  ;;  %v6803_v59 = vld [vmem:[#allocation7 + $0x154] ss:$24 sps:$4 sm:$0xff]  }
  0xb1   :  { %742 = vmatprep.subr.bf16.mxu1 %v6734_v60  ;;  %v6806_v60 = vld [vmem:[#allocation7 + $0x784] ss:$24 sps:$4 sm:$0xff]  }
  0xb4   :  { %743 = vmatpush1.bf16.msra.mxu1 %v6732_v61  ;;  %v194_v61 = vrot.slane %v7990_v53, %v7982_v49 }
  0xb5   :  { %744 = vmatprep.subr.bf16.mxu1 %v6737_v62  ;;  %v198_v62 = vrot.slane %v7990_v53, %v7986_v51 }
  0xb8   :  { %745 = vmatpush1.bf16.msra.mxu1 %v6735_v63  ;;  %v226_v63 = vrot.slane %v7988_v52, %v7982_v49 }
  0xb9   :  { %816 = vmatprep.subr.bf16.mxu1 %v6740_v0  ;;  %v6801_v0 = vld [vmem:[#allocation7 + $0x150] ss:$24 sps:$4 sm:$0xff]  }
  0xbb   :  { %5830 = vmatmul.mubr.msk.bf16.vlgmr.msra.gmra.mrb[8].mxu1 %vm607_vm0, %v7951_v29 }
  0xbc   :  { %817 = vmatpush1.bf16.msra.mxu1 %v6738_v2  ;;  %848 = vmatprep.mubr.bf16.mxu1 %v7818_v1  ;;  %v6756_v1 = vld [vmem:[#allocation7 + $0x600] ss:$24 sps:$4 sm:$0xff]  }
  0xbd   :  { %818 = vmatprep.subr.bf16.mxu1 %v6743_v3  ;;  %4515 = vmatpush1.bf16.msra.mxu0 %v6756_v1  ;;  %v6804_v2 = vld [vmem:[#allocation7 + $0x780] ss:$24 sps:$4 sm:$0xff]  }
  0xbe   :  { %4516 = vmatprep.subr.bf16.mxu0 %v6764_v16  ;;  %v209_v16 = vsub.s32 5, %v7976_v47 }
  0xc0   :  { %819 = vmatpush1.bf16.msra.mxu1 %v6741_v4 }
  0xc1   :  { %820 = vmatprep.subr.bf16.mxu1 %v6746_v5  ;;  %4517 = vmatpush1.bf16.msra.mxu0 %v6762_v18  ;;  %v8013_v18 = vsub.s32 3, %v7976_v47 }
  0xc2   :  { %4518 = vmatprep.subr.bf16.mxu0 %v6770_v20 }
  0xc4   :  { %821 = vmatpush1.bf16.msra.mxu1 %v6744_v6 }
  0xc5   :  { %822 = vmatprep.subr.bf16.mxu1 %v6749_v7  ;;  %4519 = vmatpush1.bf16.msra.mxu0 %v6768_v22  ;;  %v213_v22 = vsub.s32 6, %v7976_v47 }
  0xc6   :  { %4520 = vmatprep.subr.bf16.mxu0 %v6776_v24  ;;  %v6815_v24 = vld [vmem:[#allocation7 + $0x1b4] ss:$24 sps:$4 sm:$0xff]  }
  0xc8   :  { %823 = vmatpush1.bf16.msra.mxu1 %v6747_v8  ;;  %v6807_v8 = vld [vmem:[#allocation7 + $0x180] ss:$24 sps:$4 sm:$0xff]  }
  0xc9   :  { %824 = vmatprep.subr.bf16.mxu1 %v6752_v9  ;;  %4521 = vmatpush1.bf16.msra.mxu0 %v6774_v26  ;;  %v6809_v9 = vld [vmem:[#allocation7 + $0x184] ss:$24 sps:$4 sm:$0xff]  }
  0xca   :  { %4522 = vmatprep.subr.bf16.mxu0 %v6782_v28  ;;  %v6818_v26 = vld [vmem:[#allocation7 + $0x7e4] ss:$24 sps:$4 sm:$0xff]  }
  0xcc   :  { %825 = vmatpush1.bf16.msra.mxu1 %v6750_v10 }
  0xcd   :  { %826 = vmatprep.subr.bf16.mxu1 %v6755_v11  ;;  %4523 = vmatpush1.bf16.msra.mxu0 %v6780_v30 }
  0xce   :  { %4524 = vmatprep.subr.bf16.mxu0 %v6788_v32  ;;  %v6824_v32 = vld [vmem:[#allocation7 + $0x814] ss:$24 sps:$4 sm:$0xff]  }
  0xd0   :  { %827 = vmatpush1.bf16.msra.mxu1 %v6753_v12 }
  0xd1   :  { %4432 = vmatprep.subr.bf16.mxu1 %v6761_v15  ;;  %4525 = vmatpush1.bf16.msra.mxu0 %v6786_v34  ;;  %v6812_v15 = vld [vmem:[#allocation7 + $0x7b4] ss:$24 sps:$4 sm:$0xff]   ;;  %v6822_v34 = vld [vmem:[#allocation7 + $0x810] ss:$24 sps:$4 sm:$0xff]  }
  0xd2   :  { %4526 = vmatprep.subr.bf16.mxu0 %v6794_v36  ;;  %v6830_v36 = vld [vmem:[#allocation7 + $0x844] ss:$24 sps:$4 sm:$0xff]  }
  0xd3   :  { %5832 = vmatmul.mubr.msk.bf16.vlgmr.msra.gmra.mrb[12].mxu1 %vm607_vm0, %v7951_v29  ;;  %v6785_v29 = vld [vmem:[#allocation7 + $0xc4] ss:$24 sps:$4 sm:$0xff]  }
  0xd4   :  { %4433 = vmatpush1.bf16.msra.mxu1 %v6759_v14  ;;  %v6810_v14 = vld [vmem:[#allocation7 + $0x7b0] ss:$24 sps:$4 sm:$0xff]  }
  0xd5   :  { %4434 = vmatprep.subr.bf16.mxu1 %v6767_v17  ;;  %4527 = vmatpush1.bf16.msra.mxu0 %v6792_v37 }
  0xd6   :  { %4528 = vmatprep.subr.bf16.mxu0 %v6800_v55  ;;  %v6834_v55 = vld [vmem:[#allocation7 + $0x870] ss:$24 sps:$4 sm:$0xff]  }
  0xd8   :  { %4435 = vmatpush1.bf16.msra.mxu1 %v6765_v19 }
  0xd9   :  { %4436 = vmatprep.subr.bf16.mxu1 %v6773_v21  ;;  %4529 = vmatpush1.bf16.msra.mxu0 %v6798_v57  ;;  %v214_v57 = vrot.slane %v7990_v53, %v213_v22 }
  0xda   :  { %4530 = vmatprep.subr.bf16.mxu0 %v6806_v60  ;;  %v206_v60 = vrot.slane %v7990_v53, %v205_v50 }
  0xdc   :  { %4437 = vmatpush1.bf16.msra.mxu1 %v6771_v23  ;;  %v6813_v23 = vld [vmem:[#allocation7 + $0x1b0] ss:$24 sps:$4 sm:$0xff]  }
  0xdd   :  { %4438 = vmatprep.subr.bf16.mxu1 %v6779_v25  ;;  %4531 = vmatpush1.bf16.msra.mxu0 %v6804_v2  ;;  %v6816_v25 = vld [vmem:[#allocation7 + $0x7e0] ss:$24 sps:$4 sm:$0xff]  }
  0xde   :  { %4532 = vmatprep.subr.bf16.mxu0 %v6812_v15  ;;  %v6843_v15 = vld [vmem:[#allocation7 + $0x2a0] ss:$24 sps:$4 sm:$0xff]  }
  0xe0   :  { %4439 = vmatpush1.bf16.msra.mxu1 %v6777_v27  ;;  %v6821_v27 = vld [vmem:[#allocation7 + $0x1e4] ss:$24 sps:$4 sm:$0xff]  }
  0xe1   :  { %4440 = vmatprep.subr.bf16.mxu1 %v6785_v29  ;;  %4533 = vmatpush1.bf16.msra.mxu0 %v6810_v14 }
  0xe2   :  { %4534 = vmatprep.subr.bf16.mxu0 %v6818_v26  ;;  %v6854_v26 = vld [vmem:[#allocation7 + $0x904] ss:$24 sps:$4 sm:$0xff]  }
  0xe4   :  { %4441 = vmatpush1.bf16.msra.mxu1 %v6783_v31  ;;  %v217_v31 = vsub.s32 7, %v7976_v47 }
  0xe5   :  { %4442 = vmatprep.subr.bf16.mxu1 %v6791_v33  ;;  %v6819_v33 = vld [vmem:[#allocation7 + $0x1e0] ss:$24 sps:$4 sm:$0xff]   ;;  %4535 = vmatpush1.bf16.msra.mxu0 %v6816_v25  ;;  %v6851_v25 = vld [vmem:[#allocation7 + $0x2d4] ss:$24 sps:$4 sm:$0xff]  }
  0xe6   :  { %4536 = vmatprep.subr.bf16.mxu0 %v6824_v32  ;;  %v6857_v32 = vld [vmem:[#allocation7 + $0x304] ss:$24 sps:$4 sm:$0xff]  }
  0xe8   :  { %4443 = vmatpush1.bf16.msra.mxu1 %v6789_v35  ;;  %v6827_v35 = vld [vmem:[#allocation7 + $0x214] ss:$24 sps:$4 sm:$0xff]  }
  0xe9   :  { %4444 = vmatprep.subr.bf16.mxu1 %v6797_v54  ;;  %4537 = vmatpush1.bf16.msra.mxu0 %v6822_v34  ;;  %v6831_v54 = vld [vmem:[#allocation7 + $0x240] ss:$24 sps:$4 sm:$0xff]  }
  0xea   :  { %4538 = vmatprep.subr.bf16.mxu0 %v6830_v36 }
  0xec   :  { %4445 = vmatpush1.bf16.msra.mxu1 %v6795_v56 }
  0xed   :  { %4446 = vmatprep.subr.bf16.mxu1 %v6803_v59  ;;  %v6842_v59 = vld [vmem:[#allocation7 + $0x8a4] ss:$24 sps:$4 sm:$0xff]  }
  0xf0   :  { %4447 = vmatpush1.bf16.msra.mxu1 %v6801_v0  ;;  %v6840_v0 = vld [vmem:[#allocation7 + $0x8a0] ss:$24 sps:$4 sm:$0xff]  }
  0xf1   :  { %4448 = vmatprep.subr.bf16.mxu1 %v6809_v9 }
  0xf4   :  { %4449 = vmatpush1.bf16.msra.mxu1 %v6807_v8  ;;  %v6848_v8 = vld [vmem:[#allocation7 + $0x8d4] ss:$24 sps:$4 sm:$0xff]  }
  0xf5   :  { %4450 = vmatprep.subr.bf16.mxu1 %v6815_v24 }
  0xf8   :  { %4451 = vmatpush1.bf16.msra.mxu1 %v6813_v23 }
  0xf9   :  { %4452 = vmatprep.subr.bf16.mxu1 %v6821_v27 }
  0xfc   :  { %4453 = vmatpush1.bf16.msra.mxu1 %v6819_v33 }
  0xfd   :  { %4454 = vmatprep.subr.bf16.mxu1 %v6827_v35  ;;  %v230_v35 = vrot.slane %v7988_v52, %v7986_v51 }
 0x15e   :  { %v7969_v38 = vpop.f32.mrb[0].mxu1  ;;  %v7971_v39 = vpop.f32.mrb[0].mxu0 }
 0x15f   :  { %v647_v40 = vpop.f32.mrb[1].mxu1  ;;  %v7973_v41 = vpop.f32.mrb[1].mxu0  ;;  %v8047_v9 = vadd.f32 %v7971_v39, %v206_v60 }
 0x160   :  { %v649_v43 = vpop.f32.mrb[2].mxu1  ;;  %v731_v44 = vpop.f32.mrb[2].mxu0  ;;  %v8004_v10 = vadd.f32 %v647_v40, %v194_v61  ;;  %v6825_v40 = vld [vmem:[#allocation7 + $0x210] ss:$24 sps:$4 sm:$0xff]   ;;  %v202_v61 = vrot.slane %v7990_v53, %v8013_v18 }
 0x161   :  { %v650_v45 = vpop.f32.mrb[3].mxu1  ;;  %v732_v46 = vpop.f32.mrb[3].mxu0  ;;  %v6828_v43 = vld [vmem:[#allocation7 + $0x840] ss:$24 sps:$4 sm:$0xff]   ;;  %4455 = vmatpush1.bf16.msra.mxu1 %v6825_v40  ;;  %v210_v44 = vrot.slane %v7990_v53, %v209_v16  ;;  %v861_v27 = vmax.f32 %v8047_v9, 0.0 }
 0x162   :  { %v858_v28 = vmax.f32 %v8004_v10, 0.0  ;;  %4539 = vmatpush1.bf16.msra.mxu0 %v6828_v43  ;;  %v6833_v45 = vld [vmem:[#allocation7 + $0x244] ss:$24 sps:$4 sm:$0xff]   ;;  %v6836_v46 = vld [vmem:[#allocation7 + $0x874] ss:$24 sps:$4 sm:$0xff]  }
 0x163   :  { %4456 = vmatprep.subr.bf16.mxu1 %v6833_v45  ;;  %4540 = vmatprep.subr.bf16.mxu0 %v6836_v46  ;;  %v8034_v56 = vadd.f32 %v7973_v41, %v210_v44  ;;  %v6858_v10 = vld [vmem:[#allocation7 + $0x930] ss:$24 sps:$4 sm:$0xff]  }
 0x165   :  { %4457 = vmatpush1.bf16.msra.mxu1 %v6831_v54  ;;  %v862_v2 = vmax.f32 %v8034_v56, 0.0 }
 0x166   :  { %4541 = vmatpush1.bf16.msra.mxu0 %v6834_v55 }
 0x167   :  { %4542 = vmatprep.subr.bf16.mxu0 %v6842_v59 }
 0x16a   :  { %4543 = vmatpush1.bf16.msra.mxu0 %v6840_v0 }
 0x16b   :  { %4544 = vmatprep.subr.bf16.mxu0 %v6848_v8 }
 0x176   :  { %v686_v3 = vpop.f32.mrb[4].mxu1  ;;  %v809_v4 = vpop.f32.mrb[4].mxu0 }
 0x177   :  { %v8000_v5 = vadd.f32 %v809_v4, %v222_v58  ;;  %v8002_v6 = vpop.f32.mrb[5].mxu1  ;;  %v811_v7 = vpop.f32.mrb[5].mxu0  ;;  %v8006_v11 = vadd.f32 %v686_v3, %v198_v62  ;;  %v6839_v58 = vld [vmem:[#allocation7 + $0x274] ss:$24 sps:$4 sm:$0xff]   ;;  %v218_v62 = vrot.slane %v7990_v53, %v217_v31 }
 0x178   :  { %v8008_v12 = vadd.f32 %v811_v7, %v226_v63  ;;  %v690_v1 = vpop.f32.mrb[6].mxu1  ;;  %v813_v13 = vpop.f32.mrb[6].mxu0  ;;  %v6837_v63 = vld [vmem:[#allocation7 + $0x270] ss:$24 sps:$4 sm:$0xff]   ;;  %4458 = vmatprep.subr.bf16.mxu1 %v6839_v58  ;;  %v6845_v7 = vld [vmem:[#allocation7 + $0x2a4] ss:$24 sps:$4 sm:$0xff]  }
 0x179   :  { %v865_v17 = vmax.f32 %v8000_v5, 0.0  ;;  %v691_v19 = vpop.f32.mrb[7].mxu1  ;;  %v814_v20 = vpop.f32.mrb[7].mxu0  ;;  %v859_v29 = vmax.f32 %v8006_v11, 0.0  ;;  %4459 = vmatpush1.bf16.msra.mxu1 %v6837_v63  ;;  %v8050_v1 = vadd.f32 %v8002_v6, %v202_v61  ;;  %v6849_v6 = vld [vmem:[#allocation7 + $0x2d0] ss:$24 sps:$4 sm:$0xff]  }
 0x17a   :  { %v866_v21 = vmax.f32 %v8008_v12, 0.0  ;;  %v6846_v19 = vld [vmem:[#allocation7 + $0x8d0] ss:$24 sps:$4 sm:$0xff]   ;;  %v190_v20 = vrot.slane %v7990_v53, %v7979_v48  ;;  %4460 = vmatprep.subr.bf16.mxu1 %v6845_v7 }
 0x17b   :  { %v6618_v37 = vpack.i.bf16 %v859_v29, %v858_v28  ;;  %4545 = vmatpush1.bf16.msra.mxu0 %v6846_v19  ;;  %v6882_v12 = vld [vmem:[#allocation7 + $0x9f0] ss:$24 sps:$4 sm:$0xff]  }
 0x17c   :  { %v6613_v30 = vpack.i.bf16 %v866_v21, %v865_v17  ;;  %v646_v53 = vadd.f32 %v7969_v38, %v190_v20  ;;  %4555 = vmatprep.subr.bf16.mxu0 %v6854_v26  ;;  %v234_v38 = vrot.slane %v7988_v52, %v8013_v18 }
 0x17d   :  { %4461 = vmatpush1.bf16.msra.mxu1 %v6843_v15 }
 0x17e   :  { %6614 = vrot.lane.b32.xlu1 %v6613_v30, %s7819_s0  ;;  %v860_v30 = vmax.f32 %v8050_v1, 0.0  ;;  %4462 = vmatprep.subr.bf16.mxu1 %v6851_v25  ;;  %v857_v33 = vmax.f32 %v646_v53, 0.0  ;;  %v6863_v1 = vld [vmem:[#allocation7 + $0x334] ss:$24 sps:$4 sm:$0xff]  }
 0x180   :  { %v6623_v34 = vpack.i.bf16 %v857_v33, %v860_v30 }
 0x181   :  { %4463 = vmatpush1.bf16.msra.mxu1 %v6849_v6 }
 0x182   :  { %6619 = vrot.lane.b32.xlu1 %v6618_v37, %s7819_s0  ;;  %4473 = vmatprep.subr.bf16.mxu1 %v6857_v32 }
 0x18e   :  { %v768_v41 = vpop.f32.mrb[8].mxu1 }
 0x18f   :  { %v8044_v3 = vadd.f32 %v768_v41, %v214_v57  ;;  %v770_v4 = vpop.f32.mrb[9].mxu1  ;;  %v8086_v57 = vand.u32 127, %v187_v42 }
 0x190   :  { %v8052_v13 = vadd.f32 %v770_v4, %v218_v62  ;;  %v772_v14 = vpop.f32.mrb[10].mxu1 }
 0x191   :  { %v863_v22 = vmax.f32 %v8044_v3, 0.0  ;;  %v773_v23 = vpop.f32.mrb[11].mxu1  ;;  %vm895_vm1 = vcmp.lt.s32.totalorder %v8086_v57, 112  ;;  %vm5188_vm2 = vcmp.lt.s32.totalorder %v8086_v57, 96 }
 0x192   :  { %v864_v24 = vmax.f32 %v8052_v13, 0.0 }
 0x193   :  { %v6603_v39 = vpack.i.bf16 %v863_v22, %v862_v2 }
 0x194   :  { %v6608_v31 = vpack.i.bf16 %v861_v27, %v864_v24 }
 0x195   :  { %6604 = vrot.lane.b32.xlu0 %v6603_v39, %s7819_s0 }
 0x199   :  { %6609 = vrot.lane.b32.xlu0 %v6608_v31, %s7819_s0 }
 0x19d   :  { %6624 = vrot.lane.b32.xlu0 %v6623_v34, %s7819_s0  ;;  %v6852_v34 = vld [vmem:[#allocation7 + $0x900] ss:$24 sps:$4 sm:$0xff]  }
 0x1a6   :  { %v850_v36 = vpop.f32.mrb[12].mxu1 }
 0x1a7   :  { %v8072_v37 = vadd.f32 %v850_v36, %v230_v35  ;;  %v852_v40 = vpop.f32.mrb[13].mxu1 }
 0x1a8   :  { %v8074_v43 = vadd.f32 %v852_v40, %v234_v38  ;;  %v854_v44 = vpop.f32.mrb[14].mxu1  ;;  %v6860_v40 = vld [vmem:[#allocation7 + $0x934] ss:$24 sps:$4 sm:$0xff]  }
 0x1a9   :  { %v867_v45 = vmax.f32 %v8072_v37, 0.0  ;;  %v855_v46 = vpop.f32.mrb[15].mxu1  ;;  %v6890_v37 = vld [vmem:[#allocation7 + $0xa24] ss:$24 sps:$4 sm:$0xff]  }
 0x1aa   :  { %v868_v54 = vmax.f32 %v8074_v43, 0.0  ;;  %v6887_v43 = vld [vmem:[#allocation7 + $0x3f4] ss:$24 sps:$4 sm:$0xff]  }
 0x1ac   :  { %v6628_v55 = vpack.i.bf16 %v868_v54, %v867_v45 }
 0x1ae   :  { %6629 = vrot.lane.b32.xlu1 %v6628_v55, %s7819_s0 }
 0x1f0   :  { %v8083_v52 = vpop.permute.xlu1 %6614 }
 0x1f1   :  { %v6617_v58 = vunpack.i.h.bf16 %v8083_v52  ;;  %v6616_v59 = vunpack.i.l.bf16 %v8083_v52 }
 0x1f3   :  { %v898_v0 = vsel %vm895_vm1, %v6616_v59, %v6617_v58 }
 0x1f4   :  { %v6620_v61 = vpop.permute.xlu1 %6619  ;;  %v8105_v15 = vmax.f32 %v865_v17, %v898_v0  ;;  %v6872_v0 = vld [vmem:[#allocation7 + $0x994] ss:$24 sps:$4 sm:$0xff]  }
 0x1f5   :  { %v6622_v41 = vunpack.i.h.bf16 %v6620_v61  ;;  %v6621_v4 = vunpack.i.l.bf16 %v6620_v61 }
 0x1f7   :  { %v905_v25 = vsel %vm895_vm1, %v6621_v4, %v6622_v41 }
 0x1f8   :  { %v909_v38 = vmax.f32 %v858_v28, %v905_v25 }
 0x207   :  { %v6605_v60 = vpop.permute.xlu0 %6604 }
 0x208   :  { %v6607_v62 = vunpack.i.h.bf16 %v6605_v60  ;;  %v6606_v63 = vunpack.i.l.bf16 %v6605_v60 }
 0x20a   :  { %v901_v42 = vsel %vm895_vm1, %v6606_v63, %v6607_v62 }
 0x20b   :  { %v6610_v3 = vpop.permute.xlu0 %6609  ;;  %v913_v23 = vmax.f32 %v862_v2, %v901_v42  ;;  %v6867_v42 = vld [vmem:[#allocation7 + $0x360] ss:$24 sps:$4 sm:$0xff]  }
 0x20c   :  { %v6612_v7 = vunpack.i.h.bf16 %v6610_v3  ;;  %v6611_v8 = vunpack.i.l.bf16 %v6610_v3  ;;  %v6870_v3 = vld [vmem:[#allocation7 + $0x990] ss:$24 sps:$4 sm:$0xff]  }
 0x20e   :  { %v899_v9 = vsel %vm895_vm1, %v6611_v8, %v6616_v59  ;;  %v900_v13 = vsel %vm895_vm1, %v6607_v62, %v6611_v8  ;;  %v902_v14 = vsel %vm895_vm1, %v6612_v7, %v6606_v63  ;;  %v6864_v62 = vld [vmem:[#allocation7 + $0x960] ss:$24 sps:$4 sm:$0xff]   ;;  %v6861_v63 = vld [vmem:[#allocation7 + $0x330] ss:$24 sps:$4 sm:$0xff]  }
 0x20f   :  { %v912_v19 = vmax.f32 %v861_v27, %v902_v14  ;;  %v8107_v20 = vpop.permute.xlu0 %6624  ;;  %v914_v39 = vmax.f32 %v863_v22, %v900_v13  ;;  %v915_v6 = vmax.f32 %v864_v24, %v899_v9  ;;  %v6875_v13 = vld [vmem:[#allocation7 + $0x394] ss:$24 sps:$4 sm:$0xff]  }
 0x210   :  { %v6627_v26 = vunpack.i.h.bf16 %v8107_v20  ;;  %v6626_v53 = vunpack.i.l.bf16 %v8107_v20 }
 0x211   :  { %v925_v31 = vmax.f32 %v913_v23, %v914_v39  ;;  %v924_v32 = vmax.f32 %v912_v19, %v913_v23  ;;  %v927_v5 = vmax.f32 %v915_v6, %v8105_v15  ;;  %v8116_v17 = vmax.f32 %v914_v39, %v915_v6  ;;  %v6876_v23 = vld [vmem:[#allocation7 + $0x9c0] ss:$24 sps:$4 sm:$0xff]   ;;  %v6873_v39 = vld [vmem:[#allocation7 + $0x390] ss:$24 sps:$4 sm:$0xff]   ;;  %v6884_v6 = vld [vmem:[#allocation7 + $0x9f4] ss:$24 sps:$4 sm:$0xff]  }
 0x212   :  { %v906_v27 = vsel %vm895_vm1, %v6627_v26, %v6621_v4  ;;  %v903_v56 = vsel %vm895_vm1, %v6626_v53, %v6612_v7  ;;  %v904_v2 = vsel %vm895_vm1, %v6622_v41, %v6626_v53  ;;  %v6869_v41 = vld [vmem:[#allocation7 + $0x364] ss:$24 sps:$4 sm:$0xff]  }
 0x213   :  { %v8124_v22 = vmax.f32 %v857_v33, %v906_v27  ;;  %v8126_v24 = vpack.c.bf16 %v925_v31, %v925_v31  ;;  %v8128_v35 = vpack.c.bf16 %v924_v32, %v924_v32  ;;  %v910_v36 = vmax.f32 %v859_v29, %v904_v2  ;;  %v6855_v29 = vld [vmem:[#allocation7 + $0x300] ss:$24 sps:$4 sm:$0xff]   ;;  %v6878_v7 = vld [vmem:[#allocation7 + $0x9c4] ss:$24 sps:$4 sm:$0xff]  }
 0x214   :  { %v911_v44 = vmax.f32 %v860_v30, %v903_v56  ;;  %v8137_v46 = vpack.c.bf16 %v927_v5, %v927_v5  ;;  %v6866_v30 = vld [vmem:[#allocation7 + $0x964] ss:$24 sps:$4 sm:$0xff]   ;;  %v6894_v56 = vld [vmem:[#allocation7 + $0xa50] ss:$24 sps:$4 sm:$0xff]   ;;  %v6891_v2 = vld [vmem:[#allocation7 + $0x420] ss:$24 sps:$4 sm:$0xff]  }
 0x215   :  { %4546 = vmatprep.mubr.bf16.mxu0 %v8126_v24  ;;  %v920_v33 = vmax.f32 %v8124_v22, %v909_v38  ;;  %v921_v55 = vmax.f32 %v909_v38, %v910_v36  ;;  %v6893_v27 = vld [vmem:[#allocation7 + $0x424] ss:$24 sps:$4 sm:$0xff]   ;;  %v6900_v38 = vld [vmem:[#allocation7 + $0xa80] ss:$24 sps:$4 sm:$0xff]  }
 0x216   :  { %4547 = vmatmul.mubr.bf16.vlgmr.msra.gmra.mrb[8].mxu0 %v8128_v35  ;;  %v923_v59 = vmax.f32 %v911_v44, %v912_v19  ;;  %v8141_v60 = vmax.f32 %v910_v36, %v911_v44  ;;  %v6897_v36 = vld [vmem:[#allocation7 + $0x450] ss:$24 sps:$4 sm:$0xff]   ;;  %v6905_v44 = vld [vmem:[#allocation7 + $0x484] ss:$24 sps:$4 sm:$0xff]  }
 0x217   :  { %4556 = vmatpush1.bf16.msra.mxu0 %v6852_v34  ;;  %4587 = vmatprep.mubr.bf16.mxu0 %v8137_v46  ;;  %v8144_v11 = vpack.c.bf16 %v920_v33, %v920_v33  ;;  %v8146_v28 = vpack.c.bf16 %v921_v55, %v921_v55  ;;  %v6899_v34 = vld [vmem:[#allocation7 + $0x454] ss:$24 sps:$4 sm:$0xff]   ;;  %v6906_v33 = vld [vmem:[#allocation7 + $0xab0] ss:$24 sps:$4 sm:$0xff]   ;;  %v6903_v55 = vld [vmem:[#allocation7 + $0x480] ss:$24 sps:$4 sm:$0xff]  }
 0x218   :  { %4557 = vmatprep.subr.bf16.mxu0 %v6860_v40  ;;  %v8149_v61 = vpack.c.bf16 %v923_v59, %v923_v59  ;;  %v6908_v40 = vld [vmem:[#allocation7 + $0xab4] ss:$24 sps:$4 sm:$0xff]   ;;  %v6914_v59 = vld [vmem:[#allocation7 + $0xae4] ss:$24 sps:$4 sm:$0xff]  }
 0x219   :  { %4464 = vmatprep.mubr.bf16.mxu1 %v8146_v28 }
 0x21a   :  { %4465 = vmatmul.mubr.bf16.vlgmr.msra.gmra.mrb[16].mxu1 %v8144_v11 }
 0x21b   :  { %4558 = vmatpush1.bf16.msra.mxu0 %v6858_v10  ;;  %4474 = vmatpush1.bf16.msra.mxu1 %v6855_v29  ;;  %v6911_v10 = vld [vmem:[#allocation7 + $0x4b4] ss:$24 sps:$4 sm:$0xff]   ;;  %v6912_v29 = vld [vmem:[#allocation7 + $0xae0] ss:$24 sps:$4 sm:$0xff]  }
 0x21c   :  { %4505 = vmatprep.mubr.bf16.mxu1 %v8149_v61  ;;  %4475 = vmatprep.subr.bf16.mxu1 %v6863_v1  ;;  %v6909_v1 = vld [vmem:[#allocation7 + $0x4b0] ss:$24 sps:$4 sm:$0xff]  }
 0x21d   :  { %4559 = vmatprep.subr.bf16.mxu0 %v6866_v30  ;;  %v6920_v30 = vld [vmem:[#allocation7 + $0xb14] ss:$24 sps:$4 sm:$0xff]  }
 0x21f   :  { %4560 = vmatpush1.bf16.msra.mxu0 %v6864_v62  ;;  %4476 = vmatpush1.bf16.msra.mxu1 %v6861_v63  ;;  %v6917_v62 = vld [vmem:[#allocation7 + $0x4e4] ss:$24 sps:$4 sm:$0xff]   ;;  %v6918_v63 = vld [vmem:[#allocation7 + $0xb10] ss:$24 sps:$4 sm:$0xff]  }
 0x220   :  { %v6630_v4 = vpop.permute.xlu1 %6629  ;;  %4561 = vmatprep.subr.bf16.mxu0 %v6872_v0  ;;  %4477 = vmatprep.subr.bf16.mxu1 %v6869_v41  ;;  %v6915_v0 = vld [vmem:[#allocation7 + $0x4e0] ss:$24 sps:$4 sm:$0xff]   ;;  %v6926_v41 = vld [vmem:[#allocation7 + $0xb44] ss:$24 sps:$4 sm:$0xff]  }
 0x221   :  { %v6632_v8 = vunpack.i.h.bf16 %v6630_v4  ;;  %v6631_v9 = vunpack.i.l.bf16 %v6630_v4  ;;  %v6924_v4 = vld [vmem:[#allocation7 + $0xb40] ss:$24 sps:$4 sm:$0xff]  }
 0x223   :  { %v896_v14 = vsel %vm895_vm1, %v6631_v9, %v6632_v8  ;;  %v897_v19 = vsel %vm895_vm1, %v6617_v58, %v6631_v9  ;;  %v907_v20 = vsel %vm895_vm1, %v6632_v8, %v6627_v26  ;;  %4562 = vmatpush1.bf16.msra.mxu0 %v6870_v3  ;;  %4478 = vmatpush1.bf16.msra.mxu1 %v6867_v42  ;;  %v6881_v58 = vld [vmem:[#allocation7 + $0x3c4] ss:$24 sps:$4 sm:$0xff]   ;;  %v6923_v3 = vld [vmem:[#allocation7 + $0x514] ss:$24 sps:$4 sm:$0xff]   ;;  %v6921_v42 = vld [vmem:[#allocation7 + $0x510] ss:$24 sps:$4 sm:$0xff]  }
 0x224   :  { %4563 = vmatprep.subr.bf16.mxu0 %v6878_v7  ;;  %v917_v25 = vmax.f32 %v866_v21, %v897_v19  ;;  %v918_v53 = vmax.f32 %v867_v45, %v896_v14  ;;  %v919_v52 = vmax.f32 %v868_v54, %v907_v20  ;;  %4479 = vmatprep.subr.bf16.mxu1 %v6875_v13  ;;  %v6879_v21 = vld [vmem:[#allocation7 + $0x3c0] ss:$24 sps:$4 sm:$0xff]   ;;  %v6885_v54 = vld [vmem:[#allocation7 + $0x3f0] ss:$24 sps:$4 sm:$0xff]   ;;  %v6932_v7 = vld [vmem:[#allocation7 + $0xb74] ss:$24 sps:$4 sm:$0xff]  }
 0x225   :  { %v6888_v45 = vld [vmem:[#allocation7 + $0xa20] ss:$24 sps:$4 sm:$0xff]   ;;  %v6929_v8 = vld [vmem:[#allocation7 + $0x544] ss:$24 sps:$4 sm:$0xff]   ;;  %v6930_v9 = vld [vmem:[#allocation7 + $0xb70] ss:$24 sps:$4 sm:$0xff]  }
 0x226   :  { %v8167_v31 = vmax.f32 %v917_v25, %v918_v53  ;;  %v8170_v26 = vmax.f32 %v8105_v15, %v917_v25  ;;  %v8173_v32 = vmax.f32 %v919_v52, %v8124_v22  ;;  %v8175_v5 = vmax.f32 %v918_v53, %v919_v52  ;;  %v6896_v15 = vld [vmem:[#allocation7 + $0xa54] ss:$24 sps:$4 sm:$0xff]   ;;  %v6902_v22 = vld [vmem:[#allocation7 + $0xa84] ss:$24 sps:$4 sm:$0xff]   ;;  %v6927_v13 = vld [vmem:[#allocation7 + $0x540] ss:$24 sps:$4 sm:$0xff]  }
 0x227   :  { %4564 = vmatpush1.bf16.msra.mxu0 %v6876_v23  ;;  %4480 = vmatpush1.bf16.msra.mxu1 %v6873_v39  ;;  %v6938_v14 = vld [vmem:[#allocation7 + $0xba4] ss:$24 sps:$4 sm:$0xff]   ;;  %v6935_v19 = vld [vmem:[#allocation7 + $0x574] ss:$24 sps:$4 sm:$0xff]   ;;  %v6936_v20 = vld [vmem:[#allocation7 + $0xba0] ss:$24 sps:$4 sm:$0xff]  }
 0x228   :  { %4565 = vmatprep.subr.bf16.mxu0 %v6884_v6  ;;  %4481 = vmatprep.subr.bf16.mxu1 %v6881_v58  ;;  %v6933_v23 = vld [vmem:[#allocation7 + $0x570] ss:$24 sps:$4 sm:$0xff]   ;;  %v6944_v39 = vld [vmem:[#allocation7 + $0xbd4] ss:$24 sps:$4 sm:$0xff]   ;;  %v6941_v6 = vld [vmem:[#allocation7 + $0x5a4] ss:$24 sps:$4 sm:$0xff]  }
 0x229   :  { %v6942_v25 = vld [vmem:[#allocation7 + $0xbd0] ss:$24 sps:$4 sm:$0xff]   ;;  %v6939_v53 = vld [vmem:[#allocation7 + $0x5a0] ss:$24 sps:$4 sm:$0xff]   ;;  %v6950_v52 = vld [vmem:[#allocation7 + $0xc04] ss:$24 sps:$4 sm:$0xff]  }
 0x22a   :  { %v6947_v58 = vld [vmem:[#allocation7 + $0x5d4] ss:$24 sps:$4 sm:$0xff]  }
 0x22b   :  { %4566 = vmatpush1.bf16.msra.mxu0 %v6882_v12  ;;  %4482 = vmatpush1.bf16.msra.mxu1 %v6879_v21  ;;  %v6948_v12 = vld [vmem:[#allocation7 + $0xc00] ss:$24 sps:$4 sm:$0xff]   ;;  %v6945_v21 = vld [vmem:[#allocation7 + $0x5d0] ss:$24 sps:$4 sm:$0xff]  }
 0x22c   :  { %4567 = vmatprep.subr.bf16.mxu0 %v6890_v37  ;;  %4483 = vmatprep.subr.bf16.mxu1 %v6887_v43  ;;  %v8179_v37 = vpack.c.bf16 %v8116_v17, %v8116_v17  ;;  %v6953_v43 = vld [vmem:[#allocation7 + $0xc34] ss:$24 sps:$4 sm:$0xff]   ;;  %v8189_v17 = vpack.c.bf16 %v8141_v60, %v8141_v60  ;;  %v6966_v60 = vld [vmem:[#allocation7 + $0x68] ss:$24 sps:$4 sm:$0xff]  }
 0x22f   :  { %4568 = vmatpush1.bf16.msra.mxu0 %v6888_v45  ;;  %4484 = vmatpush1.bf16.msra.mxu1 %v6885_v54  ;;  %v8183_v45 = vpack.c.bf16 %v8167_v31, %v8167_v31  ;;  %v6956_v54 = vld [vmem:[#allocation7 + $0xc] ss:$24 sps:$4 sm:$0xff]   ;;  %v6957_v31 = vld [vmem:[#allocation7 + $0xc60] ss:$24 sps:$4 sm:$0xff]  }
 0x230   :  { %4569 = vmatprep.subr.bf16.mxu0 %v6896_v15  ;;  %4485 = vmatprep.subr.bf16.mxu1 %v6893_v27  ;;  %v6951_v15 = vld [vmem:[#allocation7 + $0xc30] ss:$24 sps:$4 sm:$0xff]  }
 0x231   :  { %v6954_v27 = vld [vmem:[#allocation7 + $0x8] ss:$24 sps:$4 sm:$0xff]  }
 0x233   :  { %4570 = vmatpush1.bf16.msra.mxu0 %v6894_v56  ;;  %4486 = vmatpush1.bf16.msra.mxu1 %v6891_v2  ;;  %v6959_v56 = vld [vmem:[#allocation7 + $0xc64] ss:$24 sps:$4 sm:$0xff]  }
 0x234   :  { %4571 = vmatprep.subr.bf16.mxu0 %v6902_v22  ;;  %4487 = vmatprep.subr.bf16.mxu1 %v6899_v34  ;;  %v6962_v2 = vld [vmem:[#allocation7 + $0x3c] ss:$24 sps:$4 sm:$0xff]   ;;  %v6960_v22 = vld [vmem:[#allocation7 + $0x38] ss:$24 sps:$4 sm:$0xff]  }
 0x235   :  { %v6965_v34 = vld [vmem:[#allocation7 + $0xc94] ss:$24 sps:$4 sm:$0xff]  }
 0x237   :  { %4572 = vmatpush1.bf16.msra.mxu0 %v6900_v38  ;;  %4488 = vmatpush1.bf16.msra.mxu1 %v6897_v36  ;;  %v6968_v38 = vld [vmem:[#allocation7 + $0x6c] ss:$24 sps:$4 sm:$0xff]   ;;  %v6963_v36 = vld [vmem:[#allocation7 + $0xc90] ss:$24 sps:$4 sm:$0xff]  }
 0x238   :  { %4573 = vmatprep.subr.bf16.mxu0 %v6908_v40  ;;  %4489 = vmatprep.subr.bf16.mxu1 %v6905_v44  ;;  %v6971_v40 = vld [vmem:[#allocation7 + $0xcc4] ss:$24 sps:$4 sm:$0xff]  }
 0x239   :  { %v6974_v44 = vld [vmem:[#allocation7 + $0x9c] ss:$24 sps:$4 sm:$0xff]  }
 0x23b   :  { %4574 = vmatpush1.bf16.msra.mxu0 %v6906_v33  ;;  %4490 = vmatpush1.bf16.msra.mxu1 %v6903_v55  ;;  %v6969_v33 = vld [vmem:[#allocation7 + $0xcc0] ss:$24 sps:$4 sm:$0xff]  }
 0x23c   :  { %4575 = vmatprep.subr.bf16.mxu0 %v6914_v59  ;;  %4491 = vmatprep.subr.bf16.mxu1 %v6911_v10  ;;  %v6972_v55 = vld [vmem:[#allocation7 + $0x98] ss:$24 sps:$4 sm:$0xff]   ;;  %v6977_v59 = vld [vmem:[#allocation7 + $0xcf4] ss:$24 sps:$4 sm:$0xff]  }
 0x23d   :  { %v6980_v10 = vld [vmem:[#allocation7 + $0xcc] ss:$24 sps:$4 sm:$0xff]  }
 0x23f   :  { %4576 = vmatpush1.bf16.msra.mxu0 %v6912_v29  ;;  %4492 = vmatpush1.bf16.msra.mxu1 %v6909_v1  ;;  %v6975_v29 = vld [vmem:[#allocation7 + $0xcf0] ss:$24 sps:$4 sm:$0xff]  }
 0x240   :  { %4577 = vmatprep.subr.bf16.mxu0 %v6920_v30  ;;  %4493 = vmatprep.subr.bf16.mxu1 %v6917_v62  ;;  %v6978_v1 = vld [vmem:[#allocation7 + $0xc8] ss:$24 sps:$4 sm:$0xff]   ;;  %v6983_v30 = vld [vmem:[#allocation7 + $0xd24] ss:$24 sps:$4 sm:$0xff]  }
 0x241   :  { %v6986_v62 = vld [vmem:[#allocation7 + $0xfc] ss:$24 sps:$4 sm:$0xff]  }
 0x243   :  { %4578 = vmatpush1.bf16.msra.mxu0 %v6918_v63  ;;  %4494 = vmatpush1.bf16.msra.mxu1 %v6915_v0  ;;  %v6981_v63 = vld [vmem:[#allocation7 + $0xd20] ss:$24 sps:$4 sm:$0xff]  }
 0x244   :  { %4579 = vmatprep.subr.bf16.mxu0 %v6926_v41  ;;  %4495 = vmatprep.subr.bf16.mxu1 %v6923_v3  ;;  %v6984_v0 = vld [vmem:[#allocation7 + $0xf8] ss:$24 sps:$4 sm:$0xff]   ;;  %v6989_v41 = vld [vmem:[#allocation7 + $0xd54] ss:$24 sps:$4 sm:$0xff]  }
 0x245   :  { %v6992_v3 = vld [vmem:[#allocation7 + $0x12c] ss:$24 sps:$4 sm:$0xff]  }
 0x247   :  { %4580 = vmatpush1.bf16.msra.mxu0 %v6924_v4  ;;  %4496 = vmatpush1.bf16.msra.mxu1 %v6921_v42  ;;  %v6987_v4 = vld [vmem:[#allocation7 + $0xd50] ss:$24 sps:$4 sm:$0xff]  }
 0x248   :  { %4581 = vmatprep.subr.bf16.mxu0 %v6932_v7  ;;  %4497 = vmatprep.subr.bf16.mxu1 %v6929_v8  ;;  %v6990_v42 = vld [vmem:[#allocation7 + $0x128] ss:$24 sps:$4 sm:$0xff]   ;;  %v6995_v7 = vld [vmem:[#allocation7 + $0xd84] ss:$24 sps:$4 sm:$0xff]  }
 0x249   :  { %v6998_v8 = vld [vmem:[#allocation7 + $0x15c] ss:$24 sps:$4 sm:$0xff]  }
 0x24b   :  { %4582 = vmatpush1.bf16.msra.mxu0 %v6930_v9  ;;  %4498 = vmatpush1.bf16.msra.mxu1 %v6927_v13  ;;  %v6993_v9 = vld [vmem:[#allocation7 + $0xd80] ss:$24 sps:$4 sm:$0xff]  }
 0x24c   :  { %4583 = vmatprep.subr.bf16.mxu0 %v6938_v14  ;;  %4499 = vmatprep.subr.bf16.mxu1 %v6935_v19  ;;  %v6996_v13 = vld [vmem:[#allocation7 + $0x158] ss:$24 sps:$4 sm:$0xff]   ;;  %v7001_v14 = vld [vmem:[#allocation7 + $0xdb4] ss:$24 sps:$4 sm:$0xff]  }
 0x24d   :  { %v7004_v19 = vld [vmem:[#allocation7 + $0x18c] ss:$24 sps:$4 sm:$0xff]  }
 0x24f   :  { %4584 = vmatpush1.bf16.msra.mxu0 %v6936_v20  ;;  %4500 = vmatpush1.bf16.msra.mxu1 %v6933_v23  ;;  %v6999_v20 = vld [vmem:[#allocation7 + $0xdb0] ss:$24 sps:$4 sm:$0xff]  }
 0x250   :  { %4585 = vmatprep.subr.bf16.mxu0 %v6944_v39  ;;  %4501 = vmatprep.subr.bf16.mxu1 %v6941_v6  ;;  %v7002_v23 = vld [vmem:[#allocation7 + $0x188] ss:$24 sps:$4 sm:$0xff]   ;;  %v7007_v39 = vld [vmem:[#allocation7 + $0xde4] ss:$24 sps:$4 sm:$0xff]  }
 0x251   :  { %v7010_v6 = vld [vmem:[#allocation7 + $0x1bc] ss:$24 sps:$4 sm:$0xff]  }
 0x253   :  { %4586 = vmatpush1.bf16.msra.mxu0 %v6942_v25  ;;  %4502 = vmatpush1.bf16.msra.mxu1 %v6939_v53  ;;  %v7005_v25 = vld [vmem:[#allocation7 + $0xde0] ss:$24 sps:$4 sm:$0xff]  }
 0x254   :  { %4596 = vmatprep.subr.bf16.mxu0 %v6950_v52  ;;  %4503 = vmatprep.subr.bf16.mxu1 %v6947_v58  ;;  %v7008_v53 = vld [vmem:[#allocation7 + $0x1b8] ss:$24 sps:$4 sm:$0xff]   ;;  %v7013_v52 = vld [vmem:[#allocation7 + $0xe14] ss:$24 sps:$4 sm:$0xff]  }
 0x255   :  { %v7016_v58 = vld [vmem:[#allocation7 + $0x1ec] ss:$24 sps:$4 sm:$0xff]  }
 0x256   :  { %4588 = vmatmul.mubr.bf16.vlgmr.msra.gmra.mrb[8].mxu0 %v8179_v37 }
 0x257   :  { %4597 = vmatpush1.bf16.msra.mxu0 %v6948_v12  ;;  %4628 = vmatprep.mubr.bf16.mxu0 %v8183_v45  ;;  %v7011_v12 = vld [vmem:[#allocation7 + $0xe10] ss:$24 sps:$4 sm:$0xff]  }
 0x258   :  { %4504 = vmatpush1.bf16.msra.mxu1 %v6945_v21  ;;  %4598 = vmatprep.subr.bf16.mxu0 %v6953_v43  ;;  %v7014_v21 = vld [vmem:[#allocation7 + $0x1e8] ss:$24 sps:$4 sm:$0xff]   ;;  %v7019_v43 = vld [vmem:[#allocation7 + $0xe44] ss:$24 sps:$4 sm:$0xff]  }
 0x259   :  { %4678 = vmatprep.subr.bf16.mxu1 %v6956_v54  ;;  %v7022_v54 = vld [vmem:[#allocation7 + $0x21c] ss:$24 sps:$4 sm:$0xff]  }
 0x25b   :  { %4506 = vmatmul.mubr.bf16.vlgmr.msra.gmra.mrb[16].mxu1 %v8189_v17  ;;  %4599 = vmatpush1.bf16.msra.mxu0 %v6951_v15  ;;  %v7017_v15 = vld [vmem:[#allocation7 + $0xe40] ss:$24 sps:$4 sm:$0xff]  }
 0x25c   :  { %4679 = vmatpush1.bf16.msra.mxu1 %v6954_v27  ;;  %4710 = vmatprep.mubr.bf16.mxu1 %v8146_v28  ;;  %v7020_v27 = vld [vmem:[#allocation7 + $0x218] ss:$24 sps:$4 sm:$0xff]  }
 0x25d   :  { %4600 = vmatprep.subr.bf16.mxu0 %v6959_v56  ;;  %4680 = vmatprep.subr.bf16.mxu1 %v6962_v2  ;;  %v7025_v56 = vld [vmem:[#allocation7 + $0xe74] ss:$24 sps:$4 sm:$0xff]  }
 0x25e   :  { %v7028_v2 = vld [vmem:[#allocation7 + $0x24c] ss:$24 sps:$4 sm:$0xff]  }
 0x25f   :  { %4601 = vmatpush1.bf16.msra.mxu0 %v6957_v31  ;;  %v7023_v31 = vld [vmem:[#allocation7 + $0xe70] ss:$24 sps:$4 sm:$0xff]  }
 0x260   :  { %4681 = vmatpush1.bf16.msra.mxu1 %v6960_v22  ;;  %4602 = vmatprep.subr.bf16.mxu0 %v6965_v34  ;;  %v7026_v22 = vld [vmem:[#allocation7 + $0x248] ss:$24 sps:$4 sm:$0xff]   ;;  %v7031_v34 = vld [vmem:[#allocation7 + $0xea4] ss:$24 sps:$4 sm:$0xff]  }
 0x261   :  { %4682 = vmatprep.subr.bf16.mxu1 %v6968_v38  ;;  %v7034_v38 = vld [vmem:[#allocation7 + $0x27c] ss:$24 sps:$4 sm:$0xff]  }
 0x263   :  { %4603 = vmatpush1.bf16.msra.mxu0 %v6963_v36  ;;  %v7029_v36 = vld [vmem:[#allocation7 + $0xea0] ss:$24 sps:$4 sm:$0xff]  }
 0x264   :  { %4683 = vmatpush1.bf16.msra.mxu1 %v6966_v60  ;;  %4604 = vmatprep.subr.bf16.mxu0 %v6971_v40  ;;  %v7032_v60 = vld [vmem:[#allocation7 + $0x278] ss:$24 sps:$4 sm:$0xff]   ;;  %v7037_v40 = vld [vmem:[#allocation7 + $0xed4] ss:$24 sps:$4 sm:$0xff]  }
 0x265   :  { %4684 = vmatprep.subr.bf16.mxu1 %v6974_v44  ;;  %v7040_v44 = vld [vmem:[#allocation7 + $0x2ac] ss:$24 sps:$4 sm:$0xff]  }
 0x267   :  { %4605 = vmatpush1.bf16.msra.mxu0 %v6969_v33  ;;  %v7035_v33 = vld [vmem:[#allocation7 + $0xed0] ss:$24 sps:$4 sm:$0xff]  }
 0x268   :  { %4685 = vmatpush1.bf16.msra.mxu1 %v6972_v55  ;;  %4606 = vmatprep.subr.bf16.mxu0 %v6977_v59  ;;  %v7038_v55 = vld [vmem:[#allocation7 + $0x2a8] ss:$24 sps:$4 sm:$0xff]   ;;  %v7043_v59 = vld [vmem:[#allocation7 + $0xf04] ss:$24 sps:$4 sm:$0xff]  }
 0x269   :  { %4686 = vmatprep.subr.bf16.mxu1 %v6980_v10  ;;  %v7046_v10 = vld [vmem:[#allocation7 + $0x2dc] ss:$24 sps:$4 sm:$0xff]  }
 0x26b   :  { %4607 = vmatpush1.bf16.msra.mxu0 %v6975_v29  ;;  %v7041_v29 = vld [vmem:[#allocation7 + $0xf00] ss:$24 sps:$4 sm:$0xff]  }
 0x26c   :  { %4687 = vmatpush1.bf16.msra.mxu1 %v6978_v1  ;;  %4608 = vmatprep.subr.bf16.mxu0 %v6983_v30  ;;  %v8195_v1 = vpack.c.bf16 %v8170_v26, %v8170_v26  ;;  %v7044_v30 = vld [vmem:[#allocation7 + $0x2d8] ss:$24 sps:$4 sm:$0xff]   ;;  %v7055_v26 = vld [vmem:[#allocation7 + $0xf64] ss:$24 sps:$4 sm:$0xff]  }
 0x26d   :  { %4688 = vmatprep.subr.bf16.mxu1 %v6986_v62  ;;  %v7049_v62 = vld [vmem:[#allocation7 + $0xf34] ss:$24 sps:$4 sm:$0xff]  }
 0x26f   :  { %4609 = vmatpush1.bf16.msra.mxu0 %v6981_v63  ;;  %v8199_v63 = vpack.c.bf16 %v8173_v32, %v8173_v32  ;;  %v7056_v32 = vld [vmem:[#allocation7 + $0x338] ss:$24 sps:$4 sm:$0xff]  }
 0x270   :  { %4689 = vmatpush1.bf16.msra.mxu1 %v6984_v0  ;;  %4610 = vmatprep.subr.bf16.mxu0 %v6989_v41  ;;  %v7052_v0 = vld [vmem:[#allocation7 + $0x30c] ss:$24 sps:$4 sm:$0xff]   ;;  %v7047_v41 = vld [vmem:[#allocation7 + $0xf30] ss:$24 sps:$4 sm:$0xff]  }
 0x271   :  { %4690 = vmatprep.subr.bf16.mxu1 %v6992_v3  ;;  %v7050_v3 = vld [vmem:[#allocation7 + $0x308] ss:$24 sps:$4 sm:$0xff]  }
 0x273   :  { %4611 = vmatpush1.bf16.msra.mxu0 %v6987_v4  ;;  %v7058_v4 = vld [vmem:[#allocation7 + $0x33c] ss:$24 sps:$4 sm:$0xff]  }
 0x274   :  { %4691 = vmatpush1.bf16.msra.mxu1 %v6990_v42  ;;  %4612 = vmatprep.subr.bf16.mxu0 %v6995_v7  ;;  %v7053_v42 = vld [vmem:[#allocation7 + $0xf60] ss:$24 sps:$4 sm:$0xff]   ;;  %v7061_v7 = vld [vmem:[#allocation7 + $0xf94] ss:$24 sps:$4 sm:$0xff]  }
 0x275   :  { %4692 = vmatprep.subr.bf16.mxu1 %v6998_v8  ;;  %v7064_v8 = vld [vmem:[#allocation7 + $0x36c] ss:$24 sps:$4 sm:$0xff]  }
 0x277   :  { %4613 = vmatpush1.bf16.msra.mxu0 %v6993_v9  ;;  %v7059_v9 = vld [vmem:[#allocation7 + $0xf90] ss:$24 sps:$4 sm:$0xff]  }
 0x278   :  { %4693 = vmatpush1.bf16.msra.mxu1 %v6996_v13  ;;  %4614 = vmatprep.subr.bf16.mxu0 %v7001_v14  ;;  %v7062_v13 = vld [vmem:[#allocation7 + $0x368] ss:$24 sps:$4 sm:$0xff]   ;;  %v7067_v14 = vld [vmem:[#allocation7 + $0xfc4] ss:$24 sps:$4 sm:$0xff]  }
 0x279   :  { %4694 = vmatprep.subr.bf16.mxu1 %v7004_v19  ;;  %v7070_v19 = vld [vmem:[#allocation7 + $0x39c] ss:$24 sps:$4 sm:$0xff]  }
 0x27b   :  { %4615 = vmatpush1.bf16.msra.mxu0 %v6999_v20  ;;  %v7065_v20 = vld [vmem:[#allocation7 + $0xfc0] ss:$24 sps:$4 sm:$0xff]  }
 0x27c   :  { %4695 = vmatpush1.bf16.msra.mxu1 %v7002_v23  ;;  %4616 = vmatprep.subr.bf16.mxu0 %v7007_v39  ;;  %v7068_v23 = vld [vmem:[#allocation7 + $0x398] ss:$24 sps:$4 sm:$0xff]   ;;  %v7073_v39 = vld [vmem:[#allocation7 + $0xff4] ss:$24 sps:$4 sm:$0xff]  }
 0x27d   :  { %4696 = vmatprep.subr.bf16.mxu1 %v7010_v6  ;;  %v7076_v6 = vld [vmem:[#allocation7 + $0x3cc] ss:$24 sps:$4 sm:$0xff]  }
 0x27f   :  { %4617 = vmatpush1.bf16.msra.mxu0 %v7005_v25  ;;  %v7071_v25 = vld [vmem:[#allocation7 + $0xff0] ss:$24 sps:$4 sm:$0xff]  }
 0x280   :  { %4697 = vmatpush1.bf16.msra.mxu1 %v7008_v53  ;;  %4618 = vmatprep.subr.bf16.mxu0 %v7013_v52  ;;  %v7074_v53 = vld [vmem:[#allocation7 + $0x3c8] ss:$24 sps:$4 sm:$0xff]   ;;  %v7079_v52 = vld [vmem:[#allocation7 + $0x1024] ss:$24 sps:$4 sm:$0xff]  }
 0x281   :  { %4698 = vmatprep.subr.bf16.mxu1 %v7016_v58  ;;  %v7082_v58 = vld [vmem:[#allocation7 + $0x3fc] ss:$24 sps:$4 sm:$0xff]  }
 0x283   :  { %4619 = vmatpush1.bf16.msra.mxu0 %v7011_v12  ;;  %v7077_v12 = vld [vmem:[#allocation7 + $0x1020] ss:$24 sps:$4 sm:$0xff]  }
 0x284   :  { %4699 = vmatpush1.bf16.msra.mxu1 %v7014_v21  ;;  %4620 = vmatprep.subr.bf16.mxu0 %v7019_v43  ;;  %v7080_v21 = vld [vmem:[#allocation7 + $0x3f8] ss:$24 sps:$4 sm:$0xff]   ;;  %v7085_v43 = vld [vmem:[#allocation7 + $0x1054] ss:$24 sps:$4 sm:$0xff]  }
 0x285   :  { %4700 = vmatprep.subr.bf16.mxu1 %v7022_v54  ;;  %v7088_v54 = vld [vmem:[#allocation7 + $0x42c] ss:$24 sps:$4 sm:$0xff]  }
 0x287   :  { %4621 = vmatpush1.bf16.msra.mxu0 %v7017_v15  ;;  %v7083_v15 = vld [vmem:[#allocation7 + $0x1050] ss:$24 sps:$4 sm:$0xff]  }
 0x288   :  { %4701 = vmatpush1.bf16.msra.mxu1 %v7020_v27  ;;  %4622 = vmatprep.subr.bf16.mxu0 %v7025_v56  ;;  %v7086_v27 = vld [vmem:[#allocation7 + $0x428] ss:$24 sps:$4 sm:$0xff]   ;;  %v7091_v56 = vld [vmem:[#allocation7 + $0x1084] ss:$24 sps:$4 sm:$0xff]  }
 0x289   :  { %4702 = vmatprep.subr.bf16.mxu1 %v7028_v2  ;;  %v7094_v2 = vld [vmem:[#allocation7 + $0x45c] ss:$24 sps:$4 sm:$0xff]  }
 0x28b   :  { %4623 = vmatpush1.bf16.msra.mxu0 %v7023_v31  ;;  %v7089_v31 = vld [vmem:[#allocation7 + $0x1080] ss:$24 sps:$4 sm:$0xff]  }
 0x28c   :  { %4703 = vmatpush1.bf16.msra.mxu1 %v7026_v22  ;;  %4624 = vmatprep.subr.bf16.mxu0 %v7031_v34  ;;  %v7092_v22 = vld [vmem:[#allocation7 + $0x458] ss:$24 sps:$4 sm:$0xff]   ;;  %v7097_v34 = vld [vmem:[#allocation7 + $0x10b4] ss:$24 sps:$4 sm:$0xff]  }
 0x28d   :  { %4704 = vmatprep.subr.bf16.mxu1 %v7034_v38  ;;  %v7100_v38 = vld [vmem:[#allocation7 + $0x48c] ss:$24 sps:$4 sm:$0xff]  }
 0x28f   :  { %4625 = vmatpush1.bf16.msra.mxu0 %v7029_v36  ;;  %v7095_v36 = vld [vmem:[#allocation7 + $0x10b0] ss:$24 sps:$4 sm:$0xff]  }
 0x290   :  { %4705 = vmatpush1.bf16.msra.mxu1 %v7032_v60  ;;  %4626 = vmatprep.subr.bf16.mxu0 %v7037_v40  ;;  %v7098_v60 = vld [vmem:[#allocation7 + $0x488] ss:$24 sps:$4 sm:$0xff]   ;;  %v7103_v40 = vld [vmem:[#allocation7 + $0x10e4] ss:$24 sps:$4 sm:$0xff]  }
 0x291   :  { %4706 = vmatprep.subr.bf16.mxu1 %v7040_v44  ;;  %v7106_v44 = vld [vmem:[#allocation7 + $0x4bc] ss:$24 sps:$4 sm:$0xff]  }
 0x293   :  { %4627 = vmatpush1.bf16.msra.mxu0 %v7035_v33  ;;  %v7101_v33 = vld [vmem:[#allocation7 + $0x10e0] ss:$24 sps:$4 sm:$0xff]  }
 0x294   :  { %4707 = vmatpush1.bf16.msra.mxu1 %v7038_v55  ;;  %4637 = vmatprep.subr.bf16.mxu0 %v7043_v59  ;;  %v7104_v55 = vld [vmem:[#allocation7 + $0x4b8] ss:$24 sps:$4 sm:$0xff]   ;;  %v7109_v59 = vld [vmem:[#allocation7 + $0x1114] ss:$24 sps:$4 sm:$0xff]  }
 0x295   :  { %4708 = vmatprep.subr.bf16.mxu1 %v7046_v10  ;;  %v7112_v10 = vld [vmem:[#allocation7 + $0x4ec] ss:$24 sps:$4 sm:$0xff]  }
 0x296   :  { %4629 = vmatmul.mubr.bf16.vlgmr.msra.gmra.mrb[8].mxu0 %v8195_v1 }
 0x297   :  { %4638 = vmatpush1.bf16.msra.mxu0 %v7041_v29  ;;  %4669 = vmatprep.mubr.bf16.mxu0 %v8199_v63  ;;  %v7107_v29 = vld [vmem:[#allocation7 + $0x1110] ss:$24 sps:$4 sm:$0xff]  }
 0x298   :  { %4709 = vmatpush1.bf16.msra.mxu1 %v7044_v30  ;;  %4639 = vmatprep.subr.bf16.mxu0 %v7049_v62  ;;  %v7110_v30 = vld [vmem:[#allocation7 + $0x4e8] ss:$24 sps:$4 sm:$0xff]   ;;  %v7115_v62 = vld [vmem:[#allocation7 + $0x1144] ss:$24 sps:$4 sm:$0xff]  }
 0x299   :  { %4719 = vmatprep.subr.bf16.mxu1 %v7052_v0  ;;  %v7118_v0 = vld [vmem:[#allocation7 + $0x51c] ss:$24 sps:$4 sm:$0xff]  }
 0x29b   :  { %4711 = vmatmul.mubr.bf16.vlgmr.msra.gmra.mrb[20].mxu1 %v8144_v11  ;;  %4640 = vmatpush1.bf16.msra.mxu0 %v7047_v41  ;;  %v7113_v41 = vld [vmem:[#allocation7 + $0x1140] ss:$24 sps:$4 sm:$0xff]  }
 0x29c   :  { %4720 = vmatpush1.bf16.msra.mxu1 %v7050_v3  ;;  %4751 = vmatprep.mubr.bf16.mxu1 %v8149_v61  ;;  %v7116_v3 = vld [vmem:[#allocation7 + $0x518] ss:$24 sps:$4 sm:$0xff]  }
 0x29d   :  { %4641 = vmatprep.subr.bf16.mxu0 %v7055_v26  ;;  %4721 = vmatprep.subr.bf16.mxu1 %v7058_v4  ;;  %v7121_v26 = vld [vmem:[#allocation7 + $0x1174] ss:$24 sps:$4 sm:$0xff]  }
 0x29e   :  { %v7124_v4 = vld [vmem:[#allocation7 + $0x54c] ss:$24 sps:$4 sm:$0xff]  }
 0x29f   :  { %4642 = vmatpush1.bf16.msra.mxu0 %v7053_v42  ;;  %v7119_v42 = vld [vmem:[#allocation7 + $0x1170] ss:$24 sps:$4 sm:$0xff]  }
 0x2a0   :  { %4722 = vmatpush1.bf16.msra.mxu1 %v7056_v32  ;;  %4643 = vmatprep.subr.bf16.mxu0 %v7061_v7  ;;  %v7122_v32 = vld [vmem:[#allocation7 + $0x548] ss:$24 sps:$4 sm:$0xff]   ;;  %v7127_v7 = vld [vmem:[#allocation7 + $0x11a4] ss:$24 sps:$4 sm:$0xff]  }
 0x2a1   :  { %4723 = vmatprep.subr.bf16.mxu1 %v7064_v8  ;;  %v7130_v8 = vld [vmem:[#allocation7 + $0x57c] ss:$24 sps:$4 sm:$0xff]  }
 0x2a3   :  { %4644 = vmatpush1.bf16.msra.mxu0 %v7059_v9  ;;  %v7125_v9 = vld [vmem:[#allocation7 + $0x11a0] ss:$24 sps:$4 sm:$0xff]  }
 0x2a4   :  { %4724 = vmatpush1.bf16.msra.mxu1 %v7062_v13  ;;  %4645 = vmatprep.subr.bf16.mxu0 %v7067_v14  ;;  %v7128_v13 = vld [vmem:[#allocation7 + $0x578] ss:$24 sps:$4 sm:$0xff]   ;;  %v7133_v14 = vld [vmem:[#allocation7 + $0x11d4] ss:$24 sps:$4 sm:$0xff]  }
 0x2a5   :  { %4725 = vmatprep.subr.bf16.mxu1 %v7070_v19  ;;  %v7136_v19 = vld [vmem:[#allocation7 + $0x5ac] ss:$24 sps:$4 sm:$0xff]  }
 0x2a7   :  { %4646 = vmatpush1.bf16.msra.mxu0 %v7065_v20  ;;  %v7131_v20 = vld [vmem:[#allocation7 + $0x11d0] ss:$24 sps:$4 sm:$0xff]  }
 0x2a8   :  { %4726 = vmatpush1.bf16.msra.mxu1 %v7068_v23  ;;  %4647 = vmatprep.subr.bf16.mxu0 %v7073_v39  ;;  %v7134_v23 = vld [vmem:[#allocation7 + $0x5a8] ss:$24 sps:$4 sm:$0xff]   ;;  %v7142_v39 = vld [vmem:[#allocation7 + $0x14] ss:$24 sps:$4 sm:$0xff]  }
 0x2a9   :  { %4727 = vmatprep.subr.bf16.mxu1 %v7076_v6  ;;  %v7139_v6 = vld [vmem:[#allocation7 + $0x5dc] ss:$24 sps:$4 sm:$0xff]  }
 0x2ab   :  { %4648 = vmatpush1.bf16.msra.mxu0 %v7071_v25  ;;  %v7140_v25 = vld [vmem:[#allocation7 + $0x10] ss:$24 sps:$4 sm:$0xff]  }
 0x2ac   :  { %4728 = vmatpush1.bf16.msra.mxu1 %v7074_v53  ;;  %4649 = vmatprep.subr.bf16.mxu0 %v7079_v52  ;;  %v8207_v53 = vpack.c.bf16 %v8175_v5, %v8175_v5  ;;  %v7137_v52 = vld [vmem:[#allocation7 + $0x5d8] ss:$24 sps:$4 sm:$0xff]  }
 0x2ad   :  { %4729 = vmatprep.subr.bf16.mxu1 %v7082_v58  ;;  %v7148_v58 = vld [vmem:[#allocation7 + $0x44] ss:$24 sps:$4 sm:$0xff]   ;;  %v7152_v5 = vld [vmem:[#allocation7 + $0x70] ss:$24 sps:$4 sm:$0xff]  }
 0x2af   :  { %4650 = vmatpush1.bf16.msra.mxu0 %v7077_v12  ;;  %v7145_v12 = vld [vmem:[#allocation7 + $0x60c] ss:$24 sps:$4 sm:$0xff]  }
 0x2b0   :  { %4730 = vmatpush1.bf16.msra.mxu1 %v7080_v21  ;;  %4651 = vmatprep.subr.bf16.mxu0 %v7085_v43  ;;  %v7146_v21 = vld [vmem:[#allocation7 + $0x40] ss:$24 sps:$4 sm:$0xff]  }
 0x2b1   :  { %4731 = vmatprep.subr.bf16.mxu1 %v7088_v54  ;;  %v7143_v43 = vld [vmem:[#allocation7 + $0x608] ss:$24 sps:$4 sm:$0xff]   ;;  %v7151_v54 = vld [vmem:[#allocation7 + $0x63c] ss:$24 sps:$4 sm:$0xff]  }
 0x2b3   :  { %4652 = vmatpush1.bf16.msra.mxu0 %v7083_v15  ;;  %v7154_v15 = vld [vmem:[#allocation7 + $0x74] ss:$24 sps:$4 sm:$0xff]  }
 0x2b4   :  { %4732 = vmatpush1.bf16.msra.mxu1 %v7086_v27  ;;  %4653 = vmatprep.subr.bf16.mxu0 %v7091_v56  ;;  %v7149_v27 = vld [vmem:[#allocation7 + $0x638] ss:$24 sps:$4 sm:$0xff]   ;;  %v7160_v56 = vld [vmem:[#allocation7 + $0xa4] ss:$24 sps:$4 sm:$0xff]  }
 0x2b5   :  { %4733 = vmatprep.subr.bf16.mxu1 %v7094_v2  ;;  %v7157_v2 = vld [vmem:[#allocation7 + $0x66c] ss:$24 sps:$4 sm:$0xff]  }
 0x2b7   :  { %4654 = vmatpush1.bf16.msra.mxu0 %v7089_v31  ;;  %v7155_v31 = vld [vmem:[#allocation7 + $0x668] ss:$24 sps:$4 sm:$0xff]  }
 0x2b8   :  { %4734 = vmatpush1.bf16.msra.mxu1 %v7092_v22  ;;  %4655 = vmatprep.subr.bf16.mxu0 %v7097_v34  ;;  %v7166_v22 = vld [vmem:[#allocation7 + $0xd4] ss:$24 sps:$4 sm:$0xff]  }
 0x2b9   :  { %4735 = vmatprep.subr.bf16.mxu1 %v7100_v38  ;;  %v7163_v34 = vld [vmem:[#allocation7 + $0x69c] ss:$24 sps:$4 sm:$0xff]   ;;  %v7164_v38 = vld [vmem:[#allocation7 + $0xd0] ss:$24 sps:$4 sm:$0xff]  }
 0x2bb   :  { %4656 = vmatpush1.bf16.msra.mxu0 %v7095_v36  ;;  %v7161_v36 = vld [vmem:[#allocation7 + $0x698] ss:$24 sps:$4 sm:$0xff]  }
 0x2bc   :  { %4736 = vmatpush1.bf16.msra.mxu1 %v7098_v60  ;;  %4657 = vmatprep.subr.bf16.mxu0 %v7103_v40  ;;  %v7172_v60 = vld [vmem:[#allocation7 + $0x104] ss:$24 sps:$4 sm:$0xff]  }
 0x2bd   :  { %4737 = vmatprep.subr.bf16.mxu1 %v7106_v44  ;;  %v7169_v40 = vld [vmem:[#allocation7 + $0x6cc] ss:$24 sps:$4 sm:$0xff]   ;;  %v7170_v44 = vld [vmem:[#allocation7 + $0x100] ss:$24 sps:$4 sm:$0xff]  }
 0x2bf   :  { %4658 = vmatpush1.bf16.msra.mxu0 %v7101_v33  ;;  %v7167_v33 = vld [vmem:[#allocation7 + $0x6c8] ss:$24 sps:$4 sm:$0xff]  }
 0x2c0   :  { %4738 = vmatpush1.bf16.msra.mxu1 %v7104_v55  ;;  %4659 = vmatprep.subr.bf16.mxu0 %v7109_v59  ;;  %v7178_v55 = vld [vmem:[#allocation7 + $0x134] ss:$24 sps:$4 sm:$0xff]  }
 0x2c1   :  { %4739 = vmatprep.subr.bf16.mxu1 %v7112_v10  ;;  %v7175_v59 = vld [vmem:[#allocation7 + $0x6fc] ss:$24 sps:$4 sm:$0xff]   ;;  %v7176_v10 = vld [vmem:[#allocation7 + $0x130] ss:$24 sps:$4 sm:$0xff]  }
 0x2c3   :  { %4660 = vmatpush1.bf16.msra.mxu0 %v7107_v29  ;;  %v7173_v29 = vld [vmem:[#allocation7 + $0x6f8] ss:$24 sps:$4 sm:$0xff]  }
 0x2c4   :  { %4740 = vmatpush1.bf16.msra.mxu1 %v7110_v30  ;;  %4661 = vmatprep.subr.bf16.mxu0 %v7115_v62  ;;  %v7184_v30 = vld [vmem:[#allocation7 + $0x164] ss:$24 sps:$4 sm:$0xff]  }
 0x2c5   :  { %4741 = vmatprep.subr.bf16.mxu1 %v7118_v0  ;;  %v7181_v62 = vld [vmem:[#allocation7 + $0x72c] ss:$24 sps:$4 sm:$0xff]   ;;  %v7182_v0 = vld [vmem:[#allocation7 + $0x160] ss:$24 sps:$4 sm:$0xff]  }
 0x2c7   :  { %4662 = vmatpush1.bf16.msra.mxu0 %v7113_v41  ;;  %v7179_v41 = vld [vmem:[#allocation7 + $0x728] ss:$24 sps:$4 sm:$0xff]  }
 0x2c8   :  { %4742 = vmatpush1.bf16.msra.mxu1 %v7116_v3  ;;  %4663 = vmatprep.subr.bf16.mxu0 %v7121_v26  ;;  %v7190_v3 = vld [vmem:[#allocation7 + $0x194] ss:$24 sps:$4 sm:$0xff]  }
 0x2c9   :  { %4743 = vmatprep.subr.bf16.mxu1 %v7124_v4  ;;  %v7187_v26 = vld [vmem:[#allocation7 + $0x75c] ss:$24 sps:$4 sm:$0xff]   ;;  %v7188_v4 = vld [vmem:[#allocation7 + $0x190] ss:$24 sps:$4 sm:$0xff]  }
 0x2cb   :  { %4664 = vmatpush1.bf16.msra.mxu0 %v7119_v42  ;;  %v7185_v42 = vld [vmem:[#allocation7 + $0x758] ss:$24 sps:$4 sm:$0xff]  }
 0x2cc   :  { %4744 = vmatpush1.bf16.msra.mxu1 %v7122_v32  ;;  %4665 = vmatprep.subr.bf16.mxu0 %v7127_v7  ;;  %v7196_v32 = vld [vmem:[#allocation7 + $0x1c4] ss:$24 sps:$4 sm:$0xff]  }
 0x2cd   :  { %4745 = vmatprep.subr.bf16.mxu1 %v7130_v8  ;;  %v7193_v7 = vld [vmem:[#allocation7 + $0x78c] ss:$24 sps:$4 sm:$0xff]   ;;  %v7194_v8 = vld [vmem:[#allocation7 + $0x1c0] ss:$24 sps:$4 sm:$0xff]  }
 0x2cf   :  { %4666 = vmatpush1.bf16.msra.mxu0 %v7125_v9  ;;  %v7191_v9 = vld [vmem:[#allocation7 + $0x788] ss:$24 sps:$4 sm:$0xff]  }
 0x2d0   :  { %4746 = vmatpush1.bf16.msra.mxu1 %v7128_v13  ;;  %4667 = vmatprep.subr.bf16.mxu0 %v7133_v14  ;;  %v7202_v13 = vld [vmem:[#allocation7 + $0x1f4] ss:$24 sps:$4 sm:$0xff]  }
 0x2d1   :  { %4747 = vmatprep.subr.bf16.mxu1 %v7136_v19  ;;  %v7199_v14 = vld [vmem:[#allocation7 + $0x7bc] ss:$24 sps:$4 sm:$0xff]   ;;  %v7200_v19 = vld [vmem:[#allocation7 + $0x1f0] ss:$24 sps:$4 sm:$0xff]  }
 0x2d3   :  { %4668 = vmatpush1.bf16.msra.mxu0 %v7131_v20  ;;  %v7197_v20 = vld [vmem:[#allocation7 + $0x7b8] ss:$24 sps:$4 sm:$0xff]  }
 0x2d4   :  { %4748 = vmatpush1.bf16.msra.mxu1 %v7134_v23  ;;  %4924 = vmatprep.subr.bf16.mxu0 %v7142_v39  ;;  %v7208_v23 = vld [vmem:[#allocation7 + $0x224] ss:$24 sps:$4 sm:$0xff]  }
 0x2d5   :  { %4749 = vmatprep.subr.bf16.mxu1 %v7139_v6  ;;  %v7205_v39 = vld [vmem:[#allocation7 + $0x7ec] ss:$24 sps:$4 sm:$0xff]   ;;  %v7206_v6 = vld [vmem:[#allocation7 + $0x220] ss:$24 sps:$4 sm:$0xff]  }
 0x2d6   :  { %4670 = vmatmul.mubr.bf16.vlgmr.msra.gmra.mrb[8].mxu0 %v8207_v53 }
 0x2d7   :  { %4925 = vmatpush1.bf16.msra.mxu0 %v7140_v25  ;;  %4956 = vmatprep.mubr.bf16.mxu0 %v8146_v28  ;;  %v7158_v28 = vld [vmem:[#allocation7 + $0xa0] ss:$24 sps:$4 sm:$0xff]  }
 0x2d8   :  { %4750 = vmatpush1.bf16.msra.mxu1 %v7137_v52  ;;  %4926 = vmatprep.subr.bf16.mxu0 %v7148_v58  ;;  %v7203_v25 = vld [vmem:[#allocation7 + $0x7e8] ss:$24 sps:$4 sm:$0xff]   ;;  %v7214_v52 = vld [vmem:[#allocation7 + $0x254] ss:$24 sps:$4 sm:$0xff]  }
 0x2d9   :  { %4760 = vmatprep.subr.bf16.mxu1 %v7145_v12  ;;  %v7211_v58 = vld [vmem:[#allocation7 + $0x81c] ss:$24 sps:$4 sm:$0xff]   ;;  %v7212_v12 = vld [vmem:[#allocation7 + $0x250] ss:$24 sps:$4 sm:$0xff]  }
 0x2db   :  { %4752 = vmatmul.mubr.bf16.vlgmr.msra.gmra.mrb[20].mxu1 %v8189_v17  ;;  %4927 = vmatpush1.bf16.msra.mxu0 %v7146_v21  ;;  %v7209_v21 = vld [vmem:[#allocation7 + $0x818] ss:$24 sps:$4 sm:$0xff]  }
 0x2dc   :  { %4761 = vmatpush1.bf16.msra.mxu1 %v7143_v43  ;;  %4792 = vmatprep.mubr.bf16.mxu1 %v8126_v24  ;;  %v7220_v43 = vld [vmem:[#allocation7 + $0x284] ss:$24 sps:$4 sm:$0xff]  }
 0x2dd   :  { %4762 = vmatprep.subr.bf16.mxu1 %v7151_v54  ;;  %4928 = vmatprep.subr.bf16.mxu0 %v7154_v15  ;;  %v7217_v54 = vld [vmem:[#allocation7 + $0x84c] ss:$24 sps:$4 sm:$0xff]   ;;  %v7218_v15 = vld [vmem:[#allocation7 + $0x280] ss:$24 sps:$4 sm:$0xff]  }
 0x2df   :  { %4929 = vmatpush1.bf16.msra.mxu0 %v7152_v5  ;;  %v7215_v5 = vld [vmem:[#allocation7 + $0x848] ss:$24 sps:$4 sm:$0xff]  }
 0x2e0   :  { %4763 = vmatpush1.bf16.msra.mxu1 %v7149_v27  ;;  %4930 = vmatprep.subr.bf16.mxu0 %v7160_v56  ;;  %v7226_v27 = vld [vmem:[#allocation7 + $0x2b4] ss:$24 sps:$4 sm:$0xff]  }
 0x2e1   :  { %4764 = vmatprep.subr.bf16.mxu1 %v7157_v2  ;;  %v7223_v56 = vld [vmem:[#allocation7 + $0x87c] ss:$24 sps:$4 sm:$0xff]   ;;  %v7224_v2 = vld [vmem:[#allocation7 + $0x2b0] ss:$24 sps:$4 sm:$0xff]  }
 0x2e3   :  { %4931 = vmatpush1.bf16.msra.mxu0 %v7158_v28  ;;  %v7221_v28 = vld [vmem:[#allocation7 + $0x878] ss:$24 sps:$4 sm:$0xff]  }
 0x2e4   :  { %4765 = vmatpush1.bf16.msra.mxu1 %v7155_v31  ;;  %4932 = vmatprep.subr.bf16.mxu0 %v7166_v22  ;;  %v7232_v31 = vld [vmem:[#allocation7 + $0x2e4] ss:$24 sps:$4 sm:$0xff]  }
 0x2e5   :  { %4766 = vmatprep.subr.bf16.mxu1 %v7163_v34  ;;  %v7229_v22 = vld [vmem:[#allocation7 + $0x8ac] ss:$24 sps:$4 sm:$0xff]   ;;  %v7230_v34 = vld [vmem:[#allocation7 + $0x2e0] ss:$24 sps:$4 sm:$0xff]  }
 0x2e7   :  { %4933 = vmatpush1.bf16.msra.mxu0 %v7164_v38  ;;  %v7227_v38 = vld [vmem:[#allocation7 + $0x8a8] ss:$24 sps:$4 sm:$0xff]  }
 0x2e8   :  { %4767 = vmatpush1.bf16.msra.mxu1 %v7161_v36  ;;  %4934 = vmatprep.subr.bf16.mxu0 %v7172_v60  ;;  %v7238_v36 = vld [vmem:[#allocation7 + $0x314] ss:$24 sps:$4 sm:$0xff]  }
 0x2e9   :  { %4768 = vmatprep.subr.bf16.mxu1 %v7169_v40  ;;  %v7235_v60 = vld [vmem:[#allocation7 + $0x8dc] ss:$24 sps:$4 sm:$0xff]   ;;  %v7236_v40 = vld [vmem:[#allocation7 + $0x310] ss:$24 sps:$4 sm:$0xff]  }
 0x2eb   :  { %4935 = vmatpush1.bf16.msra.mxu0 %v7170_v44  ;;  %v7233_v44 = vld [vmem:[#allocation7 + $0x8d8] ss:$24 sps:$4 sm:$0xff]  }
 0x2ec   :  { %4769 = vmatpush1.bf16.msra.mxu1 %v7167_v33  ;;  %4936 = vmatprep.subr.bf16.mxu0 %v7178_v55  ;;  %v7244_v33 = vld [vmem:[#allocation7 + $0x344] ss:$24 sps:$4 sm:$0xff]  }
 0x2ed   :  { %4770 = vmatprep.subr.bf16.mxu1 %v7175_v59  ;;  %v7241_v55 = vld [vmem:[#allocation7 + $0x90c] ss:$24 sps:$4 sm:$0xff]   ;;  %v7242_v59 = vld [vmem:[#allocation7 + $0x340] ss:$24 sps:$4 sm:$0xff]  }
 0x2ef   :  { %4937 = vmatpush1.bf16.msra.mxu0 %v7176_v10  ;;  %v7239_v10 = vld [vmem:[#allocation7 + $0x908] ss:$24 sps:$4 sm:$0xff]  }
 0x2f0   :  { %4771 = vmatpush1.bf16.msra.mxu1 %v7173_v29  ;;  %4938 = vmatprep.subr.bf16.mxu0 %v7184_v30  ;;  %v7247_v29 = vld [vmem:[#allocation7 + $0x93c] ss:$24 sps:$4 sm:$0xff]  }
 0x2f1   :  { %4772 = vmatprep.subr.bf16.mxu1 %v7181_v62  ;;  %v7250_v30 = vld [vmem:[#allocation7 + $0x374] ss:$24 sps:$4 sm:$0xff]   ;;  %v7248_v62 = vld [vmem:[#allocation7 + $0x370] ss:$24 sps:$4 sm:$0xff]  }
 0x2f3   :  { %4939 = vmatpush1.bf16.msra.mxu0 %v7182_v0  ;;  %v7245_v0 = vld [vmem:[#allocation7 + $0x938] ss:$24 sps:$4 sm:$0xff]  }
 0x2f4   :  { %4773 = vmatpush1.bf16.msra.mxu1 %v7179_v41  ;;  %4940 = vmatprep.subr.bf16.mxu0 %v7190_v3  ;;  %v7256_v41 = vld [vmem:[#allocation7 + $0x3a4] ss:$24 sps:$4 sm:$0xff]   ;;  %v7251_v3 = vld [vmem:[#allocation7 + $0x968] ss:$24 sps:$4 sm:$0xff]  }
 0x2f5   :  { %4774 = vmatprep.subr.bf16.mxu1 %v7187_v26  ;;  %v7262_v26 = vld [vmem:[#allocation7 + $0x3d4] ss:$24 sps:$4 sm:$0xff]  }
 0x2f7   :  { %4941 = vmatpush1.bf16.msra.mxu0 %v7188_v4  ;;  %v7259_v4 = vld [vmem:[#allocation7 + $0x99c] ss:$24 sps:$4 sm:$0xff]  }
 0x2f8   :  { %4775 = vmatpush1.bf16.msra.mxu1 %v7185_v42  ;;  %4942 = vmatprep.subr.bf16.mxu0 %v7196_v32  ;;  %v7260_v42 = vld [vmem:[#allocation7 + $0x3d0] ss:$24 sps:$4 sm:$0xff]  }
 0x2f9   :  { %4776 = vmatprep.subr.bf16.mxu1 %v7193_v7  ;;  %v7257_v32 = vld [vmem:[#allocation7 + $0x998] ss:$24 sps:$4 sm:$0xff]   ;;  %v7268_v7 = vld [vmem:[#allocation7 + $0x404] ss:$24 sps:$4 sm:$0xff]  }
 0x2fb   :  { %4943 = vmatpush1.bf16.msra.mxu0 %v7194_v8  ;;  %v7265_v8 = vld [vmem:[#allocation7 + $0x9cc] ss:$24 sps:$4 sm:$0xff]  }
 0x2fc   :  { %4777 = vmatpush1.bf16.msra.mxu1 %v7191_v9  ;;  %4944 = vmatprep.subr.bf16.mxu0 %v7202_v13  ;;  %v7266_v9 = vld [vmem:[#allocation7 + $0x400] ss:$24 sps:$4 sm:$0xff]  }
 0x2fd   :  { %4778 = vmatprep.subr.bf16.mxu1 %v7199_v14  ;;  %v7263_v13 = vld [vmem:[#allocation7 + $0x9c8] ss:$24 sps:$4 sm:$0xff]   ;;  %v7274_v14 = vld [vmem:[#allocation7 + $0x434] ss:$24 sps:$4 sm:$0xff]  }
 0x2ff   :  { %4945 = vmatpush1.bf16.msra.mxu0 %v7200_v19  ;;  %v7271_v19 = vld [vmem:[#allocation7 + $0x9fc] ss:$24 sps:$4 sm:$0xff]  }
 0x300   :  { %4779 = vmatpush1.bf16.msra.mxu1 %v7197_v20  ;;  %4946 = vmatprep.subr.bf16.mxu0 %v7208_v23  ;;  %v7272_v20 = vld [vmem:[#allocation7 + $0x430] ss:$24 sps:$4 sm:$0xff]  }
 0x301   :  { %4780 = vmatprep.subr.bf16.mxu1 %v7205_v39  ;;  %v7269_v23 = vld [vmem:[#allocation7 + $0x9f8] ss:$24 sps:$4 sm:$0xff]   ;;  %v7280_v39 = vld [vmem:[#allocation7 + $0x464] ss:$24 sps:$4 sm:$0xff]  }
 0x303   :  { %4947 = vmatpush1.bf16.msra.mxu0 %v7206_v6  ;;  %v7277_v6 = vld [vmem:[#allocation7 + $0xa2c] ss:$24 sps:$4 sm:$0xff]  }
 0x304   :  { %4781 = vmatpush1.bf16.msra.mxu1 %v7203_v25  ;;  %4948 = vmatprep.subr.bf16.mxu0 %v7214_v52 }
 0x305   :  { %4782 = vmatprep.subr.bf16.mxu1 %v7211_v58  ;;  %v7278_v58 = vld [vmem:[#allocation7 + $0x460] ss:$24 sps:$4 sm:$0xff]  }
 0x307   :  { %4949 = vmatpush1.bf16.msra.mxu0 %v7212_v12 }
 0x308   :  { %4783 = vmatpush1.bf16.msra.mxu1 %v7209_v21  ;;  %4950 = vmatprep.subr.bf16.mxu0 %v7220_v43  ;;  %v7275_v21 = vld [vmem:[#allocation7 + $0xa28] ss:$24 sps:$4 sm:$0xff]   ;;  %v7286_v43 = vld [vmem:[#allocation7 + $0x494] ss:$24 sps:$4 sm:$0xff]  }
 0x309   :  { %4784 = vmatprep.subr.bf16.mxu1 %v7217_v54 }
 0x30b   :  { %4951 = vmatpush1.bf16.msra.mxu0 %v7218_v15  ;;  %v7283_v15 = vld [vmem:[#allocation7 + $0xa5c] ss:$24 sps:$4 sm:$0xff]  }
 0x30c   :  { %4785 = vmatpush1.bf16.msra.mxu1 %v7215_v5  ;;  %4952 = vmatprep.subr.bf16.mxu0 %v7226_v27  ;;  %v7284_v5 = vld [vmem:[#allocation7 + $0x490] ss:$24 sps:$4 sm:$0xff]  }
 0x30d   :  { %4786 = vmatprep.subr.bf16.mxu1 %v7223_v56  ;;  %v7281_v27 = vld [vmem:[#allocation7 + $0xa58] ss:$24 sps:$4 sm:$0xff]   ;;  %v7292_v56 = vld [vmem:[#allocation7 + $0x4c4] ss:$24 sps:$4 sm:$0xff]  }
 0x30f   :  { %4953 = vmatpush1.bf16.msra.mxu0 %v7224_v2  ;;  %v7289_v2 = vld [vmem:[#allocation7 + $0xa8c] ss:$24 sps:$4 sm:$0xff]  }
 0x310   :  { %4787 = vmatpush1.bf16.msra.mxu1 %v7221_v28  ;;  %4954 = vmatprep.subr.bf16.mxu0 %v7232_v31  ;;  %v7290_v28 = vld [vmem:[#allocation7 + $0x4c0] ss:$24 sps:$4 sm:$0xff]  }
 0x311   :  { %4788 = vmatprep.subr.bf16.mxu1 %v7229_v22  ;;  %v7287_v31 = vld [vmem:[#allocation7 + $0xa88] ss:$24 sps:$4 sm:$0xff]   ;;  %v7298_v22 = vld [vmem:[#allocation7 + $0x4f4] ss:$24 sps:$4 sm:$0xff]  }
 0x313   :  { %4955 = vmatpush1.bf16.msra.mxu0 %v7230_v34  ;;  %v7295_v34 = vld [vmem:[#allocation7 + $0xabc] ss:$24 sps:$4 sm:$0xff]  }
 0x314   :  { %4789 = vmatpush1.bf16.msra.mxu1 %v7227_v38  ;;  %4965 = vmatprep.subr.bf16.mxu0 %v7238_v36  ;;  %v7296_v38 = vld [vmem:[#allocation7 + $0x4f0] ss:$24 sps:$4 sm:$0xff]  }
 0x315   :  { %4790 = vmatprep.subr.bf16.mxu1 %v7235_v60  ;;  %v7293_v36 = vld [vmem:[#allocation7 + $0xab8] ss:$24 sps:$4 sm:$0xff]   ;;  %v7304_v60 = vld [vmem:[#allocation7 + $0x524] ss:$24 sps:$4 sm:$0xff]  }
 0x316   :  { %4957 = vmatmul.mubr.bf16.vlgmr.msra.gmra.mrb[12].mxu0 %v8144_v11  ;;  %v7253_v11 = vld [vmem:[#allocation7 + $0x96c] ss:$24 sps:$4 sm:$0xff]  }
 0x317   :  { %4966 = vmatpush1.bf16.msra.mxu0 %v7236_v40  ;;  %4997 = vmatprep.mubr.bf16.mxu0 %v8149_v61  ;;  %v7254_v61 = vld [vmem:[#allocation7 + $0x3a0] ss:$24 sps:$4 sm:$0xff]   ;;  %v7301_v40 = vld [vmem:[#allocation7 + $0xaec] ss:$24 sps:$4 sm:$0xff]  }
 0x318   :  { %4791 = vmatpush1.bf16.msra.mxu1 %v7233_v44  ;;  %4967 = vmatprep.subr.bf16.mxu0 %v7244_v33  ;;  %v7302_v44 = vld [vmem:[#allocation7 + $0x520] ss:$24 sps:$4 sm:$0xff]  }
 0x319   :  { %4801 = vmatprep.subr.bf16.mxu1 %v7241_v55  ;;  %v7299_v33 = vld [vmem:[#allocation7 + $0xae8] ss:$24 sps:$4 sm:$0xff]   ;;  %v7310_v55 = vld [vmem:[#allocation7 + $0x554] ss:$24 sps:$4 sm:$0xff]  }
 0x31b   :  { %4793 = vmatmul.mubr.bf16.vlgmr.msra.gmra.mrb[20].mxu1 %v8128_v35  ;;  %4968 = vmatpush1.bf16.msra.mxu0 %v7242_v59  ;;  %v7307_v59 = vld [vmem:[#allocation7 + $0xb1c] ss:$24 sps:$4 sm:$0xff]  }
 0x31c   :  { %4802 = vmatpush1.bf16.msra.mxu1 %v7239_v10  ;;  %4833 = vmatprep.mubr.bf16.mxu1 %v8137_v46  ;;  %v7308_v10 = vld [vmem:[#allocation7 + $0x550] ss:$24 sps:$4 sm:$0xff]  }
 0x31d   :  { %4803 = vmatprep.subr.bf16.mxu1 %v7247_v29  ;;  %4969 = vmatprep.subr.bf16.mxu0 %v7250_v30  ;;  %v7305_v29 = vld [vmem:[#allocation7 + $0xb18] ss:$24 sps:$4 sm:$0xff]   ;;  %v7316_v30 = vld [vmem:[#allocation7 + $0x584] ss:$24 sps:$4 sm:$0xff]  }
 0x31f   :  { %4970 = vmatpush1.bf16.msra.mxu0 %v7248_v62  ;;  %v7313_v62 = vld [vmem:[#allocation7 + $0xb4c] ss:$24 sps:$4 sm:$0xff]  }
 0x320   :  { %4804 = vmatpush1.bf16.msra.mxu1 %v7245_v0  ;;  %4971 = vmatprep.subr.bf16.mxu0 %v7256_v41  ;;  %v7314_v0 = vld [vmem:[#allocation7 + $0x580] ss:$24 sps:$4 sm:$0xff]  }
 0x321   :  { %4805 = vmatprep.subr.bf16.mxu1 %v7253_v11  ;;  %v7311_v41 = vld [vmem:[#allocation7 + $0xb48] ss:$24 sps:$4 sm:$0xff]   ;;  %v7322_v11 = vld [vmem:[#allocation7 + $0x5b4] ss:$24 sps:$4 sm:$0xff]  }
 0x323   :  { %4972 = vmatpush1.bf16.msra.mxu0 %v7254_v61  ;;  %v7319_v61 = vld [vmem:[#allocation7 + $0xb7c] ss:$24 sps:$4 sm:$0xff]  }
 0x324   :  { %4806 = vmatpush1.bf16.msra.mxu1 %v7251_v3  ;;  %4973 = vmatprep.subr.bf16.mxu0 %v7262_v26  ;;  %v7320_v3 = vld [vmem:[#allocation7 + $0x5b0] ss:$24 sps:$4 sm:$0xff]  }
 0x325   :  { %4807 = vmatprep.subr.bf16.mxu1 %v7259_v4  ;;  %v7317_v26 = vld [vmem:[#allocation7 + $0xb78] ss:$24 sps:$4 sm:$0xff]   ;;  %v7328_v4 = vld [vmem:[#allocation7 + $0x5e4] ss:$24 sps:$4 sm:$0xff]  }
 0x327   :  { %4974 = vmatpush1.bf16.msra.mxu0 %v7260_v42  ;;  %v7325_v42 = vld [vmem:[#allocation7 + $0xbac] ss:$24 sps:$4 sm:$0xff]  }
 0x328   :  { %4808 = vmatpush1.bf16.msra.mxu1 %v7257_v32  ;;  %4975 = vmatprep.subr.bf16.mxu0 %v7268_v7  ;;  %v7326_v32 = vld [vmem:[#allocation7 + $0x5e0] ss:$24 sps:$4 sm:$0xff]  }
 0x329   :  { %4809 = vmatprep.subr.bf16.mxu1 %v7265_v8  ;;  %v7323_v7 = vld [vmem:[#allocation7 + $0xba8] ss:$24 sps:$4 sm:$0xff]   ;;  %v7334_v8 = vld [vmem:[#allocation7 + $0x614] ss:$24 sps:$4 sm:$0xff]  }
 0x32b   :  { %4976 = vmatpush1.bf16.msra.mxu0 %v7266_v9  ;;  %v7331_v9 = vld [vmem:[#allocation7 + $0xbdc] ss:$24 sps:$4 sm:$0xff]  }
 0x32c   :  { %4810 = vmatpush1.bf16.msra.mxu1 %v7263_v13  ;;  %4977 = vmatprep.subr.bf16.mxu0 %v7274_v14  ;;  %v7332_v13 = vld [vmem:[#allocation7 + $0x610] ss:$24 sps:$4 sm:$0xff]  }
 0x32d   :  { %4811 = vmatprep.subr.bf16.mxu1 %v7271_v19  ;;  %v7329_v14 = vld [vmem:[#allocation7 + $0xbd8] ss:$24 sps:$4 sm:$0xff]   ;;  %v7340_v19 = vld [vmem:[#allocation7 + $0x644] ss:$24 sps:$4 sm:$0xff]  }
 0x32e   :  { %v8217_v25 = vpop.f32.mrb[16].mxu1 }
 0x32f   :  { %v8219_v52 = vpop.f32.mrb[17].mxu1  ;;  %4978 = vmatpush1.bf16.msra.mxu0 %v7272_v20  ;;  %v7337_v20 = vld [vmem:[#allocation7 + $0xc0c] ss:$24 sps:$4 sm:$0xff]  }
 0x330   :  { %v4511_v12 = vpop.f32.mrb[18].mxu1  ;;  %4812 = vmatpush1.bf16.msra.mxu1 %v7269_v23  ;;  %4979 = vmatprep.subr.bf16.mxu0 %v7280_v39  ;;  %v7338_v23 = vld [vmem:[#allocation7 + $0x640] ss:$24 sps:$4 sm:$0xff]  }
 0x331   :  { %v4512_v54 = vpop.f32.mrb[19].mxu1  ;;  %4813 = vmatprep.subr.bf16.mxu1 %v7277_v6  ;;  %v7335_v39 = vld [vmem:[#allocation7 + $0xc08] ss:$24 sps:$4 sm:$0xff]   ;;  %v7343_v6 = vld [vmem:[#allocation7 + $0xc3c] ss:$24 sps:$4 sm:$0xff]  }
 0x332   :  { %v7344_v12 = vld [vmem:[#allocation7 + $0x670] ss:$24 sps:$4 sm:$0xff]  }
 0x333   :  { %4980 = vmatpush1.bf16.msra.mxu0 %v7278_v58  ;;  %v7346_v58 = vld [vmem:[#allocation7 + $0x674] ss:$24 sps:$4 sm:$0xff]   ;;  %v7347_v54 = vld [vmem:[#allocation7 + $0xc68] ss:$24 sps:$4 sm:$0xff]  }
 0x334   :  { %4814 = vmatpush1.bf16.msra.mxu1 %v7275_v21  ;;  %4981 = vmatprep.subr.bf16.mxu0 %v7286_v43  ;;  %v7341_v21 = vld [vmem:[#allocation7 + $0xc38] ss:$24 sps:$4 sm:$0xff]   ;;  %v7352_v43 = vld [vmem:[#allocation7 + $0x6a4] ss:$24 sps:$4 sm:$0xff]  }
 0x335   :  { %4815 = vmatprep.subr.bf16.mxu1 %v7283_v15  ;;  %v7358_v15 = vld [vmem:[#allocation7 + $0x6d4] ss:$24 sps:$4 sm:$0xff]  }
 0x337   :  { %4982 = vmatpush1.bf16.msra.mxu0 %v7284_v5  ;;  %v7355_v5 = vld [vmem:[#allocation7 + $0xc9c] ss:$24 sps:$4 sm:$0xff]  }
 0x338   :  { %4816 = vmatpush1.bf16.msra.mxu1 %v7281_v27  ;;  %4983 = vmatprep.subr.bf16.mxu0 %v7292_v56  ;;  %v7356_v27 = vld [vmem:[#allocation7 + $0x6d0] ss:$24 sps:$4 sm:$0xff]  }
 0x339   :  { %4817 = vmatprep.subr.bf16.mxu1 %v7289_v2  ;;  %v7353_v56 = vld [vmem:[#allocation7 + $0xc98] ss:$24 sps:$4 sm:$0xff]   ;;  %v7364_v2 = vld [vmem:[#allocation7 + $0x704] ss:$24 sps:$4 sm:$0xff]  }
 0x33b   :  { %4984 = vmatpush1.bf16.msra.mxu0 %v7290_v28  ;;  %v7361_v28 = vld [vmem:[#allocation7 + $0xccc] ss:$24 sps:$4 sm:$0xff]  }
 0x33c   :  { %4818 = vmatpush1.bf16.msra.mxu1 %v7287_v31  ;;  %4985 = vmatprep.subr.bf16.mxu0 %v7298_v22  ;;  %v7362_v31 = vld [vmem:[#allocation7 + $0x700] ss:$24 sps:$4 sm:$0xff]  }
 0x33d   :  { %4819 = vmatprep.subr.bf16.mxu1 %v7295_v34  ;;  %v7359_v22 = vld [vmem:[#allocation7 + $0xcc8] ss:$24 sps:$4 sm:$0xff]   ;;  %v7370_v34 = vld [vmem:[#allocation7 + $0x734] ss:$24 sps:$4 sm:$0xff]  }
 0x33f   :  { %4986 = vmatpush1.bf16.msra.mxu0 %v7296_v38  ;;  %v7367_v38 = vld [vmem:[#allocation7 + $0xcfc] ss:$24 sps:$4 sm:$0xff]  }
 0x340   :  { %4820 = vmatpush1.bf16.msra.mxu1 %v7293_v36  ;;  %4987 = vmatprep.subr.bf16.mxu0 %v7304_v60  ;;  %v7368_v36 = vld [vmem:[#allocation7 + $0x730] ss:$24 sps:$4 sm:$0xff]  }
 0x341   :  { %4821 = vmatprep.subr.bf16.mxu1 %v7301_v40  ;;  %v7365_v60 = vld [vmem:[#allocation7 + $0xcf8] ss:$24 sps:$4 sm:$0xff]   ;;  %v7376_v40 = vld [vmem:[#allocation7 + $0x764] ss:$24 sps:$4 sm:$0xff]  }
 0x343   :  { %4988 = vmatpush1.bf16.msra.mxu0 %v7302_v44  ;;  %v7373_v44 = vld [vmem:[#allocation7 + $0xd2c] ss:$24 sps:$4 sm:$0xff]  }
 0x344   :  { %4822 = vmatpush1.bf16.msra.mxu1 %v7299_v33  ;;  %4989 = vmatprep.subr.bf16.mxu0 %v7310_v55  ;;  %v7374_v33 = vld [vmem:[#allocation7 + $0x760] ss:$24 sps:$4 sm:$0xff]  }
 0x345   :  { %4823 = vmatprep.subr.bf16.mxu1 %v7307_v59  ;;  %v7371_v55 = vld [vmem:[#allocation7 + $0xd28] ss:$24 sps:$4 sm:$0xff]   ;;  %v7382_v59 = vld [vmem:[#allocation7 + $0x794] ss:$24 sps:$4 sm:$0xff]  }
 0x347   :  { %4990 = vmatpush1.bf16.msra.mxu0 %v7308_v10  ;;  %v7379_v10 = vld [vmem:[#allocation7 + $0xd5c] ss:$24 sps:$4 sm:$0xff]  }
 0x348   :  { %4824 = vmatpush1.bf16.msra.mxu1 %v7305_v29  ;;  %4991 = vmatprep.subr.bf16.mxu0 %v7316_v30  ;;  %v7380_v29 = vld [vmem:[#allocation7 + $0x790] ss:$24 sps:$4 sm:$0xff]  }
 0x349   :  { %4825 = vmatprep.subr.bf16.mxu1 %v7313_v62  ;;  %v7377_v30 = vld [vmem:[#allocation7 + $0xd58] ss:$24 sps:$4 sm:$0xff]   ;;  %v7388_v62 = vld [vmem:[#allocation7 + $0x7c4] ss:$24 sps:$4 sm:$0xff]  }
 0x34b   :  { %4992 = vmatpush1.bf16.msra.mxu0 %v7314_v0  ;;  %v7385_v0 = vld [vmem:[#allocation7 + $0xd8c] ss:$24 sps:$4 sm:$0xff]  }
 0x34c   :  { %4826 = vmatpush1.bf16.msra.mxu1 %v7311_v41  ;;  %4993 = vmatprep.subr.bf16.mxu0 %v7322_v11  ;;  %v7386_v41 = vld [vmem:[#allocation7 + $0x7c0] ss:$24 sps:$4 sm:$0xff]  }
 0x34d   :  { %4827 = vmatprep.subr.bf16.mxu1 %v7319_v61  ;;  %v7383_v11 = vld [vmem:[#allocation7 + $0xd88] ss:$24 sps:$4 sm:$0xff]   ;;  %v7394_v61 = vld [vmem:[#allocation7 + $0x7f4] ss:$24 sps:$4 sm:$0xff]  }
 0x34f   :  { %4994 = vmatpush1.bf16.msra.mxu0 %v7320_v3  ;;  %v7391_v3 = vld [vmem:[#allocation7 + $0xdbc] ss:$24 sps:$4 sm:$0xff]  }
 0x350   :  { %4828 = vmatpush1.bf16.msra.mxu1 %v7317_v26  ;;  %4995 = vmatprep.subr.bf16.mxu0 %v7328_v4  ;;  %v7392_v26 = vld [vmem:[#allocation7 + $0x7f0] ss:$24 sps:$4 sm:$0xff]  }
 0x351   :  { %4829 = vmatprep.subr.bf16.mxu1 %v7325_v42  ;;  %v7389_v4 = vld [vmem:[#allocation7 + $0xdb8] ss:$24 sps:$4 sm:$0xff]   ;;  %v7400_v42 = vld [vmem:[#allocation7 + $0x824] ss:$24 sps:$4 sm:$0xff]  }
 0x353   :  { %4996 = vmatpush1.bf16.msra.mxu0 %v7326_v32  ;;  %v7397_v32 = vld [vmem:[#allocation7 + $0xdec] ss:$24 sps:$4 sm:$0xff]  }
 0x354   :  { %4830 = vmatpush1.bf16.msra.mxu1 %v7323_v7  ;;  %5006 = vmatprep.subr.bf16.mxu0 %v7334_v8  ;;  %v7398_v7 = vld [vmem:[#allocation7 + $0x820] ss:$24 sps:$4 sm:$0xff]  }
 0x355   :  { %4831 = vmatprep.subr.bf16.mxu1 %v7331_v9  ;;  %v7395_v8 = vld [vmem:[#allocation7 + $0xde8] ss:$24 sps:$4 sm:$0xff]   ;;  %v7406_v9 = vld [vmem:[#allocation7 + $0x854] ss:$24 sps:$4 sm:$0xff]  }
 0x356   :  { %4998 = vmatmul.mubr.bf16.vlgmr.msra.gmra.mrb[12].mxu0 %v8189_v17  ;;  %v7349_v17 = vld [vmem:[#allocation7 + $0xc6c] ss:$24 sps:$4 sm:$0xff]  }
 0x357   :  { %5007 = vmatpush1.bf16.msra.mxu0 %v7332_v13  ;;  %5038 = vmatprep.mubr.bf16.mxu0 %v8126_v24  ;;  %v7350_v24 = vld [vmem:[#allocation7 + $0x6a0] ss:$24 sps:$4 sm:$0xff]   ;;  %v7403_v13 = vld [vmem:[#allocation7 + $0xe1c] ss:$24 sps:$4 sm:$0xff]  }
 0x358   :  { %4832 = vmatpush1.bf16.msra.mxu1 %v7329_v14  ;;  %5008 = vmatprep.subr.bf16.mxu0 %v7340_v19  ;;  %v7404_v14 = vld [vmem:[#allocation7 + $0x850] ss:$24 sps:$4 sm:$0xff]  }
 0x359   :  { %4842 = vmatprep.subr.bf16.mxu1 %v7337_v20  ;;  %v7401_v19 = vld [vmem:[#allocation7 + $0xe18] ss:$24 sps:$4 sm:$0xff]   ;;  %v7412_v20 = vld [vmem:[#allocation7 + $0x884] ss:$24 sps:$4 sm:$0xff]  }
 0x35b   :  { %4834 = vmatmul.mubr.bf16.vlgmr.msra.gmra.mrb[20].mxu1 %v8179_v37  ;;  %5009 = vmatpush1.bf16.msra.mxu0 %v7338_v23  ;;  %v7409_v23 = vld [vmem:[#allocation7 + $0xe4c] ss:$24 sps:$4 sm:$0xff]  }
 0x35c   :  { %4843 = vmatpush1.bf16.msra.mxu1 %v7335_v39  ;;  %4874 = vmatprep.mubr.bf16.mxu1 %v8183_v45  ;;  %v7410_v39 = vld [vmem:[#allocation7 + $0x880] ss:$24 sps:$4 sm:$0xff]  }
 0x35d   :  { %4844 = vmatprep.subr.bf16.mxu1 %v7343_v6  ;;  %5010 = vmatprep.subr.bf16.mxu0 %v7346_v58  ;;  %v7407_v6 = vld [vmem:[#allocation7 + $0xe48] ss:$24 sps:$4 sm:$0xff]   ;;  %v7418_v58 = vld [vmem:[#allocation7 + $0x8b4] ss:$24 sps:$4 sm:$0xff]  }
 0x35f   :  { %5011 = vmatpush1.bf16.msra.mxu0 %v7344_v12  ;;  %v7415_v12 = vld [vmem:[#allocation7 + $0xe7c] ss:$24 sps:$4 sm:$0xff]  }
 0x360   :  { %4845 = vmatpush1.bf16.msra.mxu1 %v7341_v21  ;;  %5012 = vmatprep.subr.bf16.mxu0 %v7352_v43  ;;  %v7416_v21 = vld [vmem:[#allocation7 + $0x8b0] ss:$24 sps:$4 sm:$0xff]  }
 0x361   :  { %4846 = vmatprep.subr.bf16.mxu1 %v7349_v17  ;;  %v7413_v43 = vld [vmem:[#allocation7 + $0xe78] ss:$24 sps:$4 sm:$0xff]   ;;  %v7424_v17 = vld [vmem:[#allocation7 + $0x8e4] ss:$24 sps:$4 sm:$0xff]  }
 0x363   :  { %5013 = vmatpush1.bf16.msra.mxu0 %v7350_v24  ;;  %v7421_v24 = vld [vmem:[#allocation7 + $0xeac] ss:$24 sps:$4 sm:$0xff]  }
 0x364   :  { %4847 = vmatpush1.bf16.msra.mxu1 %v7347_v54  ;;  %5014 = vmatprep.subr.bf16.mxu0 %v7358_v15  ;;  %v7422_v54 = vld [vmem:[#allocation7 + $0x8e0] ss:$24 sps:$4 sm:$0xff]  }
 0x365   :  { %4848 = vmatprep.subr.bf16.mxu1 %v7355_v5  ;;  %v7419_v15 = vld [vmem:[#allocation7 + $0xea8] ss:$24 sps:$4 sm:$0xff]   ;;  %v7430_v5 = vld [vmem:[#allocation7 + $0x914] ss:$24 sps:$4 sm:$0xff]  }
 0x367   :  { %5015 = vmatpush1.bf16.msra.mxu0 %v7356_v27  ;;  %v7427_v27 = vld [vmem:[#allocation7 + $0xedc] ss:$24 sps:$4 sm:$0xff]  }
 0x368   :  { %4849 = vmatpush1.bf16.msra.mxu1 %v7353_v56  ;;  %5016 = vmatprep.subr.bf16.mxu0 %v7364_v2  ;;  %v7428_v56 = vld [vmem:[#allocation7 + $0x910] ss:$24 sps:$4 sm:$0xff]  }
 0x369   :  { %4850 = vmatprep.subr.bf16.mxu1 %v7361_v28  ;;  %v7425_v2 = vld [vmem:[#allocation7 + $0xed8] ss:$24 sps:$4 sm:$0xff]   ;;  %v7436_v28 = vld [vmem:[#allocation7 + $0x944] ss:$24 sps:$4 sm:$0xff]  }
 0x36b   :  { %5017 = vmatpush1.bf16.msra.mxu0 %v7362_v31  ;;  %v7433_v31 = vld [vmem:[#allocation7 + $0xf0c] ss:$24 sps:$4 sm:$0xff]  }
 0x36c   :  { %4851 = vmatpush1.bf16.msra.mxu1 %v7359_v22  ;;  %5018 = vmatprep.subr.bf16.mxu0 %v7370_v34  ;;  %v7434_v22 = vld [vmem:[#allocation7 + $0x940] ss:$24 sps:$4 sm:$0xff]  }
 0x36d   :  { %4852 = vmatprep.subr.bf16.mxu1 %v7367_v38  ;;  %v7431_v34 = vld [vmem:[#allocation7 + $0xf08] ss:$24 sps:$4 sm:$0xff]   ;;  %v7439_v38 = vld [vmem:[#allocation7 + $0xf3c] ss:$24 sps:$4 sm:$0xff]  }
 0x36f   :  { %5019 = vmatpush1.bf16.msra.mxu0 %v7368_v36  ;;  %v7442_v36 = vld [vmem:[#allocation7 + $0x974] ss:$24 sps:$4 sm:$0xff]  }
 0x370   :  { %4853 = vmatpush1.bf16.msra.mxu1 %v7365_v60  ;;  %5020 = vmatprep.subr.bf16.mxu0 %v7376_v40  ;;  %v7440_v60 = vld [vmem:[#allocation7 + $0x970] ss:$24 sps:$4 sm:$0xff]  }
 0x371   :  { %4854 = vmatprep.subr.bf16.mxu1 %v7373_v44  ;;  %v7437_v40 = vld [vmem:[#allocation7 + $0xf38] ss:$24 sps:$4 sm:$0xff]   ;;  %v7448_v44 = vld [vmem:[#allocation7 + $0x9a4] ss:$24 sps:$4 sm:$0xff]  }
 0x373   :  { %5021 = vmatpush1.bf16.msra.mxu0 %v7374_v33  ;;  %v7443_v33 = vld [vmem:[#allocation7 + $0xf68] ss:$24 sps:$4 sm:$0xff]  }
 0x374   :  { %4855 = vmatpush1.bf16.msra.mxu1 %v7371_v55  ;;  %5022 = vmatprep.subr.bf16.mxu0 %v7382_v59  ;;  %v7454_v55 = vld [vmem:[#allocation7 + $0x9d4] ss:$24 sps:$4 sm:$0xff]   ;;  %v8229_v59 = vld [vmem:[#allocation8] sm:$0x3f] }
 0x375   :  { %4856 = vmatprep.subr.bf16.mxu1 %v7379_v10  ;;  %v7451_v10 = vld [vmem:[#allocation7 + $0xf9c] ss:$24 sps:$4 sm:$0xff]  }
 0x377   :  { %5023 = vmatpush1.bf16.msra.mxu0 %v7380_v29  ;;  %v7452_v29 = vld [vmem:[#allocation7 + $0x9d0] ss:$24 sps:$4 sm:$0xff]  }
 0x378   :  { %4857 = vmatpush1.bf16.msra.mxu1 %v7377_v30  ;;  %5024 = vmatprep.subr.bf16.mxu0 %v7388_v62  ;;  %v1525_v30 = vrot.slane %v8229_v59, %v7979_v48  ;;  %v7449_v62 = vld [vmem:[#allocation7 + $0xf98] ss:$24 sps:$4 sm:$0xff]  }
 0x379   :  { %4858 = vmatprep.subr.bf16.mxu1 %v7385_v0  ;;  %v7460_v0 = vld [vmem:[#allocation7 + $0xa04] ss:$24 sps:$4 sm:$0xff]  }
 0x37b   :  { %5025 = vmatpush1.bf16.msra.mxu0 %v7386_v41  ;;  %v1529_v41 = vrot.slane %v8229_v59, %v7982_v49 }
 0x37c   :  { %4859 = vmatpush1.bf16.msra.mxu1 %v7383_v11  ;;  %5026 = vmatprep.subr.bf16.mxu0 %v7394_v61  ;;  %v7457_v11 = vld [vmem:[#allocation7 + $0xfcc] ss:$24 sps:$4 sm:$0xff]   ;;  %v7458_v61 = vld [vmem:[#allocation7 + $0xa00] ss:$24 sps:$4 sm:$0xff]  }
 0x37d   :  { %4860 = vmatprep.subr.bf16.mxu1 %v7391_v3  ;;  %v6526_v3 = vadd.f32 %v8217_v25, %v1525_v30  ;;  %v7461_v25 = vld [vmem:[#allocation7 + $0xff8] ss:$24 sps:$4 sm:$0xff]   ;;  %v7517_v30 = vld [vmem:[#allocation7 + $0x11ac] ss:$24 sps:$4 sm:$0xff]  }
 0x37f   :  { %5027 = vmatpush1.bf16.msra.mxu0 %v7392_v26  ;;  %v7455_v26 = vld [vmem:[#allocation7 + $0xfc8] ss:$24 sps:$4 sm:$0xff]  }
 0x380   :  { %4861 = vmatpush1.bf16.msra.mxu1 %v7389_v4  ;;  %5028 = vmatprep.subr.bf16.mxu0 %v7400_v42  ;;  %v7466_v4 = vld [vmem:[#allocation7 + $0xa34] ss:$24 sps:$4 sm:$0xff]   ;;  %v6528_v42 = vadd.f32 %v8219_v52, %v1529_v41  ;;  %v7470_v52 = vld [vmem:[#allocation7 + $0xa60] ss:$24 sps:$4 sm:$0xff]  }
 0x381   :  { %4862 = vmatprep.subr.bf16.mxu1 %v7397_v32  ;;  %v7463_v32 = vld [vmem:[#allocation7 + $0xffc] ss:$24 sps:$4 sm:$0xff]  }
 0x382   :  { %v7526_v41 = vld [vmem:[#allocation7 + $0xc14] ss:$24 sps:$4 sm:$0xff]  }
 0x383   :  { %5029 = vmatpush1.bf16.msra.mxu0 %v7398_v7 }
 0x384   :  { %4863 = vmatpush1.bf16.msra.mxu1 %v7395_v8  ;;  %5030 = vmatprep.subr.bf16.mxu0 %v7406_v9 }
 0x385   :  { %4864 = vmatprep.subr.bf16.mxu1 %v7403_v13  ;;  %v7464_v13 = vld [vmem:[#allocation7 + $0xa30] ss:$24 sps:$4 sm:$0xff]  }
 0x387   :  { %5031 = vmatpush1.bf16.msra.mxu0 %v7404_v14 }
 0x388   :  { %4865 = vmatpush1.bf16.msra.mxu1 %v7401_v19  ;;  %5032 = vmatprep.subr.bf16.mxu0 %v7412_v20  ;;  %v7472_v19 = vld [vmem:[#allocation7 + $0xa64] ss:$24 sps:$4 sm:$0xff]  }
 0x389   :  { %4866 = vmatprep.subr.bf16.mxu1 %v7409_v23  ;;  %v7469_v20 = vld [vmem:[#allocation7 + $0x102c] ss:$24 sps:$4 sm:$0xff]   ;;  %v7467_v23 = vld [vmem:[#allocation7 + $0x1028] ss:$24 sps:$4 sm:$0xff]  }
 0x38b   :  { %5033 = vmatpush1.bf16.msra.mxu0 %v7410_v39  ;;  %v7478_v39 = vld [vmem:[#allocation7 + $0xa94] ss:$24 sps:$4 sm:$0xff]  }
 0x38c   :  { %4867 = vmatpush1.bf16.msra.mxu1 %v7407_v6  ;;  %5034 = vmatprep.subr.bf16.mxu0 %v7418_v58  ;;  %v7475_v6 = vld [vmem:[#allocation7 + $0x105c] ss:$24 sps:$4 sm:$0xff]   ;;  %v7476_v58 = vld [vmem:[#allocation7 + $0xa90] ss:$24 sps:$4 sm:$0xff]  }
 0x38d   :  { %4868 = vmatprep.subr.bf16.mxu1 %v7415_v12  ;;  %v7473_v12 = vld [vmem:[#allocation7 + $0x1058] ss:$24 sps:$4 sm:$0xff]  }
 0x38f   :  { %5035 = vmatpush1.bf16.msra.mxu0 %v7416_v21  ;;  %v7484_v21 = vld [vmem:[#allocation7 + $0xac4] ss:$24 sps:$4 sm:$0xff]  }
 0x390   :  { %4869 = vmatpush1.bf16.msra.mxu1 %v7413_v43  ;;  %5036 = vmatprep.subr.bf16.mxu0 %v7424_v17  ;;  %v7481_v43 = vld [vmem:[#allocation7 + $0x108c] ss:$24 sps:$4 sm:$0xff]   ;;  %v7482_v17 = vld [vmem:[#allocation7 + $0xac0] ss:$24 sps:$4 sm:$0xff]  }
 0x391   :  { %4870 = vmatprep.subr.bf16.mxu1 %v7421_v24  ;;  %v7479_v24 = vld [vmem:[#allocation7 + $0x1088] ss:$24 sps:$4 sm:$0xff]  }
 0x393   :  { %5037 = vmatpush1.bf16.msra.mxu0 %v7422_v54  ;;  %v7490_v54 = vld [vmem:[#allocation7 + $0xaf4] ss:$24 sps:$4 sm:$0xff]  }
 0x394   :  { %4871 = vmatpush1.bf16.msra.mxu1 %v7419_v15  ;;  %5047 = vmatprep.subr.bf16.mxu0 %v7430_v5  ;;  %v7487_v15 = vld [vmem:[#allocation7 + $0x10bc] ss:$24 sps:$4 sm:$0xff]   ;;  %v7488_v5 = vld [vmem:[#allocation7 + $0xaf0] ss:$24 sps:$4 sm:$0xff]  }
 0x395   :  { %4872 = vmatprep.subr.bf16.mxu1 %v7427_v27  ;;  %v7485_v27 = vld [vmem:[#allocation7 + $0x10b8] ss:$24 sps:$4 sm:$0xff]  }
 0x396   :  { %5039 = vmatmul.mubr.bf16.vlgmr.msra.gmra.mrb[12].mxu0 %v8128_v35  ;;  %v7445_v35 = vld [vmem:[#allocation7 + $0xf6c] ss:$24 sps:$4 sm:$0xff]  }
 0x397   :  { %5048 = vmatpush1.bf16.msra.mxu0 %v7428_v56  ;;  %5079 = vmatprep.mubr.bf16.mxu0 %v8137_v46  ;;  %v7446_v46 = vld [vmem:[#allocation7 + $0x9a0] ss:$24 sps:$4 sm:$0xff]   ;;  %v7496_v56 = vld [vmem:[#allocation7 + $0xb24] ss:$24 sps:$4 sm:$0xff]  }
 0x398   :  { %4873 = vmatpush1.bf16.msra.mxu1 %v7425_v2  ;;  %5049 = vmatprep.subr.bf16.mxu0 %v7436_v28  ;;  %v7493_v2 = vld [vmem:[#allocation7 + $0x10ec] ss:$24 sps:$4 sm:$0xff]   ;;  %v7494_v28 = vld [vmem:[#allocation7 + $0xb20] ss:$24 sps:$4 sm:$0xff]  }
 0x399   :  { %4883 = vmatprep.subr.bf16.mxu1 %v7433_v31  ;;  %v7491_v31 = vld [vmem:[#allocation7 + $0x10e8] ss:$24 sps:$4 sm:$0xff]  }
 0x39b   :  { %4875 = vmatmul.mubr.bf16.vlgmr.msra.gmra.mrb[20].mxu1 %v8195_v1  ;;  %5050 = vmatpush1.bf16.msra.mxu0 %v7434_v22  ;;  %v7502_v22 = vld [vmem:[#allocation7 + $0xb54] ss:$24 sps:$4 sm:$0xff]  }
 0x39c   :  { %4884 = vmatpush1.bf16.msra.mxu1 %v7431_v34  ;;  %4915 = vmatprep.mubr.bf16.mxu1 %v8199_v63  ;;  %v7499_v34 = vld [vmem:[#allocation7 + $0x111c] ss:$24 sps:$4 sm:$0xff]  }
 0x39d   :  { %4885 = vmatprep.subr.bf16.mxu1 %v7439_v38  ;;  %5051 = vmatprep.subr.bf16.mxu0 %v7442_v36  ;;  %v7500_v38 = vld [vmem:[#allocation7 + $0xb50] ss:$24 sps:$4 sm:$0xff]  }
 0x39e   :  { %v7497_v36 = vld [vmem:[#allocation7 + $0x1118] ss:$24 sps:$4 sm:$0xff]  }
 0x39f   :  { %5052 = vmatpush1.bf16.msra.mxu0 %v7440_v60  ;;  %v7508_v60 = vld [vmem:[#allocation7 + $0xb84] ss:$24 sps:$4 sm:$0xff]  }
 0x3a0   :  { %4886 = vmatpush1.bf16.msra.mxu1 %v7437_v40  ;;  %5053 = vmatprep.subr.bf16.mxu0 %v7448_v44  ;;  %v7505_v40 = vld [vmem:[#allocation7 + $0x114c] ss:$24 sps:$4 sm:$0xff]   ;;  %v7506_v44 = vld [vmem:[#allocation7 + $0xb80] ss:$24 sps:$4 sm:$0xff]  }
 0x3a1   :  { %4887 = vmatprep.subr.bf16.mxu1 %v7445_v35  ;;  %v7503_v35 = vld [vmem:[#allocation7 + $0x1148] ss:$24 sps:$4 sm:$0xff]  }
 0x3a3   :  { %5054 = vmatpush1.bf16.msra.mxu0 %v7446_v46  ;;  %v7514_v46 = vld [vmem:[#allocation7 + $0xbb4] ss:$24 sps:$4 sm:$0xff]  }
 0x3a4   :  { %4888 = vmatpush1.bf16.msra.mxu1 %v7443_v33  ;;  %5055 = vmatprep.subr.bf16.mxu0 %v7454_v55  ;;  %v7511_v33 = vld [vmem:[#allocation7 + $0x117c] ss:$24 sps:$4 sm:$0xff]   ;;  %v7512_v55 = vld [vmem:[#allocation7 + $0xbb0] ss:$24 sps:$4 sm:$0xff]  }
 0x3a5   :  { %4889 = vmatprep.subr.bf16.mxu1 %v7451_v10  ;;  %v7509_v10 = vld [vmem:[#allocation7 + $0x1178] ss:$24 sps:$4 sm:$0xff]  }
 0x3a7   :  { %5056 = vmatpush1.bf16.msra.mxu0 %v7452_v29  ;;  %v7520_v29 = vld [vmem:[#allocation7 + $0xbe4] ss:$24 sps:$4 sm:$0xff]  }
 0x3a8   :  { %4890 = vmatpush1.bf16.msra.mxu1 %v7449_v62  ;;  %5057 = vmatprep.subr.bf16.mxu0 %v7460_v0  ;;  %v7518_v62 = vld [vmem:[#allocation7 + $0xbe0] ss:$24 sps:$4 sm:$0xff]  }
 0x3a9   :  { %v4671_v48 = vpop.f32.mrb[8].mxu0  ;;  %4891 = vmatprep.subr.bf16.mxu1 %v7457_v11  ;;  %v7515_v0 = vld [vmem:[#allocation7 + $0x11a8] ss:$24 sps:$4 sm:$0xff]   ;;  %v7523_v11 = vld [vmem:[#allocation7 + $0x11dc] ss:$24 sps:$4 sm:$0xff]  }
 0x3aa   :  { %v8237_v7 = vadd.f32 %v6526_v3, %v4671_v48  ;;  %v4673_v8 = vpop.f32.mrb[9].mxu0  ;;  %v7521_v3 = vld [vmem:[#allocation7 + $0x11d8] ss:$24 sps:$4 sm:$0xff]  }
 0x3ab   :  { %v8239_v9 = vadd.f32 %v6528_v42, %v4673_v8  ;;  %v4675_v49 = vpop.f32.mrb[10].mxu0  ;;  %5058 = vmatpush1.bf16.msra.mxu0 %v7458_v61  ;;  %v7524_v61 = vld [vmem:[#allocation7 + $0xc10] ss:$24 sps:$4 sm:$0xff]   ;;  %v7532_v42 = vld [vmem:[#allocation7 + $0xc74] ss:$24 sps:$4 sm:$0xff]  }
 0x3ac   :  { %4892 = vmatpush1.bf16.msra.mxu1 %v7455_v26  ;;  %v4676_v14 = vpop.f32.mrb[11].mxu0  ;;  %5059 = vmatprep.subr.bf16.mxu0 %v7466_v4  ;;  %v7529_v26 = vld [vmem:[#allocation7 + $0xc44] ss:$24 sps:$4 sm:$0xff]   ;;  %v7527_v4 = vld [vmem:[#allocation7 + $0xc40] ss:$24 sps:$4 sm:$0xff]  }
 0x3ad   :  { %4893 = vmatprep.subr.bf16.mxu1 %v7463_v32  ;;  %v7530_v48 = vld [vmem:[#allocation7 + $0xc70] ss:$24 sps:$4 sm:$0xff]   ;;  %v7535_v32 = vld [vmem:[#allocation7 + $0xca4] ss:$24 sps:$4 sm:$0xff]   ;;  %v7533_v8 = vld [vmem:[#allocation7 + $0xca0] ss:$24 sps:$4 sm:$0xff]  }
 0x3ae   :  { %v7538_v49 = vld [vmem:[#allocation7 + $0xcd4] ss:$24 sps:$4 sm:$0xff]  }
 0x3af   :  { %5060 = vmatpush1.bf16.msra.mxu0 %v7464_v13  ;;  %v7536_v13 = vld [vmem:[#allocation7 + $0xcd0] ss:$24 sps:$4 sm:$0xff]   ;;  %v7544_v14 = vld [vmem:[#allocation7 + $0xd34] ss:$24 sps:$4 sm:$0xff]  }
 0x3b0   :  { %4894 = vmatpush1.bf16.msra.mxu1 %v7461_v25  ;;  %5061 = vmatprep.subr.bf16.mxu0 %v7472_v19  ;;  %v7542_v25 = vld [vmem:[#allocation7 + $0xd30] ss:$24 sps:$4 sm:$0xff]   ;;  %v7547_v19 = vld [vmem:[#allocation7 + $0xd64] ss:$24 sps:$4 sm:$0xff]  }
 0x3b1   :  { %4895 = vmatprep.subr.bf16.mxu1 %v7469_v20  ;;  %v7545_v20 = vld [vmem:[#allocation7 + $0xd60] ss:$24 sps:$4 sm:$0xff]  }
 0x3b3   :  { %5062 = vmatpush1.bf16.msra.mxu0 %v7470_v52  ;;  %v7550_v52 = vld [vmem:[#allocation7 + $0xd94] ss:$24 sps:$4 sm:$0xff]  }
 0x3b4   :  { %4896 = vmatpush1.bf16.msra.mxu1 %v7467_v23  ;;  %5063 = vmatprep.subr.bf16.mxu0 %v7478_v39  ;;  %v7548_v23 = vld [vmem:[#allocation7 + $0xd90] ss:$24 sps:$4 sm:$0xff]   ;;  %v7553_v39 = vld [vmem:[#allocation7 + $0xdc4] ss:$24 sps:$4 sm:$0xff]  }
 0x3b5   :  { %4897 = vmatprep.subr.bf16.mxu1 %v7475_v6  ;;  %v7551_v6 = vld [vmem:[#allocation7 + $0xdc0] ss:$24 sps:$4 sm:$0xff]  }
 0x3b7   :  { %5064 = vmatpush1.bf16.msra.mxu0 %v7476_v58  ;;  %v7556_v58 = vld [vmem:[#allocation7 + $0xdf4] ss:$24 sps:$4 sm:$0xff]  }
 0x3b8   :  { %4898 = vmatpush1.bf16.msra.mxu1 %v7473_v12  ;;  %5065 = vmatprep.subr.bf16.mxu0 %v7484_v21  ;;  %v7554_v12 = vld [vmem:[#allocation7 + $0xdf0] ss:$24 sps:$4 sm:$0xff]   ;;  %v7559_v21 = vld [vmem:[#allocation7 + $0xe24] ss:$24 sps:$4 sm:$0xff]  }
 0x3b9   :  { %4899 = vmatprep.subr.bf16.mxu1 %v7481_v43  ;;  %v7557_v43 = vld [vmem:[#allocation7 + $0xe20] ss:$24 sps:$4 sm:$0xff]  }
 0x3bb   :  { %5066 = vmatpush1.bf16.msra.mxu0 %v7482_v17  ;;  %v7562_v17 = vld [vmem:[#allocation7 + $0xe54] ss:$24 sps:$4 sm:$0xff]  }
 0x3bc   :  { %4900 = vmatpush1.bf16.msra.mxu1 %v7479_v24  ;;  %5067 = vmatprep.subr.bf16.mxu0 %v7490_v54  ;;  %v7560_v24 = vld [vmem:[#allocation7 + $0xe50] ss:$24 sps:$4 sm:$0xff]   ;;  %v7565_v54 = vld [vmem:[#allocation7 + $0xe84] ss:$24 sps:$4 sm:$0xff]  }
 0x3bd   :  { %4901 = vmatprep.subr.bf16.mxu1 %v7487_v15  ;;  %v7563_v15 = vld [vmem:[#allocation7 + $0xe80] ss:$24 sps:$4 sm:$0xff]  }
 0x3bf   :  { %5068 = vmatpush1.bf16.msra.mxu0 %v7488_v5  ;;  %v7568_v5 = vld [vmem:[#allocation7 + $0xeb4] ss:$24 sps:$4 sm:$0xff]  }
 0x3c0   :  { %4902 = vmatpush1.bf16.msra.mxu1 %v7485_v27  ;;  %5069 = vmatprep.subr.bf16.mxu0 %v7496_v56  ;;  %v7566_v27 = vld [vmem:[#allocation7 + $0xeb0] ss:$24 sps:$4 sm:$0xff]   ;;  %v7571_v56 = vld [vmem:[#allocation7 + $0xee4] ss:$24 sps:$4 sm:$0xff]  }
 0x3c1   :  { %4903 = vmatprep.subr.bf16.mxu1 %v7493_v2  ;;  %v7569_v2 = vld [vmem:[#allocation7 + $0xee0] ss:$24 sps:$4 sm:$0xff]  }
 0x3c3   :  { %5070 = vmatpush1.bf16.msra.mxu0 %v7494_v28  ;;  %v7574_v28 = vld [vmem:[#allocation7 + $0xf14] ss:$24 sps:$4 sm:$0xff]  }
 0x3c4   :  { %4904 = vmatpush1.bf16.msra.mxu1 %v7491_v31  ;;  %5071 = vmatprep.subr.bf16.mxu0 %v7502_v22  ;;  %v7572_v31 = vld [vmem:[#allocation7 + $0xf10] ss:$24 sps:$4 sm:$0xff]   ;;  %v7577_v22 = vld [vmem:[#allocation7 + $0xf44] ss:$24 sps:$4 sm:$0xff]  }
 0x3c5   :  { %4905 = vmatprep.subr.bf16.mxu1 %v7499_v34  ;;  %v7575_v34 = vld [vmem:[#allocation7 + $0xf40] ss:$24 sps:$4 sm:$0xff]  }
 0x3c7   :  { %5072 = vmatpush1.bf16.msra.mxu0 %v7500_v38  ;;  %v7580_v38 = vld [vmem:[#allocation7 + $0xf74] ss:$24 sps:$4 sm:$0xff]  }
 0x3c8   :  { %4906 = vmatpush1.bf16.msra.mxu1 %v7497_v36  ;;  %5073 = vmatprep.subr.bf16.mxu0 %v7508_v60  ;;  %v7578_v36 = vld [vmem:[#allocation7 + $0xf70] ss:$24 sps:$4 sm:$0xff]   ;;  %v7583_v60 = vld [vmem:[#allocation7 + $0xfa4] ss:$24 sps:$4 sm:$0xff]  }
 0x3c9   :  { %4907 = vmatprep.subr.bf16.mxu1 %v7505_v40  ;;  %v7581_v40 = vld [vmem:[#allocation7 + $0xfa0] ss:$24 sps:$4 sm:$0xff]  }
 0x3cb   :  { %5074 = vmatpush1.bf16.msra.mxu0 %v7506_v44  ;;  %v7586_v44 = vld [vmem:[#allocation7 + $0xfd4] ss:$24 sps:$4 sm:$0xff]  }
 0x3cc   :  { %4908 = vmatpush1.bf16.msra.mxu1 %v7503_v35  ;;  %5075 = vmatprep.subr.bf16.mxu0 %v7514_v46  ;;  %v7584_v35 = vld [vmem:[#allocation7 + $0xfd0] ss:$24 sps:$4 sm:$0xff]   ;;  %v7589_v46 = vld [vmem:[#allocation7 + $0x1004] ss:$24 sps:$4 sm:$0xff]  }
 0x3cd   :  { %4909 = vmatprep.subr.bf16.mxu1 %v7511_v33  ;;  %v7592_v33 = vld [vmem:[#allocation7 + $0x1034] ss:$24 sps:$4 sm:$0xff]  }
 0x3cf   :  { %5076 = vmatpush1.bf16.msra.mxu0 %v7512_v55  ;;  %v7595_v55 = vld [vmem:[#allocation7 + $0x1064] ss:$24 sps:$4 sm:$0xff]  }
 0x3d0   :  { %4910 = vmatpush1.bf16.msra.mxu1 %v7509_v10  ;;  %5077 = vmatprep.subr.bf16.mxu0 %v7520_v29  ;;  %v7593_v10 = vld [vmem:[#allocation7 + $0x1060] ss:$24 sps:$4 sm:$0xff]   ;;  %v7598_v29 = vld [vmem:[#allocation7 + $0x1094] ss:$24 sps:$4 sm:$0xff]  }
 0x3d1   :  { %4911 = vmatprep.subr.bf16.mxu1 %v7517_v30  ;;  %v7596_v30 = vld [vmem:[#allocation7 + $0x1090] ss:$24 sps:$4 sm:$0xff]  }
 0x3d3   :  { %5078 = vmatpush1.bf16.msra.mxu0 %v7518_v62  ;;  %v7601_v62 = vld [vmem:[#allocation7 + $0x10c4] ss:$24 sps:$4 sm:$0xff]  }
 0x3d4   :  { %4912 = vmatpush1.bf16.msra.mxu1 %v7515_v0  ;;  %5088 = vmatprep.subr.bf16.mxu0 %v7526_v41  ;;  %v7620_v0 = vld [vmem:[%s8438_s5 + $0x40] sm:$0xff]  }
 0x3d5   :  { %4913 = vmatprep.subr.bf16.mxu1 %v7523_v11  ;;  %v7621_v41 = vld [vmem:[%s8438_s5] sm:$0xff]   ;;  %v7622_v11 = vld [vmem:[%s8438_s5 + $0x48] sm:$0xff]  }
 0x3d6   :  { %5080 = vmatmul.mubr.bf16.vlgmr.msra.gmra.mrb[12].mxu0 %v8179_v37  ;;  %v7541_v37 = vld [vmem:[#allocation7 + $0xd04] ss:$24 sps:$4 sm:$0xff]  }
 0x3d7   :  { %5089 = vmatpush1.bf16.msra.mxu0 %v7524_v61  ;;  %5120 = vmatprep.mubr.bf16.mxu0 %v8183_v45  ;;  %v7539_v45 = vld [vmem:[#allocation7 + $0xd00] ss:$24 sps:$4 sm:$0xff]  }
 0x3d8   :  { %4914 = vmatpush1.bf16.msra.mxu1 %v7521_v3  ;;  %5090 = vmatprep.subr.bf16.mxu0 %v7529_v26  ;;  %v7599_v61 = vld [vmem:[#allocation7 + $0x10c0] ss:$24 sps:$4 sm:$0xff]   ;;  %v7604_v3 = vld [vmem:[#allocation7 + $0x10f4] ss:$24 sps:$4 sm:$0xff]  }
 0x3d9   :  { %6460 = vmatprep.subr.bf16.mxu1 %v7620_v0  ;;  %v7623_v26 = vld [vmem:[%s8438_s5 + $0x8] sm:$0xff]  }
 0x3db   :  { %4916 = vmatmul.mubr.bf16.vlgmr.msra.gmra.mrb[20].mxu1 %v8207_v53  ;;  %5091 = vmatpush1.bf16.msra.mxu0 %v7527_v4  ;;  %v7624_v4 = vld [vmem:[%s8438_s5 + $0x50] sm:$0xff]  }
 0x3dc   :  { %5092 = vmatprep.subr.bf16.mxu0 %v7532_v42  ;;  %6461 = vmatpush3.bf16.msra.mxu1 %v7621_v41  ;;  %v7602_v42 = vld [vmem:[#allocation7 + $0x10f0] ss:$24 sps:$4 sm:$0xff]  }
 0x3dd   :  { %6462 = vmatprep.subr.bf16.mxu1 %v7622_v11 }
 0x3df   :  { %5093 = vmatpush1.bf16.msra.mxu0 %v7530_v48  ;;  %v7607_v48 = vld [vmem:[#allocation7 + $0x1124] ss:$24 sps:$4 sm:$0xff]  }
 0x3e0   :  { %5094 = vmatprep.subr.bf16.mxu0 %v7535_v32  ;;  %6463 = vmatpush3.bf16.msra.mxu1 %v7623_v26  ;;  %v7625_v32 = vld [vmem:[%s8438_s5 + $0x10] sm:$0xff]  }
 0x3e1   :  { %6464 = vmatprep.subr.bf16.mxu1 %v7624_v4 }
 0x3e3   :  { %5095 = vmatpush1.bf16.msra.mxu0 %v7533_v8  ;;  %v7626_v8 = vld [vmem:[%s8438_s5 + $0x58] sm:$0xff]  }
 0x3e4   :  { %5096 = vmatprep.subr.bf16.mxu0 %v7538_v49  ;;  %v7605_v49 = vld [vmem:[#allocation7 + $0x1120] ss:$24 sps:$4 sm:$0xff]   ;;  %6465 = vmatpush3.bf16.msra.mxu1 %v7625_v32 }
 0x3e5   :  { %6466 = vmatprep.subr.bf16.mxu1 %v7626_v8  ;;  %v7638_v32 = vld [vmem:[%s8438_s5 + $0xc8] sm:$0xff]  }
 0x3e6   :  { %v7639_v8 = vld [vmem:[%s8438_s5 + $0x88] sm:$0xff]  }
 0x3e7   :  { %5097 = vmatpush1.bf16.msra.mxu0 %v7536_v13  ;;  %v7610_v13 = vld [vmem:[#allocation7 + $0x1154] ss:$24 sps:$4 sm:$0xff]  }
 0x3e8   :  { %5098 = vmatprep.subr.bf16.mxu0 %v7541_v37  ;;  %v7627_v37 = vld [vmem:[%s8438_s5 + $0x18] sm:$0xff]  }
 0x3e9   :  { %6467 = vmatpush3.bf16.msra.mxu1 %v7627_v37  ;;  %v7642_v37 = vld [vmem:[%s8438_s5 + $0xd8] sm:$0xff]  }
 0x3eb   :  { %5099 = vmatpush1.bf16.msra.mxu0 %v7539_v45  ;;  %v7628_v45 = vld [vmem:[%s8438_s5 + $0x60] sm:$0xff]  }
 0x3ec   :  { %5100 = vmatprep.subr.bf16.mxu0 %v7544_v14  ;;  %v7608_v14 = vld [vmem:[#allocation7 + $0x1150] ss:$24 sps:$4 sm:$0xff]   ;;  %6468 = vmatprep.subr.bf16.mxu1 %v7628_v45 }
 0x3ed   :  { %v7643_v45 = vld [vmem:[%s8438_s5 + $0x98] sm:$0xff]  }
 0x3ef   :  { %5101 = vmatpush1.bf16.msra.mxu0 %v7542_v25  ;;  %v7613_v25 = vld [vmem:[#allocation7 + $0x1184] ss:$24 sps:$4 sm:$0xff]  }
 0x3f0   :  { %5102 = vmatprep.subr.bf16.mxu0 %v7547_v19  ;;  %v7629_v19 = vld [vmem:[%s8438_s5 + $0x20] sm:$0xff]  }
 0x3f1   :  { %6469 = vmatpush3.bf16.msra.mxu1 %v7629_v19  ;;  %v7646_v19 = vld [vmem:[%s8438_s5 + $0xe8] sm:$0xff]  }
 0x3f3   :  { %5103 = vmatpush1.bf16.msra.mxu0 %v7545_v20  ;;  %v7630_v20 = vld [vmem:[%s8438_s5 + $0x68] sm:$0xff]  }
 0x3f4   :  { %5104 = vmatprep.subr.bf16.mxu0 %v7550_v52  ;;  %v7611_v52 = vld [vmem:[#allocation7 + $0x1180] ss:$24 sps:$4 sm:$0xff]   ;;  %6470 = vmatprep.subr.bf16.mxu1 %v7630_v20 }
 0x3f5   :  { %v7647_v20 = vld [vmem:[%s8438_s5 + $0xa8] sm:$0xff]  }
 0x3f7   :  { %5105 = vmatpush1.bf16.msra.mxu0 %v7548_v23  ;;  %v7616_v23 = vld [vmem:[#allocation7 + $0x11b4] ss:$24 sps:$4 sm:$0xff]  }
 0x3f8   :  { %5106 = vmatprep.subr.bf16.mxu0 %v7553_v39  ;;  %v7614_v39 = vld [vmem:[#allocation7 + $0x11b0] ss:$24 sps:$4 sm:$0xff]  }
 0x3fb   :  { %5107 = vmatpush1.bf16.msra.mxu0 %v7551_v6  ;;  %v7619_v6 = vld [vmem:[#allocation7 + $0x11e4] ss:$24 sps:$4 sm:$0xff]  }
 0x3fc   :  { %5108 = vmatprep.subr.bf16.mxu0 %v7556_v58  ;;  %v7617_v58 = vld [vmem:[#allocation7 + $0x11e0] ss:$24 sps:$4 sm:$0xff]  }
 0x3ff   :  { %5109 = vmatpush1.bf16.msra.mxu0 %v7554_v12  ;;  %v7631_v12 = vld [vmem:[%s8438_s5 + $0x28] sm:$0xff]  }
 0x400   :  { %5110 = vmatprep.subr.bf16.mxu0 %v7559_v21  ;;  %6471 = vmatpush3.bf16.msra.mxu1 %v7631_v12  ;;  %v7632_v21 = vld [vmem:[%s8438_s5 + $0x70] sm:$0xff]  }
 0x401   :  { %6472 = vmatprep.subr.bf16.mxu1 %v7632_v21 }
 0x403   :  { %5111 = vmatpush1.bf16.msra.mxu0 %v7557_v43  ;;  %v7633_v43 = vld [vmem:[%s8438_s5 + $0x30] sm:$0xff]  }
 0x404   :  { %5112 = vmatprep.subr.bf16.mxu0 %v7562_v17  ;;  %v1533_v17 = vrot.slane %v8229_v59, %v7986_v51  ;;  %6473 = vmatpush3.bf16.msra.mxu1 %v7633_v43 }
 0x407   :  { %5113 = vmatpush1.bf16.msra.mxu0 %v7560_v24  ;;  %v7634_v24 = vld [vmem:[%s8438_s5 + $0x78] sm:$0xff]  }
 0x408   :  { %5114 = vmatprep.subr.bf16.mxu0 %v7565_v54  ;;  %6474 = vmatprep.subr.bf16.mxu1 %v7634_v24 }
 0x40b   :  { %5115 = vmatpush1.bf16.msra.mxu0 %v7563_v15  ;;  %v7635_v15 = vld [vmem:[%s8438_s5 + $0x38] sm:$0xff]  }
 0x40c   :  { %5116 = vmatprep.subr.bf16.mxu0 %v7568_v5  ;;  %6475 = vmatpush3.bf16.msra.mxu1 %v7635_v15 }
 0x40f   :  { %5117 = vmatpush1.bf16.msra.mxu0 %v7566_v27 }
 0x410   :  { %5118 = vmatprep.subr.bf16.mxu0 %v7571_v56 }
 0x413   :  { %5119 = vmatpush1.bf16.msra.mxu0 %v7569_v2  ;;  %v5171_v2 = vmax.f32 %v8239_v9, 0.0 }
 0x414   :  { %5129 = vmatprep.subr.bf16.mxu0 %v7574_v28 }
 0x416   :  { %5121 = vmatmul.mubr.bf16.vlgmr.msra.gmra.mrb[12].mxu0 %v8195_v1  ;;  %v7587_v1 = vld [vmem:[#allocation7 + $0x1000] ss:$24 sps:$4 sm:$0xff]  }
 0x417   :  { %5130 = vmatpush1.bf16.msra.mxu0 %v7572_v31  ;;  %5161 = vmatprep.mubr.bf16.mxu0 %v8199_v63  ;;  %v7590_v63 = vld [vmem:[#allocation7 + $0x1030] ss:$24 sps:$4 sm:$0xff]   ;;  %v5170_v31 = vmax.f32 %v8237_v7, 0.0  ;;  %v1541_v7 = vrot.slane %v8229_v59, %v205_v50 }
 0x418   :  { %5131 = vmatprep.subr.bf16.mxu0 %v7577_v22 }
 0x41b   :  { %5132 = vmatpush1.bf16.msra.mxu0 %v7575_v34 }
 0x41c   :  { %5133 = vmatprep.subr.bf16.mxu0 %v7580_v38  ;;  %v7636_v38 = vld [vmem:[%s8438_s5 + $0xc0] sm:$0xff]  }
 0x41d   :  { %6482 = vmatprep.subr.bf16.mxu1 %v7636_v38  ;;  %v7657_v38 = vld [vmem:[%s8438_s5 + $0x110] sm:$0xff]  }
 0x41f   :  { %5134 = vmatpush1.bf16.msra.mxu0 %v7578_v36 }
 0x420   :  { %5135 = vmatprep.subr.bf16.mxu0 %v7583_v60  ;;  %v1545_v60 = vrot.slane %v8229_v59, %v209_v16 }
 0x423   :  { %5136 = vmatpush1.bf16.msra.mxu0 %v7581_v40 }
 0x424   :  { %5137 = vmatprep.subr.bf16.mxu0 %v7586_v44 }
 0x427   :  { %5138 = vmatpush1.bf16.msra.mxu0 %v7584_v35 }
 0x428   :  { %5139 = vmatprep.subr.bf16.mxu0 %v7589_v46 }
 0x42b   :  { %5140 = vmatpush1.bf16.msra.mxu0 %v7587_v1 }
 0x42c   :  { %5141 = vmatprep.subr.bf16.mxu0 %v7592_v33 }
 0x42f   :  { %5142 = vmatpush1.bf16.msra.mxu0 %v7590_v63 }
 0x430   :  { %5143 = vmatprep.subr.bf16.mxu0 %v7595_v55 }
 0x433   :  { %5144 = vmatpush1.bf16.msra.mxu0 %v7593_v10 }
 0x434   :  { %5145 = vmatprep.subr.bf16.mxu0 %v7598_v29 }
 0x437   :  { %5146 = vmatpush1.bf16.msra.mxu0 %v7596_v30 }
 0x438   :  { %5147 = vmatprep.subr.bf16.mxu0 %v7601_v62 }
 0x43b   :  { %5148 = vmatpush1.bf16.msra.mxu0 %v7599_v61 }
 0x43c   :  { %5149 = vmatprep.subr.bf16.mxu0 %v7604_v3 }
 0x43f   :  { %5150 = vmatpush1.bf16.msra.mxu0 %v7602_v42 }
 0x440   :  { %5151 = vmatprep.subr.bf16.mxu0 %v7607_v48  ;;  %v7637_v48 = vld [vmem:[%s8438_s5 + $0x80] sm:$0xff]  }
 0x443   :  { %5152 = vmatpush1.bf16.msra.mxu0 %v7605_v49  ;;  %v7640_v49 = vld [vmem:[%s8438_s5 + $0xd0] sm:$0xff]  }
 0x444   :  { %5153 = vmatprep.subr.bf16.mxu0 %v7610_v13  ;;  %v7641_v13 = vld [vmem:[%s8438_s5 + $0x90] sm:$0xff]  }
 0x447   :  { %5154 = vmatpush1.bf16.msra.mxu0 %v7608_v14  ;;  %v7644_v14 = vld [vmem:[%s8438_s5 + $0xe0] sm:$0xff]  }
 0x448   :  { %5155 = vmatprep.subr.bf16.mxu0 %v7613_v25  ;;  %v7645_v25 = vld [vmem:[%s8438_s5 + $0xa0] sm:$0xff]  }
 0x44b   :  { %5156 = vmatpush1.bf16.msra.mxu0 %v7611_v52  ;;  %v7648_v52 = vld [vmem:[%s8438_s5 + $0xf0] sm:$0xff]  }
 0x44c   :  { %5157 = vmatprep.subr.bf16.mxu0 %v7616_v23  ;;  %v7649_v23 = vld [vmem:[%s8438_s5 + $0xb0] sm:$0xff]  }
 0x44f   :  { %5158 = vmatpush1.bf16.msra.mxu0 %v7614_v39  ;;  %v7650_v39 = vld [vmem:[%s8438_s5 + $0xf8] sm:$0xff]  }
 0x450   :  { %5159 = vmatprep.subr.bf16.mxu0 %v7619_v6  ;;  %v7651_v6 = vld [vmem:[%s8438_s5 + $0xb8] sm:$0xff]  }
 0x453   :  { %5160 = vmatpush1.bf16.msra.mxu0 %v7617_v58  ;;  %v7652_v58 = vld [vmem:[%s8438_s5 + $0x140] sm:$0xff]  }
 0x456   :  { %5162 = vmatmul.mubr.bf16.vlgmr.msra.gmra.mrb[12].mxu0 %v8207_v53  ;;  %v1537_v53 = vrot.slane %v8229_v59, %v8013_v18 }
 0x4ae   :  { %v4917_v54 = vpop.f32.mrb[20].mxu1 }
 0x4af   :  { %v6530_v5 = vadd.f32 %v4917_v54, %v1533_v17  ;;  %v4919_v27 = vpop.f32.mrb[21].mxu1 }
 0x4b0   :  { %v8299_v56 = vadd.f32 %v4919_v27, %v1537_v53  ;;  %v4921_v51 = vpop.f32.mrb[22].mxu1 }
 0x4b1   :  { %v5172_v18 = vmax.f32 %v6530_v5, 0.0  ;;  %v4922_v28 = vpop.f32.mrb[23].mxu1 }
 0x4b2   :  { %v5173_v22 = vmax.f32 %v8299_v56, 0.0  ;;  %v7655_v56 = vld [vmem:[%s8438_s5 + $0x108] sm:$0xff]  }
 0x4b3   :  { %v6633_v34 = vpack.i.bf16 %v5172_v18, %v5171_v2 }
 0x4b4   :  { %v6638_v36 = vpack.i.bf16 %v5170_v31, %v5173_v22 }
 0x4b5   :  { %6634 = vrot.lane.b32.xlu0 %v6633_v34, %s7820_s20  ;;  %v7654_v34 = vld [vmem:[%s8438_s5 + $0x148] sm:$0xff]  }
 0x4b6   :  { %6639 = vrot.lane.b32.xlu1 %v6638_v36, %s7820_s20  ;;  %v7658_v36 = vld [vmem:[%s8438_s5 + $0x158] sm:$0xff]  }
 0x527   :  { %v6635_v9 = vpop.permute.xlu0 %6634 }
 0x528   :  { %v6637_v40 = vunpack.i.h.bf16 %v6635_v9  ;;  %v6636_v44 = vunpack.i.l.bf16 %v6635_v9  ;;  %v8318_v35 = vpop.permute.xlu1 %6639  ;;  %v7660_v9 = vld [vmem:[%s8438_s5 + $0x160] sm:$0xff]  }
 0x529   :  { %v6642_v46 = vunpack.i.h.bf16 %v8318_v35  ;;  %v6641_v1 = vunpack.i.l.bf16 %v8318_v35  ;;  %v5163_v33 = vpop.f32.mrb[12].mxu0  ;;  %v7664_v35 = vld [vmem:[%s8438_s5 + $0x170] sm:$0xff]  }
 0x52a   :  { %v5192_v63 = vsel %vm5188_vm2, %v6636_v44, %v6637_v40  ;;  %v6532_v50 = vadd.f32 %v5163_v33, %v1541_v7  ;;  %v5165_v55 = vpop.f32.mrb[13].mxu0  ;;  %v7659_v7 = vld [vmem:[%s8438_s5 + $0x118] sm:$0xff]  }
 0x52b   :  { %v5191_v10 = vsel %vm5188_vm2, %v6637_v40, %v6641_v1  ;;  %v5193_v47 = vsel %vm5188_vm2, %v6642_v46, %v6636_v44  ;;  %v6533_v16 = vadd.f32 %v5165_v55, %v1545_v60  ;;  %v5167_v59 = vpop.f32.mrb[14].mxu0  ;;  %v5196_v29 = vmax.f32 %v5171_v2, %v5192_v63  ;;  %v7661_v60 = vld [vmem:[%s8438_s5 + $0x120] sm:$0xff]   ;;  %v7662_v40 = vld [vmem:[%s8438_s5 + $0x168] sm:$0xff]   ;;  %v7667_v33 = vld [vmem:[%s8438_s5 + $0x138] sm:$0xff]  }
 0x52c   :  { %v5195_v30 = vmax.f32 %v5170_v31, %v5193_v47  ;;  %v5174_v62 = vmax.f32 %v6532_v50, 0.0  ;;  %v5168_v0 = vpop.f32.mrb[15].mxu0  ;;  %v5197_v41 = vmax.f32 %v5172_v18, %v5191_v10  ;;  %v7653_v31 = vld [vmem:[%s8438_s5 + $0x100] sm:$0xff]   ;;  %v7663_v44 = vld [vmem:[%s8438_s5 + $0x128] sm:$0xff]  }
 0x52d   :  { %v5175_v11 = vmax.f32 %v6533_v16, 0.0 }
 0x52e   :  { %v5202_v61 = vmax.f32 %v5196_v29, %v5197_v41  ;;  %v5201_v3 = vmax.f32 %v5195_v30, %v5196_v29  ;;  %v6409_v29 = vld [vmem:[#allocation10] ss:$0 sm:$0xff] }
 0x52f   :  { %v6643_v26 = vpack.i.bf16 %v5175_v11, %v5174_v62 }
 0x530   :  { %v5208_v4 = vpack.c.bf16 %v5202_v61, %v5202_v61  ;;  %v5207_v42 = vpack.c.bf16 %v5201_v3, %v5201_v3 }
 0x531   :  { %6644 = vrot.lane.b32.xlu0 %v6643_v26, %s7820_s20 }
 0x532   :  { %5636 = vmatprep.mubr.bf16.mxu1 %v5208_v4 }
 0x533   :  { %5637 = vmatmul.mubr.bf16.vlgmr.msra.gmra.mrb[24].mxu1 %v5207_v42 }
 0x534   :  { %6483 = vmatpush3.bf16.msra.mxu1 %v7637_v48 }
 0x535   :  { %6484 = vmatprep.subr.bf16.mxu1 %v7638_v32 }
 0x538   :  { %6485 = vmatpush3.bf16.msra.mxu1 %v7639_v8 }
 0x539   :  { %6486 = vmatprep.subr.bf16.mxu1 %v7640_v49  ;;  %v6458_v49 = vld [vmem:[#allocation11] ss:$0 sm:$0xff] }
 0x53c   :  { %6487 = vmatpush3.bf16.msra.mxu1 %v7641_v13 }
 0x53d   :  { %6488 = vmatprep.subr.bf16.mxu1 %v7642_v37 }
 0x540   :  { %6489 = vmatpush3.bf16.msra.mxu1 %v7643_v45 }
 0x541   :  { %6490 = vmatprep.subr.bf16.mxu1 %v7644_v14  ;;  %v6459_v14 = vld [vmem:[#allocation2] ss:$0 sm:$0xff] }
 0x544   :  { %6491 = vmatpush3.bf16.msra.mxu1 %v7645_v25 }
 0x545   :  { %6492 = vmatprep.subr.bf16.mxu1 %v7646_v19 }
 0x548   :  { %6493 = vmatpush3.bf16.msra.mxu1 %v7647_v20 }
 0x549   :  { %6494 = vmatprep.subr.bf16.mxu1 %v7648_v52 }
 0x54c   :  { %6495 = vmatpush3.bf16.msra.mxu1 %v7649_v23 }
 0x54d   :  { %6496 = vmatprep.subr.bf16.mxu1 %v7650_v39 }
 0x550   :  { %6497 = vmatpush3.bf16.msra.mxu1 %v7651_v6 }
 0x551   :  { %6504 = vmatprep.subr.bf16.mxu1 %v7652_v58 }
 0x5a3   :  { %v6645_v12 = vpop.permute.xlu0 %6644 }
 0x5a4   :  { %v6647_v21 = vunpack.i.h.bf16 %v6645_v12  ;;  %v6646_v43 = vunpack.i.l.bf16 %v6645_v12 }
 0x5a6   :  { %v5194_v17 = vsel %vm5188_vm2, %v6647_v21, %v6642_v46  ;;  %v5189_v53 = vsel %vm5188_vm2, %v6646_v43, %v6647_v21  ;;  %v5190_v24 = vsel %vm5188_vm2, %v6641_v1, %v6646_v43  ;;  %v7665_v46 = vld [vmem:[%s8438_s5 + $0x130] sm:$0xff]   ;;  %v7666_v1 = vld [vmem:[%s8438_s5 + $0x178] sm:$0xff]  }
 0x5a7   :  { %v5200_v54 = vmax.f32 %v5175_v11, %v5194_v17  ;;  %v5198_v15 = vmax.f32 %v5173_v22, %v5190_v24  ;;  %v5199_v5 = vmax.f32 %v5174_v62, %v5189_v53  ;;  %v7656_v22 = vld [vmem:[%s8438_s5 + $0x150] sm:$0xff]  }
 0x5a9   :  { %v5204_v27 = vmax.f32 %v5198_v15, %v5199_v5  ;;  %v5203_v51 = vmax.f32 %v5197_v41, %v5198_v15  ;;  %v5206_v2 = vmax.f32 %v5200_v54, %v5195_v30  ;;  %v5205_v63 = vmax.f32 %v5199_v5, %v5200_v54 }
 0x5ab   :  { %v5210_v18 = vpack.c.bf16 %v5204_v27, %v5204_v27  ;;  %v5209_v28 = vpack.c.bf16 %v5203_v51, %v5203_v51  ;;  %v5212_v57 = vpack.c.bf16 %v5206_v2, %v5206_v2  ;;  %v5211_v50 = vpack.c.bf16 %v5205_v63, %v5205_v63 }
 0x5ad   :  { %5676 = vmatprep.mubr.bf16.mxu1 %v5210_v18 }
 0x5ae   :  { %5677 = vmatmul.mubr.bf16.vlgmr.msra.gmra.mrb[28].mxu1 %v5209_v28 }
 0x5af   :  { %6505 = vmatpush3.bf16.msra.mxu1 %v7653_v31  ;;  %5716 = vmatprep.mubr.bf16.mxu1 %v5212_v57 }
 0x5b0   :  { %6506 = vmatprep.subr.bf16.mxu1 %v7654_v34 }
 0x5b3   :  { %6507 = vmatpush3.bf16.msra.mxu1 %v7655_v56 }
 0x5b4   :  { %6508 = vmatprep.subr.bf16.mxu1 %v7656_v22 }
 0x5b7   :  { %6509 = vmatpush3.bf16.msra.mxu1 %v7657_v38 }
 0x5b8   :  { %6510 = vmatprep.subr.bf16.mxu1 %v7658_v36 }
 0x5bb   :  { %6511 = vmatpush3.bf16.msra.mxu1 %v7659_v7 }
 0x5bc   :  { %6512 = vmatprep.subr.bf16.mxu1 %v7660_v9 }
 0x5bf   :  { %6513 = vmatpush3.bf16.msra.mxu1 %v7661_v60 }
 0x5c0   :  { %6514 = vmatprep.subr.bf16.mxu1 %v7662_v40 }
 0x5c3   :  { %6515 = vmatpush3.bf16.msra.mxu1 %v7663_v44 }
 0x5c4   :  { %6516 = vmatprep.subr.bf16.mxu1 %v7664_v35 }
 0x5c7   :  { %6517 = vmatpush3.bf16.msra.mxu1 %v7665_v46 }
 0x5c8   :  { %6518 = vmatprep.subr.bf16.mxu1 %v7666_v1 }
 0x5cb   :  { %6519 = vmatpush3.bf16.msra.mxu1 %v7667_v33 }
 0x5ce   :  { %5717 = vmatmul.mubr.bf16.vlgmr.msra.gmra.mrb[32].mxu1 %v5211_v50 }
 0x606   :  { %v6476_v55 = vpop.f32.mrb[24].mxu1 }
 0x607   :  { %v6477_v10 = vpop.f32.mrb[25].mxu1 }
 0x608   :  { %v6478_v47 = vadd.f32 %v6477_v10, %v6476_v55  ;;  %v6479_v16 = vpop.f32.mrb[26].mxu1 }
 0x609   :  { %v6480_v59 = vpop.f32.mrb[27].mxu1 }
 0x60a   :  { %v5639_v0 = vadd.f32 %v6478_v47, %v6409_v29 }
 0x681   :  { %v6498_v30 = vpop.f32.mrb[28].mxu1 }
 0x682   :  { %v6499_v62 = vpop.f32.mrb[29].mxu1 }
 0x683   :  { %v6500_v41 = vadd.f32 %v6499_v62, %v6498_v30  ;;  %v6501_v11 = vpop.f32.mrb[30].mxu1 }
 0x684   :  { %v6502_v61 = vpop.f32.mrb[31].mxu1 }
 0x685   :  { %v5679_v3 = vadd.f32 %v6500_v41, %v5639_v0 }
 0x6a1   :  { %v6520_v26 = vpop.f32.mrb[32].mxu1 }
 0x6a2   :  { %v6521_v4 = vpop.f32.mrb[33].mxu1 }
 0x6a3   :  { %v6522_v42 = vadd.f32 %v6521_v4, %v6520_v26  ;;  %v6523_v48 = vpop.f32.mrb[34].mxu1 }
 0x6a4   :  { %v6524_v32 = vpop.f32.mrb[35].mxu1 }
 0x6a5   :  { %v5719_v8 = vadd.f32 %v6522_v42, %v5679_v3 }
 0x6a7   :  { %v5724_v13 = vmax.f32 %v5719_v8, 0.0 }
 0x6a9   :  { %v5732_v37 = vmul.f32 %v6458_v49, %v5724_v13 }
 0x6ab   :  { %v5734_v45 = vsel %vm5733_vm3, %v5732_v37, 0.0 }
 0x6ac   :  { %5735 = vadd.xlane.f32.xlu1 %v5734_v45 }
 0x739   :  { %v5736_v25 = vpop.xlane.xlu1 %5735 }
 0x73a   :  { %v5744_v19 = vadd.f32 %v6459_v14, %v5736_v25 }
 0x73c   :  { %5746 = vst.msk [vmem:[%s8442_s9] sm:$0xff] %vm5745_vm4, %v5744_v19 }
 0x73d   :  { %5751 = vsyncpa [#allocation4], 1 }
 0x73e   :  { %5752 = vsyncpa [#allocation6], 1 }
 0x73f   :  { %5753 = vsyncpa [#allocation9], 1 }
 0x740   :  { %5754 = vsyncpa [#allocation12], 1 }

</bundles_post_ra>
